<compile_context>
chip_gen: v7x
topology: tpu7x:2x2x1
jax: 0.10.0
libtpu: 0.0.40
codegen_flags: <defaults>
</compile_context>

<pallas_src>
import functools
import math

import jax
import jax.numpy as jnp
from jax import lax
from jax.experimental import pallas as pl
from jax.experimental.pallas import tpu as pltpu


def _round_up(x, m):
    return (x + m - 1) // m * m


def _tile(dim, pref, align):
    """(padded_dim, block) for one matmul axis.

    Dims <= align stay un-padded (full-dim blocks are legal, avoids padding
    waste for tiny K/N); otherwise use a single block when it fits in `pref`,
    else `pref`-sized blocks (pref is a multiple of 256 -> good MXU feed on
    v6e/v7x, harmless on v5e)."""
    if dim <= align:
        return dim, dim
    dp = _round_up(dim, align)
    if dp <= pref:
        return dp, dp
    dp = _round_up(dim, pref)
    return dp, pref


# ---------------------------------------------------------------------------
# Generic bias-matmul (bf16 MXU inputs, f32 K-grid accumulator)
# ---------------------------------------------------------------------------
def _matmul_bias_kernel(a_ref, b_ref, bias_ref, o_ref, acc_ref, *, activation):
    @pl.when(pl.program_id(2) == 0)
    def _init():
        acc_ref[...] = jnp.zeros_like(acc_ref)

    acc_ref[...] += jnp.dot(a_ref[...], b_ref[...],
                            preferred_element_type=jnp.float32)

    @pl.when(pl.program_id(2) == pl.num_programs(2) - 1)
    def _fin():
        acc = acc_ref[...] + bias_ref[...]
        if activation == "relu":
            acc = jnp.maximum(acc, 0.0)
        o_ref[...] = acc.astype(o_ref.dtype)


def matmul_bias(a, b, bias, activation="none", out_dtype=jnp.float32,
                block_m=256, block_n=512, block_k=512):
    """act(a @ b + bias) with selectable output dtype (bf16 for intermediates
    that get re-cast anyway -> halves the HBM round trip between kernels)."""
    M, K = a.shape
    N = b.shape[1]
    Mp, bm = _tile(M, block_m, 8)
    Kp, bk = _tile(K, block_k, 128)
    Np, bn = _tile(N, block_n, 128)
    # v7x has 2 TensorCores: if the parallel (M, N) grid would be 1x1, split M
    # so both cores get a block (one extra tiny step on single-core v5e/v6e).
    if Mp // bm == 1 and Np // bn == 1 and bm % 16 == 0:
        bm //= 2
    a = a.astype(jnp.bfloat16)
    b = b.astype(jnp.bfloat16)
    if (Mp, Kp) != (M, K):
        a = jnp.pad(a, ((0, Mp - M), (0, Kp - K)))
    if (Kp, Np) != (K, N):
        b = jnp.pad(b, ((0, Kp - K), (0, Np - N)))
    bias2 = bias.astype(jnp.float32).reshape(1, N)
    if Np != N:
        bias2 = jnp.pad(bias2, ((0, 0), (0, Np - N)))
    nm, nn, nk = Mp // bm, Np // bn, Kp // bk
    # Derive the VMEM budget from the real tile footprint (v7x only has 64 MiB
    # per TensorCore); 2x for double buffering plus the f32 accumulator.
    out_item = 2 if out_dtype == jnp.bfloat16 else 4
    tile_bytes = (2 * (bm * bk + bk * bn) * 2 + 2 * bm * bn * out_item
                  + bm * bn * 4 + 4 * bn)
    vmem_limit = int(min(32 * 1024 * 1024, max(4 * 1024 * 1024, 2 * tile_bytes)))
    out = pl.pallas_call(
        functools.partial(_matmul_bias_kernel, activation=activation),
        out_shape=jax.ShapeDtypeStruct((Mp, Np), out_dtype),
        grid=(nm, nn, nk),
        in_specs=[
            pl.BlockSpec((bm, bk), lambda i, j, k: (i, k)),
            pl.BlockSpec((bk, bn), lambda i, j, k: (k, j)),
            pl.BlockSpec((1, bn), lambda i, j, k: (0, j)),
        ],
        out_specs=pl.BlockSpec((bm, bn), lambda i, j, k: (i, j)),
        scratch_shapes=[pltpu.VMEM((bm, bn), jnp.float32)],
        compiler_params=pltpu.CompilerParams(
            dimension_semantics=("parallel", "parallel", "arbitrary"),
            vmem_limit_bytes=vmem_limit),
    )(a, b, bias2)
    if (Mp, Np) != (M, N):
        out = out[:M, :N]
    return out


# ---------------------------------------------------------------------------
# conv1: 3x3 conv (K = 9*Cin) + folded BN + ReLU + fused 2x2 maxpool
# ---------------------------------------------------------------------------
def _conv_pool_kernel(a0_ref, a1_ref, a2_ref, a3_ref, w_ref, b_ref, o_ref):
    w = w_ref[...]
    acc = jnp.dot(a0_ref[...], w, preferred_element_type=jnp.float32)
    acc = jnp.maximum(acc, jnp.dot(a1_ref[...], w,
                                   preferred_element_type=jnp.float32))
    acc = jnp.maximum(acc, jnp.dot(a2_ref[...], w,
                                   preferred_element_type=jnp.float32))
    acc = jnp.maximum(acc, jnp.dot(a3_ref[...], w,
                                   preferred_element_type=jnp.float32))
    # Shared folded-BN bias + ReLU applied after the max (ReLU is monotonic
    # and the bias is identical across the 4 pool positions -> equivalent).
    o_ref[...] = jnp.maximum(acc + b_ref[...], 0.0).astype(o_ref.dtype)


def conv1_bn_relu_pool(taps, w, b, block_m=256):
    """taps: 4 x (N*Ho*Wo, 9*Cin) im2col row streams (one per 2x2 pool
    position).  No shifted slices / reshapes inside the kernel; output
    channels are NOT padded."""
    M, K = taps[0].shape
    Cout = w.shape[1]
    Mp, bm = _tile(M, block_m, 8)
    if Mp // bm == 1 and bm % 16 == 0:
        bm //= 2                              # keep both v7x cores busy
    taps = [t.astype(jnp.bfloat16) for t in taps]
    if Mp != M:
        taps = [jnp.pad(t, ((0, Mp - M), (0, 0))) for t in taps]
    out = pl.pallas_call(
        _conv_pool_kernel,
        out_shape=jax.ShapeDtypeStruct((Mp, Cout), jnp.bfloat16),
        grid=(Mp // bm,),
        in_specs=[pl.BlockSpec((bm, K), lambda i: (i, 0))] * 4 + [
            pl.BlockSpec((K, Cout), lambda i: (0, 0)),
            pl.BlockSpec((1, Cout), lambda i: (0, 0)),
        ],
        out_specs=pl.BlockSpec((bm, Cout), lambda i: (i, 0)),
        compiler_params=pltpu.CompilerParams(
            dimension_semantics=("parallel",)),
    )(*taps, w, b.reshape(1, Cout))
    return out[:M] if Mp != M else out


def _im2col_3x3(x):
    """(N, H, W, C) -> (N, H, W, 9*C): the 3x3 taps are folded into the
    contraction axis once in the wrapper (XLA), so the Pallas matmul sees a
    single K = 9*C dot."""
    n, h, w, c = x.shape
    xp = jnp.pad(x, ((0, 0), (1, 1), (1, 1), (0, 0)))
    taps = [xp[:, di:di + h, dj:dj + w, :] for di in range(3) for dj in range(3)]
    return jnp.concatenate(taps, axis=-1)


# ---------------------------------------------------------------------------
# Fused bidirectional GRU: one block-diagonal (2H, 6H) dot per serial step
# ---------------------------------------------------------------------------
def _bigru_kernel(gx_ref, whh_ref, bhh_ref, o_ref, h_ref, *, hidden, t_chunk):
    t_total = o_ref.shape[0]
    base = pl.program_id(0) * t_chunk

    @pl.when(pl.program_id(0) == 0)
    def _init():
        h_ref[...] = jnp.zeros_like(h_ref)

    whh = whh_ref[...]                     # (2H, 6H) bf16, hoisted out of loop
    bhh = bhh_ref[...]                     # (1, 6H)  f32
    h2 = 2 * hidden

    def step(l, carry):
        t = base + l
        h = h_ref[...]                                        # (Bp, 2H) f32
        gh = jnp.dot(h.astype(whh.dtype), whh,
                     preferred_element_type=jnp.float32) + bhh
        gx = gx_ref[l].astype(jnp.float32)                    # (Bp, 6H)
        # column layout per gate: [fwd | bwd]  ->  all slices 2H-aligned
        r = jax.nn.sigmoid(gx[:, :h2] + gh[:, :h2])
        z = jax.nn.sigmoid(gx[:, h2:2 * h2] + gh[:, h2:2 * h2])
        n = jnp.tanh(gx[:, 2 * h2:] + r * gh[:, 2 * h2:])
        h_new = (1.0 - z) * n + z * h
        h_ref[...] = h_new
        # fwd half -> output time t ; bwd half (consumed input T-1-t) ->
        # output time T-1-t : no HBM concat / reverse afterwards.
        o_ref[t, :, :hidden] = h_new[:, :hidden]
        o_ref[t_total - 1 - t, :, hidden:] = h_new[:, hidden:]
        return carry

    lax.fori_loop(0, t_chunk, step, 0, unroll=True)


def bigru(stream, w_hh, b_hh, hidden):
    """stream: (T, Bp, 6H) bf16 gate inputs, per-gate interleaved
    [r_f r_b z_f z_b n_f n_b] with the *_b columns already time-reversed.
    Returns (T, Bp, 2H) f32 with fwd in lanes [:H], bwd in lanes [H:] at the
    correct (un-reversed) output times."""
    T, Bp, H6 = stream.shape
    tc = next(d for d in (16, 8, 4, 2, 1) if T % d == 0)
    # TODO(synk): the whole (T, Bp, 2H) output stays VMEM-resident across the
    # grid; chunk the batch for very large B*T.
    return pl.pallas_call(
        functools.partial(_bigru_kernel, hidden=hidden, t_chunk=tc),
        out_shape=jax.ShapeDtypeStruct((T, Bp, 2 * hidden), jnp.float32),
        grid=(T // tc,),
        in_specs=[
            pl.BlockSpec((tc, Bp, H6), lambda i: (i, 0, 0)),
            pl.BlockSpec((2 * hidden, H6), lambda i: (0, 0)),
            pl.BlockSpec((1, H6), lambda i: (0, 0)),
        ],
        out_specs=pl.BlockSpec((T, Bp, 2 * hidden), lambda i: (0, 0, 0)),
        scratch_shapes=[pltpu.VMEM((Bp, 2 * hidden), jnp.float32)],
        compiler_params=pltpu.CompilerParams(
            dimension_semantics=("arbitrary",)),
    )(stream, w_hh.astype(jnp.bfloat16),
      b_hh.astype(jnp.float32).reshape(1, H6))


# ---------------------------------------------------------------------------
# Fused qkv projection + multi-head attention + out-proj + residual + LN
# ---------------------------------------------------------------------------
def _attn_block_kernel(x_ref, wqkv_ref, bqkv_ref, wo_ref, bo_ref,
                       lnw_ref, lnb_ref, o_ref, *, num_heads, scale):
    x = x_ref[0]                                   # (T, D) bf16 (also residual)
    T, D = x.shape
    hd = D // num_heads
    qkv = (jnp.dot(x, wqkv_ref[...], preferred_element_type=jnp.float32)
           + bqkv_ref[...]).astype(jnp.bfloat16)   # (T, 3D)
    acc = jnp.zeros((T, D), jnp.float32)
    for h in range(num_heads):                     # unrolled; no concat -- each
        q = qkv[:, h * hd:(h + 1) * hd]            # head feeds the out-proj
        k = qkv[:, D + h * hd:D + (h + 1) * hd]    # rows directly.
        v = qkv[:, 2 * D + h * hd:2 * D + (h + 1) * hd]
        s = lax.dot_general(q, k, (((1,), (1,)), ((), ())),
                            preferred_element_type=jnp.float32) * scale
        s = s - jnp.max(s, axis=-1, keepdims=True)
        att = jnp.exp(s)
        att = att * pl.reciprocal(jnp.sum(att, axis=-1, keepdims=True),
                                  approx=True)
        ctx = jnp.dot(att.astype(jnp.bfloat16), v,
                      preferred_element_type=jnp.float32)            # (T, hd)
        acc = acc + jnp.dot(ctx.astype(jnp.bfloat16),
                            wo_ref[h * hd:(h + 1) * hd, :],
                            preferred_element_type=jnp.float32)      # (T, D)
    y = acc + bo_ref[...] + x.astype(jnp.float32)                    # residual
    mu = jnp.mean(y, axis=-1, keepdims=True)
    var = jnp.mean(jnp.square(y - mu), axis=-1, keepdims=True)
    y = (y - mu) * lax.rsqrt(var + 1e-5)
    o_ref[0] = (y * lnw_ref[...] + lnb_ref[...]).astype(o_ref.dtype)


def attn_block(z, lp, num_heads):
    B, T, D = z.shape
    scale = 1.0 / math.sqrt(D // num_heads)
    return pl.pallas_call(
        functools.partial(_attn_block_kernel, num_heads=num_heads, scale=scale),
        out_shape=jax.ShapeDtypeStruct((B, T, D), jnp.bfloat16),
        grid=(B,),
        in_specs=[
            pl.BlockSpec((1, T, D), lambda b: (b, 0, 0)),
            pl.BlockSpec((D, 3 * D), lambda b: (0, 0)),
            pl.BlockSpec((1, 3 * D), lambda b: (0, 0)),
            pl.BlockSpec((D, D), lambda b: (0, 0)),
            pl.BlockSpec((1, D), lambda b: (0, 0)),
            pl.BlockSpec((1, D), lambda b: (0, 0)),
            pl.BlockSpec((1, D), lambda b: (0, 0)),
        ],
        out_specs=pl.BlockSpec((1, T, D), lambda b: (b, 0, 0)),
        compiler_params=pltpu.CompilerParams(
            dimension_semantics=("parallel",)),
    )(z, lp["w_qkv"], lp["b_qkv"], lp["w_o"], lp["b_o"],
      lp["ln1_w"], lp["ln1_b"])


# ---------------------------------------------------------------------------
# Fused FFN (ff1 + ReLU + ff2) + residual + LayerNorm
# ---------------------------------------------------------------------------
def _ffn_res_ln_kernel(x_ref, w1_ref, b1_ref, w2_ref, b2_ref,
                       lnw_ref, lnb_ref, o_ref):
    x = x_ref[...]                                            # (bm, D) bf16
    h = jnp.dot(x, w1_ref[...], preferred_element_type=jnp.float32) + b1_ref[...]
    h = jnp.maximum(h, 0.0).astype(jnp.bfloat16)
    y = (jnp.dot(h, w2_ref[...], preferred_element_type=jnp.float32)
         + b2_ref[...] + x.astype(jnp.float32))
    mu = jnp.mean(y, axis=-1, keepdims=True)
    var = jnp.mean(jnp.square(y - mu), axis=-1, keepdims=True)
    y = (y - mu) * lax.rsqrt(var + 1e-5)
    o_ref[...] = (y * lnw_ref[...] + lnb_ref[...]).astype(o_ref.dtype)


def ffn_res_ln(z, lp, block_m=256):
    B, T, D = z.shape
    F = lp["w_ff1"].shape[1]
    x2 = z.reshape(B * T, D)
    M = B * T
    Mp, bm = _tile(M, block_m, 8)
    if Mp // bm == 1 and bm % 16 == 0:
        bm //= 2
    if Mp != M:
        x2 = jnp.pad(x2, ((0, Mp - M), (0, 0)))
    out = pl.pallas_call(
        _ffn_res_ln_kernel,
        out_shape=jax.ShapeDtypeStruct((Mp, D), jnp.bfloat16),
        grid=(Mp // bm,),
        in_specs=[
            pl.BlockSpec((bm, D), lambda i: (i, 0)),
            pl.BlockSpec((D, F), lambda i: (0, 0)),
            pl.BlockSpec((1, F), lambda i: (0, 0)),
            pl.BlockSpec((F, D), lambda i: (0, 0)),
            pl.BlockSpec((1, D), lambda i: (0, 0)),
            pl.BlockSpec((1, D), lambda i: (0, 0)),
            pl.BlockSpec((1, D), lambda i: (0, 0)),
        ],
        out_specs=pl.BlockSpec((bm, D), lambda i: (i, 0)),
        compiler_params=pltpu.CompilerParams(
            dimension_semantics=("parallel",)),
    )(x2, lp["w_ff1"], lp["b_ff1"], lp["w_ff2"], lp["b_ff2"],
      lp["ln2_w"], lp["ln2_b"])
    out = out[:M] if Mp != M else out
    return out.reshape(B, T, D)


# ---------------------------------------------------------------------------
# Mean-over-time + final Linear (blocked over sublane-padded batch)
# ---------------------------------------------------------------------------
def _mean_fc_kernel(z_ref, w_ref, b_ref, o_ref):
    pooled = jnp.mean(z_ref[...].astype(jnp.float32), axis=1)     # (bb, D)
    o_ref[...] = (jnp.dot(pooled.astype(jnp.bfloat16), w_ref[...],
                          preferred_element_type=jnp.float32) + b_ref[...])


def mean_fc(z, w, b):
    B, T, D = z.shape
    N = w.shape[1]
    Bp = _round_up(B, 8)
    if Bp != B:
        z = jnp.pad(z, ((0, Bp - B), (0, 0), (0, 0)))
    bb = 8
    out = pl.pallas_call(
        _mean_fc_kernel,
        out_shape=jax.ShapeDtypeStruct((Bp, N), jnp.float32),
        grid=(Bp // bb,),
        in_specs=[
            pl.BlockSpec((bb, T, D), lambda i: (i, 0, 0)),
            pl.BlockSpec((D, N), lambda i: (0, 0)),
            pl.BlockSpec((1, N), lambda i: (0, 0)),
        ],
        out_specs=pl.BlockSpec((bb, N), lambda i: (i, 0)),
        compiler_params=pltpu.CompilerParams(
            dimension_semantics=("parallel",)),
    )(z, w.astype(jnp.bfloat16), b.astype(jnp.float32).reshape(1, N))
    return out[:B]


# ---------------------------------------------------------------------------
# Forward pass
# ---------------------------------------------------------------------------
def forward(x, p, *, num_heads):
    B, Cin, T, H, W = x.shape
    assert H % 2 == 0 and W % 2 == 0, "maxpool(2,2) requires even spatial dims"
    N = B * T
    Ho, Wo = H // 2, W // 2
    C = p["conv2_wf"].shape[1]
    Hd = p["gru_w_hh"].shape[0] // 2

    # ---- CNN (per frame, channels-last) -------------------------------------
    xf = x.reshape(N, Cin, H, W).transpose(0, 2, 3, 1).astype(jnp.bfloat16)
    xc = _im2col_3x3(xf)                                          # (N,H,W,9*Cin)
    taps = [xc[:, i::2, j::2, :].reshape(N * Ho * Wo, 9 * Cin)
            for i in (0, 1) for j in (0, 1)]                      # 4 pool streams
    y1 = conv1_bn_relu_pool(taps, p["conv1_wf"], p["conv1_bf"])   # (N*Ho*Wo, C)
    y1 = y1.reshape(N, Ho, Wo, C)                                 # bf16, no pad
    xcol2 = _im2col_3x3(y1).reshape(N * Ho * Wo, 9 * C)
    y2 = matmul_bias(xcol2, p["conv2_wf"], p["conv2_bf"],
                     activation="relu", out_dtype=jnp.bfloat16)   # (N*Ho*Wo, C)
    # dropout1: identity in eval mode.
    feat = y2.reshape(N, Ho * Wo * C)   # NHWC flatten; the GRU w_ih rows were
                                        # permuted once at param-prep time.

    # ---- bidirectional GRU (both directions fused in one kernel) ------------
    gx = matmul_bias(feat, p["gru_w_ih"], p["gru_b_ih"],
                     out_dtype=jnp.bfloat16)                      # (N, 6H)
    g = gx.reshape(B, T, 2, 3, Hd)                                # [dir][gate]
    stream = jnp.stack([g[:, :, 0], g[:, ::-1, 1]], axis=3)       # (B,T,3,2,H)
    stream = stream.reshape(B, T, 6 * Hd).transpose(1, 0, 2)      # (T,B,6H) bf16
    Bp = _round_up(B, 8)
    if Bp != B:
        stream = jnp.pad(stream, ((0, 0), (0, Bp - B), (0, 0)))
    h_all = bigru(stream, p["gru_w_hh"], p["gru_b_hh"], Hd)       # (T,Bp,2H) f32
    rnn_out = h_all[:, :B].transpose(1, 0, 2)                     # (B,T,2H)

    # dropout2: identity in eval mode; positional encoding.
    z = (rnn_out + p["pe"][None, :T]).astype(jnp.bfloat16)

    # ---- transformer encoder: 2 fused kernels per layer ---------------------
    for lp in p["layers"]:
        z = attn_block(z, lp, num_heads)
        z = ffn_res_ln(z, lp)

    # ---- mean pooling over time + fc_out ------------------------------------
    return mean_fc(z, p["fc_w"], p["fc_b"])


# ---------------------------------------------------------------------------
# Deterministic synthetic parameters + one-time weight packing
# ---------------------------------------------------------------------------
def init_params(key, *, cnn_filters, rnn_units, d_model, num_layers, ff_dim,
                feature_dim, hw_pooled, t_max):
    keys = iter(jax.random.split(key, 256))

    def nrm(shape, scale=0.05):
        return scale * jax.random.normal(next(keys), shape, dtype=jnp.float32)

    C, Hd, D = cnn_filters, rnn_units, d_model
    p = {
        "conv1_w": nrm((3, 3, 1, C)), "conv1_b": nrm((C,)),
        "bn1_gamma": 1.0 + nrm((C,)), "bn1_beta": nrm((C,)),
        "bn1_mean": nrm((C,)), "bn1_var": 1.0 + jnp.abs(nrm((C,))),
        "conv2_w": nrm((3, 3, C, C)), "conv2_b": nrm((C,)),
        "bn2_gamma": 1.0 + nrm((C,)), "bn2_beta": nrm((C,)),
        "bn2_mean": nrm((C,)), "bn2_var": 1.0 + jnp.abs(nrm((C,))),
        "fc_w": nrm((D, feature_dim)), "fc_b": nrm((feature_dim,)),
    }
    rnn_in = C * hw_pooled
    for d in ("fwd", "bwd"):            # PyTorch gate order [r, z, n]
        p[f"gru_{d}_w_ih"] = nrm((rnn_in, 3 * Hd))   # rows in (c, ho, wo) order
        p[f"gru_{d}_b_ih"] = nrm((3 * Hd,))
        p[f"gru_{d}_w_hh"] = nrm((Hd, 3 * Hd))
        p[f"gru_{d}_b_hh"] = nrm((3 * Hd,))
    pos = jnp.arange(t_max, dtype=jnp.float32)[:, None]
    div = jnp.exp(jnp.arange(0, D, 2, dtype=jnp.float32)
                  * (-(math.log(10000.0) / D)))
    pe = jnp.zeros((t_max, D), jnp.float32)
    pe = pe.at[:, 0::2].set(jnp.sin(pos * div))
    pe = pe.at[:, 1::2].set(jnp.cos(pos * div))
    p["pe"] = pe
    p["layers"] = [{
        "w_qkv": nrm((D, 3 * D)), "b_qkv": nrm((3 * D,)),
        "w_o": nrm((D, D)), "b_o": nrm((D,)),
        "ln1_w": 1.0 + nrm((D,)), "ln1_b": nrm((D,)),
        "w_ff1": nrm((D, ff_dim)), "b_ff1": nrm((ff_dim,)),
        "w_ff2": nrm((ff_dim, D)), "b_ff2": nrm((D,)),
        "ln2_w": 1.0 + nrm((D,)), "ln2_b": nrm((D,)),
    } for _ in range(num_layers)]
    return p


def prepare_params(p, *, ho, wo, eps=1e-5):
    """One-time packing (outside the jitted forward):
      * eval-mode BatchNorm folded into the conv matmul weights,
      * GRU w_ih rows permuted from (C,Ho,Wo) to our NHWC (Ho,Wo,C) flatten
        order and fwd/bwd concatenated into one matmul,
      * GRU recurrent weights packed block-diagonally with per-gate [fwd|bwd]
        column interleave -> one (2H,6H) dot per timestep,
      * matmul operands pre-cast to bf16, biases to (1, n) f32."""
    C = p["conv1_w"].shape[-1]
    Hd = p["gru_fwd_w_hh"].shape[0]
    q = {}

    def fold(w, b, g, beta, mean, var):
        s = g * lax.rsqrt(var + eps)
        wf = (w * s).reshape(-1, w.shape[-1]).astype(jnp.bfloat16)   # (9*Cin, C)
        bf = (beta + (b - mean) * s).astype(jnp.float32)
        return wf, bf

    q["conv1_wf"], q["conv1_bf"] = fold(p["conv1_w"], p["conv1_b"],
                                        p["bn1_gamma"], p["bn1_beta"],
                                        p["bn1_mean"], p["bn1_var"])
    q["conv2_wf"], q["conv2_bf"] = fold(p["conv2_w"], p["conv2_b"],
                                        p["bn2_gamma"], p["bn2_beta"],
                                        p["bn2_mean"], p["bn2_var"])
    perm = jnp.arange(C * ho * wo).reshape(C, ho, wo).transpose(1, 2, 0).reshape(-1)
    wih = jnp.concatenate([p["gru_fwd_w_ih"][perm], p["gru_bwd_w_ih"][perm]],
                          axis=1)
    q["gru_w_ih"] = wih.astype(jnp.bfloat16)                         # (Din, 6H)
    q["gru_b_ih"] = jnp.concatenate([p["gru_fwd_b_ih"], p["gru_bwd_b_ih"]])
    whh = jnp.zeros((2 * Hd, 6 * Hd), jnp.float32)
    for gi in range(3):
        whh = whh.at[:Hd, 2 * gi * Hd:(2 * gi + 1) * Hd].set(
            p["gru_fwd_w_hh"][:, gi * Hd:(gi + 1) * Hd])
        whh = whh.at[Hd:, (2 * gi + 1) * Hd:(2 * gi + 2) * Hd].set(
            p["gru_bwd_w_hh"][:, gi * Hd:(gi + 1) * Hd])
    q["gru_w_hh"] = whh.astype(jnp.bfloat16)
    q["gru_b_hh"] = jnp.stack([p["gru_fwd_b_hh"].reshape(3, Hd),
                               p["gru_bwd_b_hh"].reshape(3, Hd)],
                              axis=1).reshape(6 * Hd)
    q["pe"] = p["pe"]
    q["fc_w"] = p["fc_w"].astype(jnp.bfloat16)
    q["fc_b"] = p["fc_b"]
    q["layers"] = []
    for lp in p["layers"]:
        D = lp["w_o"].shape[0]
        F = lp["w_ff1"].shape[1]
        q["layers"].append({
            "w_qkv": lp["w_qkv"].astype(jnp.bfloat16),
            "b_qkv": lp["b_qkv"].reshape(1, 3 * D).astype(jnp.float32),
            "w_o": lp["w_o"].astype(jnp.bfloat16),
            "b_o": lp["b_o"].reshape(1, D).astype(jnp.float32),
            "ln1_w": lp["ln1_w"].reshape(1, D),
            "ln1_b": lp["ln1_b"].reshape(1, D),
            "w_ff1": lp["w_ff1"].astype(jnp.bfloat16),
            "b_ff1": lp["b_ff1"].reshape(1, F).astype(jnp.float32),
            "w_ff2": lp["w_ff2"].astype(jnp.bfloat16),
            "b_ff2": lp["b_ff2"].reshape(1, D).astype(jnp.float32),
            "ln2_w": lp["ln2_w"].reshape(1, D),
            "ln2_b": lp["ln2_b"].reshape(1, D),
        })
    return q


if __name__ == "__main__":
    # Small shapes consistent with the module's forward:
    #   x: (B, C=1, T, H, W); rnn_input_dim = cnn_filters * (H//2) * (W//2)
    B, Cin, T, H, W = 2, 1, 8, 8, 8
    cnn_filters = 8
    rnn_units = 64
    d_model = 2 * rnn_units          # = transformer_dim * 2
    num_heads = 4
    num_layers = 2
    ff_dim = 256                     # scaled-down stand-in for the 2048 default
    feature_dim = 128
    Ho, Wo = H // 2, W // 2

    key = jax.random.PRNGKey(0)
    k_x, k_p = jax.random.split(key)
    x = jax.random.normal(k_x, (B, Cin, T, H, W), dtype=jnp.float32)
    raw = init_params(k_p, cnn_filters=cnn_filters, rnn_units=rnn_units,
                      d_model=d_model, num_layers=num_layers, ff_dim=ff_dim,
                      feature_dim=feature_dim, hw_pooled=Ho * Wo, t_max=T)
    params = prepare_params(raw, ho=Ho, wo=Wo)

    fwd = jax.jit(functools.partial(forward, num_heads=num_heads))
    out = jax.block_until_ready(fwd(x, params))

    assert out.shape == (B, feature_dim), out.shape
    assert bool(jnp.all(jnp.isfinite(out)))
    print("KERNEL_OK")
</pallas_src>

<mosaic_0001>
module attributes {stable_mosaic.version = 11 : i64} {
  func.func @_conv_pool_kernel(%arg0: i32, %arg1: memref<128x9xbf16, #tpu.memory_space<vmem>>, %arg2: memref<128x9xbf16, #tpu.memory_space<vmem>>, %arg3: memref<128x9xbf16, #tpu.memory_space<vmem>>, %arg4: memref<128x9xbf16, #tpu.memory_space<vmem>>, %arg5: memref<9x8xbf16, #tpu.memory_space<vmem>>, %arg6: memref<1x8xf32, #tpu.memory_space<vmem>>, %arg7: memref<128x8xbf16, #tpu.memory_space<vmem>>) attributes {dimension_semantics = [#tpu.dimension_semantics<parallel>], iteration_bounds = array<i64: 2>, scalar_prefetch = 0 : i64, scratch_operands = 0 : i64, tpu.core_type = #tpu.core_type<tc>, window_params = [{transform_indices = @transform_0, window_bounds = array<i64: 128, 9>}, {transform_indices = @transform_1, window_bounds = array<i64: 128, 9>}, {transform_indices = @transform_2, window_bounds = array<i64: 128, 9>}, {transform_indices = @transform_3, window_bounds = array<i64: 128, 9>}, {pipeline_mode = #tpu.pipeline_mode<synchronous>, transform_indices = @transform_4, window_bounds = array<i64: 9, 8>}, {pipeline_mode = #tpu.pipeline_mode<synchronous>, transform_indices = @transform_5, window_bounds = array<i64: 1, 8>}, {transform_indices = @transform_6, window_bounds = array<i64: 128, 8>}]} {
    %c0 = arith.constant 0 : index
    %c0_0 = arith.constant 0 : index
    %0 = vector.load %arg5[%c0, %c0_0] : memref<9x8xbf16, #tpu.memory_space<vmem>>, vector<9x8xbf16>
    %c0_1 = arith.constant 0 : index
    %c0_2 = arith.constant 0 : index
    %1 = vector.load %arg1[%c0_1, %c0_2] : memref<128x9xbf16, #tpu.memory_space<vmem>>, vector<128x9xbf16>
    %cst = arith.constant dense<0.000000e+00> : vector<128x8xf32>
    %2 = tpu.matmul %1, %0, %cst {dimension_numbers = #tpu.dot_dimension_numbers<[1], [0], [0], [1], [0, 0, 1, 1], [], []>} : vector<128x9xbf16>, vector<9x8xbf16>, vector<128x8xf32> -> vector<128x8xf32>
    %c0_3 = arith.constant 0 : index
    %c0_4 = arith.constant 0 : index
    %3 = vector.load %arg2[%c0_3, %c0_4] : memref<128x9xbf16, #tpu.memory_space<vmem>>, vector<128x9xbf16>
    %cst_5 = arith.constant dense<0.000000e+00> : vector<128x8xf32>
    %4 = tpu.matmul %3, %0, %cst_5 {dimension_numbers = #tpu.dot_dimension_numbers<[1], [0], [0], [1], [0, 0, 1, 1], [], []>} : vector<128x9xbf16>, vector<9x8xbf16>, vector<128x8xf32> -> vector<128x8xf32>
    %5 = arith.maximumf %2, %4 : vector<128x8xf32>
    %c0_6 = arith.constant 0 : index
    %c0_7 = arith.constant 0 : index
    %6 = vector.load %arg3[%c0_6, %c0_7] : memref<128x9xbf16, #tpu.memory_space<vmem>>, vector<128x9xbf16>
    %cst_8 = arith.constant dense<0.000000e+00> : vector<128x8xf32>
    %7 = tpu.matmul %6, %0, %cst_8 {dimension_numbers = #tpu.dot_dimension_numbers<[1], [0], [0], [1], [0, 0, 1, 1], [], []>} : vector<128x9xbf16>, vector<9x8xbf16>, vector<128x8xf32> -> vector<128x8xf32>
    %8 = arith.maximumf %5, %7 : vector<128x8xf32>
    %c0_9 = arith.constant 0 : index
    %c0_10 = arith.constant 0 : index
    %9 = vector.load %arg4[%c0_9, %c0_10] : memref<128x9xbf16, #tpu.memory_space<vmem>>, vector<128x9xbf16>
    %cst_11 = arith.constant dense<0.000000e+00> : vector<128x8xf32>
    %10 = tpu.matmul %9, %0, %cst_11 {dimension_numbers = #tpu.dot_dimension_numbers<[1], [0], [0], [1], [0, 0, 1, 1], [], []>} : vector<128x9xbf16>, vector<9x8xbf16>, vector<128x8xf32> -> vector<128x8xf32>
    %11 = arith.maximumf %8, %10 : vector<128x8xf32>
    %c0_12 = arith.constant 0 : index
    %c0_13 = arith.constant 0 : index
    %12 = vector.load %arg6[%c0_12, %c0_13] : memref<1x8xf32, #tpu.memory_space<vmem>>, vector<1x8xf32>
    %13 = vector.broadcast %12 : vector<1x8xf32> to vector<128x8xf32>
    %14 = arith.addf %11, %13 : vector<128x8xf32>
    %cst_14 = arith.constant 0.000000e+00 : f32
    %15 = vector.broadcast %cst_14 : f32 to vector<128x8xf32>
    %16 = arith.maximumf %14, %15 : vector<128x8xf32>
    %17 = arith.truncf %16 : vector<128x8xf32> to vector<128x8xbf16>
    %c0_15 = arith.constant 0 : index
    %c0_16 = arith.constant 0 : index
    %18 = vector.load %arg7[%c0_15, %c0_16] : memref<128x8xbf16, #tpu.memory_space<vmem>>, vector<128x8xbf16>
    tpu.vector_store %arg7[%c0_15, %c0_16], %17 {strides = array<i32>} : memref<128x8xbf16, #tpu.memory_space<vmem>>, vector<128x8xbf16>,
    return
  }
  func.func @transform_0(%arg0: i32) -> (i32, i32) {
    %c0_i32 = arith.constant 0 : i32
    %c0_i32_0 = arith.constant 0 : i32
    return %arg0, %c0_i32 : i32, i32
  }
  func.func @transform_1(%arg0: i32) -> (i32, i32) {
    %c0_i32 = arith.constant 0 : i32
    %c0_i32_0 = arith.constant 0 : i32
    return %arg0, %c0_i32 : i32, i32
  }
  func.func @transform_2(%arg0: i32) -> (i32, i32) {
    %c0_i32 = arith.constant 0 : i32
    %c0_i32_0 = arith.constant 0 : i32
    return %arg0, %c0_i32 : i32, i32
  }
  func.func @transform_3(%arg0: i32) -> (i32, i32) {
    %c0_i32 = arith.constant 0 : i32
    %c0_i32_0 = arith.constant 0 : i32
    return %arg0, %c0_i32 : i32, i32
  }
  func.func @transform_4(%arg0: i32) -> (i32, i32) {
    %c0_i32 = arith.constant 0 : i32
    %c0_i32_0 = arith.constant 0 : i32
    %c0_i32_1 = arith.constant 0 : i32
    return %c0_i32, %c0_i32_0 : i32, i32
  }
  func.func @transform_5(%arg0: i32) -> (i32, i32) {
    %c0_i32 = arith.constant 0 : i32
    %c0_i32_0 = arith.constant 0 : i32
    %c0_i32_1 = arith.constant 0 : i32
    return %c0_i32, %c0_i32_0 : i32, i32
  }
  func.func @transform_6(%arg0: i32) -> (i32, i32) {
    %c0_i32 = arith.constant 0 : i32
    %c0_i32_0 = arith.constant 0 : i32
    return %arg0, %c0_i32 : i32, i32
  }
}

module attributes {stable_mosaic.version = 11 : i64} {
  func.func @_matmul_bias_kernel(%arg0: i32, %arg1: i32, %arg2: i32, %arg3: memref<128x72xbf16, #tpu.memory_space<vmem>>, %arg4: memref<72x8xbf16, #tpu.memory_space<vmem>>, %arg5: memref<1x8xf32, #tpu.memory_space<vmem>>, %arg6: memref<128x8xbf16, #tpu.memory_space<vmem>>, %arg7: memref<128x8xf32, #tpu.memory_space<vmem>>) attributes {dimension_semantics = [#tpu.dimension_semantics<parallel>, #tpu.dimension_semantics<parallel>, #tpu.dimension_semantics<arbitrary>], iteration_bounds = array<i64: 2, 1, 1>, scalar_prefetch = 0 : i64, scratch_operands = 1 : i64, tpu.core_type = #tpu.core_type<tc>, window_params = [{transform_indices = @transform_0, window_bounds = array<i64: 128, 72>}, {transform_indices = @transform_1, window_bounds = array<i64: 72, 8>}, {transform_indices = @transform_2, window_bounds = array<i64: 1, 8>}, {transform_indices = @transform_3, window_bounds = array<i64: 128, 8>}]} {
    %c0_i32 = arith.constant 0 : i32
    %0 = arith.cmpi eq, %arg2, %c0_i32 : i32
    %1 = arith.extui %0 : i1 to i32
    %c0_i32_0 = arith.constant 0 : i32
    %2 = arith.cmpi ne, %1, %c0_i32_0 : i32
    scf.if %2 {
      %cst_10 = arith.constant 0.000000e+00 : f32
      %12 = vector.broadcast %cst_10 : f32 to vector<128x8xf32>
      %c0_11 = arith.constant 0 : index
      %c0_12 = arith.constant 0 : index
      %13 = vector.load %arg7[%c0_11, %c0_12] : memref<128x8xf32, #tpu.memory_space<vmem>>, vector<128x8xf32>
      tpu.vector_store %arg7[%c0_11, %c0_12], %12 {strides = array<i32>} : memref<128x8xf32, #tpu.memory_space<vmem>>, vector<128x8xf32>,
    } else {
    }
    %c0 = arith.constant 0 : index
    %c0_1 = arith.constant 0 : index
    %3 = vector.load %arg7[%c0, %c0_1] : memref<128x8xf32, #tpu.memory_space<vmem>>, vector<128x8xf32>
    %c0_2 = arith.constant 0 : index
    %c0_3 = arith.constant 0 : index
    %4 = vector.load %arg3[%c0_2, %c0_3] : memref<128x72xbf16, #tpu.memory_space<vmem>>, vector<128x72xbf16>
    %c0_4 = arith.constant 0 : index
    %c0_5 = arith.constant 0 : index
    %5 = vector.load %arg4[%c0_4, %c0_5] : memref<72x8xbf16, #tpu.memory_space<vmem>>, vector<72x8xbf16>
    %cst = arith.constant dense<0.000000e+00> : vector<128x8xf32>
    %6 = tpu.matmul %4, %5, %cst {dimension_numbers = #tpu.dot_dimension_numbers<[1], [0], [0], [1], [0, 0, 1, 1], [], []>} : vector<128x72xbf16>, vector<72x8xbf16>, vector<128x8xf32> -> vector<128x8xf32>
    %7 = arith.addf %3, %6 : vector<128x8xf32>
    %c0_6 = arith.constant 0 : index
    %c0_7 = arith.constant 0 : index
    %8 = vector.load %arg7[%c0_6, %c0_7] : memref<128x8xf32, #tpu.memory_space<vmem>>, vector<128x8xf32>
    tpu.vector_store %arg7[%c0_6, %c0_7], %7 {strides = array<i32>} : memref<128x8xf32, #tpu.memory_space<vmem>>, vector<128x8xf32>,
    %c0_i32_8 = arith.constant 0 : i32
    %9 = arith.cmpi eq, %arg2, %c0_i32_8 : i32
    %10 = arith.extui %9 : i1 to i32
    %c0_i32_9 = arith.constant 0 : i32
    %11 = arith.cmpi ne, %10, %c0_i32_9 : i32
    scf.if %11 {
      %c0_10 = arith.constant 0 : index
      %c0_11 = arith.constant 0 : index
      %12 = vector.load %arg7[%c0_10, %c0_11] : memref<128x8xf32, #tpu.memory_space<vmem>>, vector<128x8xf32>
      %c0_12 = arith.constant 0 : index
      %c0_13 = arith.constant 0 : index
      %13 = vector.load %arg5[%c0_12, %c0_13] : memref<1x8xf32, #tpu.memory_space<vmem>>, vector<1x8xf32>
      %14 = vector.broadcast %13 : vector<1x8xf32> to vector<128x8xf32>
      %15 = arith.addf %12, %14 : vector<128x8xf32>
      %cst_14 = arith.constant 0.000000e+00 : f32
      %16 = vector.broadcast %cst_14 : f32 to vector<128x8xf32>
      %17 = arith.maximumf %15, %16 : vector<128x8xf32>
      %18 = arith.truncf %17 : vector<128x8xf32> to vector<128x8xbf16>
      %c0_15 = arith.constant 0 : index
      %c0_16 = arith.constant 0 : index
      %19 = vector.load %arg6[%c0_15, %c0_16] : memref<128x8xbf16, #tpu.memory_space<vmem>>, vector<128x8xbf16>
      tpu.vector_store %arg6[%c0_15, %c0_16], %18 {strides = array<i32>} : memref<128x8xbf16, #tpu.memory_space<vmem>>, vector<128x8xbf16>,
    } else {
    }
    return
  }
  func.func @transform_0(%arg0: i32, %arg1: i32, %arg2: i32) -> (i32, i32) {
    %c0_i32 = arith.constant 0 : i32
    return %arg0, %arg2 : i32, i32
  }
  func.func @transform_1(%arg0: i32, %arg1: i32, %arg2: i32) -> (i32, i32) {
    %c0_i32 = arith.constant 0 : i32
    return %arg2, %arg1 : i32, i32
  }
  func.func @transform_2(%arg0: i32, %arg1: i32, %arg2: i32) -> (i32, i32) {
    %c0_i32 = arith.constant 0 : i32
    %c0_i32_0 = arith.constant 0 : i32
    return %c0_i32, %arg1 : i32, i32
  }
  func.func @transform_3(%arg0: i32, %arg1: i32, %arg2: i32) -> (i32, i32) {
    %c0_i32 = arith.constant 0 : i32
    return %arg0, %arg1 : i32, i32
  }
}

module attributes {stable_mosaic.version = 11 : i64} {
  func.func @_matmul_bias_kernel(%arg0: i32, %arg1: i32, %arg2: i32, %arg3: memref<8x128xbf16, #tpu.memory_space<vmem>>, %arg4: memref<128x384xbf16, #tpu.memory_space<vmem>>, %arg5: memref<1x384xf32, #tpu.memory_space<vmem>>, %arg6: memref<8x384xbf16, #tpu.memory_space<vmem>>, %arg7: memref<8x384xf32, #tpu.memory_space<vmem>>) attributes {dimension_semantics = [#tpu.dimension_semantics<parallel>, #tpu.dimension_semantics<parallel>, #tpu.dimension_semantics<arbitrary>], iteration_bounds = array<i64: 2, 1, 1>, scalar_prefetch = 0 : i64, scratch_operands = 1 : i64, tpu.core_type = #tpu.core_type<tc>, window_params = [{transform_indices = @transform_0, window_bounds = array<i64: 8, 128>}, {transform_indices = @transform_1, window_bounds = array<i64: 128, 384>}, {transform_indices = @transform_2, window_bounds = array<i64: 1, 384>}, {transform_indices = @transform_3, window_bounds = array<i64: 8, 384>}]} {
    %c0_i32 = arith.constant 0 : i32
    %0 = arith.cmpi eq, %arg2, %c0_i32 : i32
    %1 = arith.extui %0 : i1 to i32
    %c0_i32_0 = arith.constant 0 : i32
    %2 = arith.cmpi ne, %1, %c0_i32_0 : i32
    scf.if %2 {
      %cst_10 = arith.constant 0.000000e+00 : f32
      %12 = vector.broadcast %cst_10 : f32 to vector<8x384xf32>
      %c0_11 = arith.constant 0 : index
      %c0_12 = arith.constant 0 : index
      %13 = vector.load %arg7[%c0_11, %c0_12] : memref<8x384xf32, #tpu.memory_space<vmem>>, vector<8x384xf32>
      tpu.vector_store %arg7[%c0_11, %c0_12], %12 {strides = array<i32>} : memref<8x384xf32, #tpu.memory_space<vmem>>, vector<8x384xf32>,
    } else {
    }
    %c0 = arith.constant 0 : index
    %c0_1 = arith.constant 0 : index
    %3 = vector.load %arg7[%c0, %c0_1] : memref<8x384xf32, #tpu.memory_space<vmem>>, vector<8x384xf32>
    %c0_2 = arith.constant 0 : index
    %c0_3 = arith.constant 0 : index
    %4 = vector.load %arg3[%c0_2, %c0_3] : memref<8x128xbf16, #tpu.memory_space<vmem>>, vector<8x128xbf16>
    %c0_4 = arith.constant 0 : index
    %c0_5 = arith.constant 0 : index
    %5 = vector.load %arg4[%c0_4, %c0_5] : memref<128x384xbf16, #tpu.memory_space<vmem>>, vector<128x384xbf16>
    %cst = arith.constant dense<0.000000e+00> : vector<8x384xf32>
    %6 = tpu.matmul %4, %5, %cst {dimension_numbers = #tpu.dot_dimension_numbers<[1], [0], [0], [1], [0, 0, 1, 1], [], []>} : vector<8x128xbf16>, vector<128x384xbf16>, vector<8x384xf32> -> vector<8x384xf32>
    %7 = arith.addf %3, %6 : vector<8x384xf32>
    %c0_6 = arith.constant 0 : index
    %c0_7 = arith.constant 0 : index
    %8 = vector.load %arg7[%c0_6, %c0_7] : memref<8x384xf32, #tpu.memory_space<vmem>>, vector<8x384xf32>
    tpu.vector_store %arg7[%c0_6, %c0_7], %7 {strides = array<i32>} : memref<8x384xf32, #tpu.memory_space<vmem>>, vector<8x384xf32>,
    %c0_i32_8 = arith.constant 0 : i32
    %9 = arith.cmpi eq, %arg2, %c0_i32_8 : i32
    %10 = arith.extui %9 : i1 to i32
    %c0_i32_9 = arith.constant 0 : i32
    %11 = arith.cmpi ne, %10, %c0_i32_9 : i32
    scf.if %11 {
      %c0_10 = arith.constant 0 : index
      %c0_11 = arith.constant 0 : index
      %12 = vector.load %arg7[%c0_10, %c0_11] : memref<8x384xf32, #tpu.memory_space<vmem>>, vector<8x384xf32>
      %c0_12 = arith.constant 0 : index
      %c0_13 = arith.constant 0 : index
      %13 = vector.load %arg5[%c0_12, %c0_13] : memref<1x384xf32, #tpu.memory_space<vmem>>, vector<1x384xf32>
      %14 = vector.broadcast %13 : vector<1x384xf32> to vector<8x384xf32>
      %15 = arith.addf %12, %14 : vector<8x384xf32>
      %16 = arith.truncf %15 : vector<8x384xf32> to vector<8x384xbf16>
      %c0_14 = arith.constant 0 : index
      %c0_15 = arith.constant 0 : index
      %17 = vector.load %arg6[%c0_14, %c0_15] : memref<8x384xbf16, #tpu.memory_space<vmem>>, vector<8x384xbf16>
      tpu.vector_store %arg6[%c0_14, %c0_15], %16 {strides = array<i32>} : memref<8x384xbf16, #tpu.memory_space<vmem>>, vector<8x384xbf16>,
    } else {
    }
    return
  }
  func.func @transform_0(%arg0: i32, %arg1: i32, %arg2: i32) -> (i32, i32) {
    %c0_i32 = arith.constant 0 : i32
    return %arg0, %arg2 : i32, i32
  }
  func.func @transform_1(%arg0: i32, %arg1: i32, %arg2: i32) -> (i32, i32) {
    %c0_i32 = arith.constant 0 : i32
    return %arg2, %arg1 : i32, i32
  }
  func.func @transform_2(%arg0: i32, %arg1: i32, %arg2: i32) -> (i32, i32) {
    %c0_i32 = arith.constant 0 : i32
    %c0_i32_0 = arith.constant 0 : i32
    return %c0_i32, %arg1 : i32, i32
  }
  func.func @transform_3(%arg0: i32, %arg1: i32, %arg2: i32) -> (i32, i32) {
    %c0_i32 = arith.constant 0 : i32
    return %arg0, %arg1 : i32, i32
  }
}

module attributes {stable_mosaic.version = 11 : i64} {
  func.func @_attn_block_kernel(%arg0: i32, %arg1: memref<1x8x128xbf16, #tpu.memory_space<vmem>>, %arg2: memref<128x384xbf16, #tpu.memory_space<vmem>>, %arg3: memref<1x384xf32, #tpu.memory_space<vmem>>, %arg4: memref<128x128xbf16, #tpu.memory_space<vmem>>, %arg5: memref<1x128xf32, #tpu.memory_space<vmem>>, %arg6: memref<1x128xf32, #tpu.memory_space<vmem>>, %arg7: memref<1x128xf32, #tpu.memory_space<vmem>>, %arg8: memref<1x8x128xbf16, #tpu.memory_space<vmem>>) attributes {dimension_semantics = [#tpu.dimension_semantics<parallel>], iteration_bounds = array<i64: 2>, scalar_prefetch = 0 : i64, scratch_operands = 0 : i64, tpu.core_type = #tpu.core_type<tc>, window_params = [{transform_indices = @transform_0, window_bounds = array<i64: 1, 8, 128>}, {pipeline_mode = #tpu.pipeline_mode<synchronous>, transform_indices = @transform_1, window_bounds = array<i64: 128, 384>}, {pipeline_mode = #tpu.pipeline_mode<synchronous>, transform_indices = @transform_2, window_bounds = array<i64: 1, 384>}, {pipeline_mode = #tpu.pipeline_mode<synchronous>, transform_indices = @transform_3, window_bounds = array<i64: 128, 128>}, {pipeline_mode = #tpu.pipeline_mode<synchronous>, transform_indices = @transform_4, window_bounds = array<i64: 1, 128>}, {pipeline_mode = #tpu.pipeline_mode<synchronous>, transform_indices = @transform_5, window_bounds = array<i64: 1, 128>}, {pipeline_mode = #tpu.pipeline_mode<synchronous>, transform_indices = @transform_6, window_bounds = array<i64: 1, 128>}, {transform_indices = @transform_7, window_bounds = array<i64: 1, 8, 128>}]} {
    %c0 = arith.constant 0 : index
    %c0_0 = arith.constant 0 : index
    %c0_1 = arith.constant 0 : index
    %0 = vector.load %arg1[%c0, %c0_0, %c0_1] : memref<1x8x128xbf16, #tpu.memory_space<vmem>>, vector<1x8x128xbf16>
    %1 = vector.shape_cast %0 : vector<1x8x128xbf16> to vector<8x128xbf16>
    %c0_2 = arith.constant 0 : index
    %c0_3 = arith.constant 0 : index
    %2 = vector.load %arg2[%c0_2, %c0_3] : memref<128x384xbf16, #tpu.memory_space<vmem>>, vector<128x384xbf16>
    %cst = arith.constant dense<0.000000e+00> : vector<8x384xf32>
    %3 = tpu.matmul %1, %2, %cst {dimension_numbers = #tpu.dot_dimension_numbers<[1], [0], [0], [1], [0, 0, 1, 1], [], []>} : vector<8x128xbf16>, vector<128x384xbf16>, vector<8x384xf32> -> vector<8x384xf32>
    %c0_4 = arith.constant 0 : index
    %c0_5 = arith.constant 0 : index
    %4 = vector.load %arg3[%c0_4, %c0_5] : memref<1x384xf32, #tpu.memory_space<vmem>>, vector<1x384xf32>
    %5 = vector.broadcast %4 : vector<1x384xf32> to vector<8x384xf32>
    %6 = arith.addf %3, %5 : vector<8x384xf32>
    %7 = arith.truncf %6 : vector<8x384xf32> to vector<8x384xbf16>
    %cst_6 = arith.constant 0.000000e+00 : f32
    %8 = vector.broadcast %cst_6 : f32 to vector<8x128xf32>
    %9 = vector.extract_strided_slice %7 {offsets = [0, 0], sizes = [8, 32], strides = [1, 1]} : vector<8x384xbf16> to vector<8x32xbf16>
    %10 = vector.extract_strided_slice %7 {offsets = [0, 128], sizes = [8, 32], strides = [1, 1]} : vector<8x384xbf16> to vector<8x32xbf16>
    %11 = vector.extract_strided_slice %7 {offsets = [0, 256], sizes = [8, 32], strides = [1, 1]} : vector<8x384xbf16> to vector<8x32xbf16>
    %cst_7 = arith.constant dense<0.000000e+00> : vector<8x8xf32>
    %12 = tpu.matmul %9, %10, %cst_7 {dimension_numbers = #tpu.dot_dimension_numbers<[1], [1], [0], [0], [0, 0, 1, 0], [], []>} : vector<8x32xbf16>, vector<8x32xbf16>, vector<8x8xf32> -> vector<8x8xf32>
    %cst_8 = arith.constant 0.176776692 : f32
    %13 = vector.broadcast %cst_8 : f32 to vector<8x8xf32>
    %14 = arith.mulf %12, %13 : vector<8x8xf32>
    %cst_9 = arith.constant dense<0xFF800000> : vector<8xf32>
    %15 = vector.multi_reduction <maximumf>, %14, %cst_9 [1] : vector<8x8xf32> to vector<8xf32>
    %16 = vector.shape_cast %15 : vector<8xf32> to vector<8x1xf32>
    %17 = vector.broadcast %16 : vector<8x1xf32> to vector<8x8xf32>
    %18 = arith.subf %14, %17 : vector<8x8xf32>
    %19 = math.exp %18 : vector<8x8xf32>
    %cst_10 = arith.constant dense<0.000000e+00> : vector<8xf32>
    %20 = vector.multi_reduction <add>, %19, %cst_10 [1] : vector<8x8xf32> to vector<8xf32>
    %21 = vector.shape_cast %20 : vector<8xf32> to vector<8x1xf32>
    %22 = tpu.reciprocal %21 {approx = true} : vector<8x1xf32> -> vector<8x1xf32>
    %23 = vector.broadcast %22 : vector<8x1xf32> to vector<8x8xf32>
    %24 = arith.mulf %19, %23 : vector<8x8xf32>
    %25 = arith.truncf %24 : vector<8x8xf32> to vector<8x8xbf16>
    %cst_11 = arith.constant dense<0.000000e+00> : vector<8x32xf32>
    %26 = tpu.matmul %25, %11, %cst_11 {dimension_numbers = #tpu.dot_dimension_numbers<[1], [0], [0], [1], [0, 0, 1, 1], [], []>} : vector<8x8xbf16>, vector<8x32xbf16>, vector<8x32xf32> -> vector<8x32xf32>
    %27 = arith.truncf %26 : vector<8x32xf32> to vector<8x32xbf16>
    %c0_12 = arith.constant 0 : index
    %c0_13 = arith.constant 0 : index
    %28 = vector.load %arg4[%c0_12, %c0_13] : memref<128x128xbf16, #tpu.memory_space<vmem>>, vector<32x128xbf16>
    %cst_14 = arith.constant dense<0.000000e+00> : vector<8x128xf32>
    %29 = tpu.matmul %27, %28, %cst_14 {dimension_numbers = #tpu.dot_dimension_numbers<[1], [0], [0], [1], [0, 0, 1, 1], [], []>} : vector<8x32xbf16>, vector<32x128xbf16>, vector<8x128xf32> -> vector<8x128xf32>
    %30 = arith.addf %8, %29 : vector<8x128xf32>
    %31 = vector.extract_strided_slice %7 {offsets = [0, 32], sizes = [8, 32], strides = [1, 1]} : vector<8x384xbf16> to vector<8x32xbf16>
    %32 = vector.extract_strided_slice %7 {offsets = [0, 160], sizes = [8, 32], strides = [1, 1]} : vector<8x384xbf16> to vector<8x32xbf16>
    %33 = vector.extract_strided_slice %7 {offsets = [0, 288], sizes = [8, 32], strides = [1, 1]} : vector<8x384xbf16> to vector<8x32xbf16>
    %cst_15 = arith.constant dense<0.000000e+00> : vector<8x8xf32>
    %34 = tpu.matmul %31, %32, %cst_15 {dimension_numbers = #tpu.dot_dimension_numbers<[1], [1], [0], [0], [0, 0, 1, 0], [], []>} : vector<8x32xbf16>, vector<8x32xbf16>, vector<8x8xf32> -> vector<8x8xf32>
    %cst_16 = arith.constant 0.176776692 : f32
    %35 = vector.broadcast %cst_16 : f32 to vector<8x8xf32>
    %36 = arith.mulf %34, %35 : vector<8x8xf32>
    %cst_17 = arith.constant dense<0xFF800000> : vector<8xf32>
    %37 = vector.multi_reduction <maximumf>, %36, %cst_17 [1] : vector<8x8xf32> to vector<8xf32>
    %38 = vector.shape_cast %37 : vector<8xf32> to vector<8x1xf32>
    %39 = vector.broadcast %38 : vector<8x1xf32> to vector<8x8xf32>
    %40 = arith.subf %36, %39 : vector<8x8xf32>
    %41 = math.exp %40 : vector<8x8xf32>
    %cst_18 = arith.constant dense<0.000000e+00> : vector<8xf32>
    %42 = vector.multi_reduction <add>, %41, %cst_18 [1] : vector<8x8xf32> to vector<8xf32>
    %43 = vector.shape_cast %42 : vector<8xf32> to vector<8x1xf32>
    %44 = tpu.reciprocal %43 {approx = true} : vector<8x1xf32> -> vector<8x1xf32>
    %45 = vector.broadcast %44 : vector<8x1xf32> to vector<8x8xf32>
    %46 = arith.mulf %41, %45 : vector<8x8xf32>
    %47 = arith.truncf %46 : vector<8x8xf32> to vector<8x8xbf16>
    %cst_19 = arith.constant dense<0.000000e+00> : vector<8x32xf32>
    %48 = tpu.matmul %47, %33, %cst_19 {dimension_numbers = #tpu.dot_dimension_numbers<[1], [0], [0], [1], [0, 0, 1, 1], [], []>} : vector<8x8xbf16>, vector<8x32xbf16>, vector<8x32xf32> -> vector<8x32xf32>
    %49 = arith.truncf %48 : vector<8x32xf32> to vector<8x32xbf16>
    %c32 = arith.constant 32 : index
    %c0_20 = arith.constant 0 : index
    %50 = vector.load %arg4[%c32, %c0_20] : memref<128x128xbf16, #tpu.memory_space<vmem>>, vector<32x128xbf16>
    %cst_21 = arith.constant dense<0.000000e+00> : vector<8x128xf32>
    %51 = tpu.matmul %49, %50, %cst_21 {dimension_numbers = #tpu.dot_dimension_numbers<[1], [0], [0], [1], [0, 0, 1, 1], [], []>} : vector<8x32xbf16>, vector<32x128xbf16>, vector<8x128xf32> -> vector<8x128xf32>
    %52 = arith.addf %30, %51 : vector<8x128xf32>
    %53 = vector.extract_strided_slice %7 {offsets = [0, 64], sizes = [8, 32], strides = [1, 1]} : vector<8x384xbf16> to vector<8x32xbf16>
    %54 = vector.extract_strided_slice %7 {offsets = [0, 192], sizes = [8, 32], strides = [1, 1]} : vector<8x384xbf16> to vector<8x32xbf16>
    %55 = vector.extract_strided_slice %7 {offsets = [0, 320], sizes = [8, 32], strides = [1, 1]} : vector<8x384xbf16> to vector<8x32xbf16>
    %cst_22 = arith.constant dense<0.000000e+00> : vector<8x8xf32>
    %56 = tpu.matmul %53, %54, %cst_22 {dimension_numbers = #tpu.dot_dimension_numbers<[1], [1], [0], [0], [0, 0, 1, 0], [], []>} : vector<8x32xbf16>, vector<8x32xbf16>, vector<8x8xf32> -> vector<8x8xf32>
    %cst_23 = arith.constant 0.176776692 : f32
    %57 = vector.broadcast %cst_23 : f32 to vector<8x8xf32>
    %58 = arith.mulf %56, %57 : vector<8x8xf32>
    %cst_24 = arith.constant dense<0xFF800000> : vector<8xf32>
    %59 = vector.multi_reduction <maximumf>, %58, %cst_24 [1] : vector<8x8xf32> to vector<8xf32>
    %60 = vector.shape_cast %59 : vector<8xf32> to vector<8x1xf32>
    %61 = vector.broadcast %60 : vector<8x1xf32> to vector<8x8xf32>
    %62 = arith.subf %58, %61 : vector<8x8xf32>
    %63 = math.exp %62 : vector<8x8xf32>
    %cst_25 = arith.constant dense<0.000000e+00> : vector<8xf32>
    %64 = vector.multi_reduction <add>, %63, %cst_25 [1] : vector<8x8xf32> to vector<8xf32>
    %65 = vector.shape_cast %64 : vector<8xf32> to vector<8x1xf32>
    %66 = tpu.reciprocal %65 {approx = true} : vector<8x1xf32> -> vector<8x1xf32>
    %67 = vector.broadcast %66 : vector<8x1xf32> to vector<8x8xf32>
    %68 = arith.mulf %63, %67 : vector<8x8xf32>
    %69 = arith.truncf %68 : vector<8x8xf32> to vector<8x8xbf16>
    %cst_26 = arith.constant dense<0.000000e+00> : vector<8x32xf32>
    %70 = tpu.matmul %69, %55, %cst_26 {dimension_numbers = #tpu.dot_dimension_numbers<[1], [0], [0], [1], [0, 0, 1, 1], [], []>} : vector<8x8xbf16>, vector<8x32xbf16>, vector<8x32xf32> -> vector<8x32xf32>
    %71 = arith.truncf %70 : vector<8x32xf32> to vector<8x32xbf16>
    %c64 = arith.constant 64 : index
    %c0_27 = arith.constant 0 : index
    %72 = vector.load %arg4[%c64, %c0_27] : memref<128x128xbf16, #tpu.memory_space<vmem>>, vector<32x128xbf16>
    %cst_28 = arith.constant dense<0.000000e+00> : vector<8x128xf32>
    %73 = tpu.matmul %71, %72, %cst_28 {dimension_numbers = #tpu.dot_dimension_numbers<[1], [0], [0], [1], [0, 0, 1, 1], [], []>} : vector<8x32xbf16>, vector<32x128xbf16>, vector<8x128xf32> -> vector<8x128xf32>
    %74 = arith.addf %52, %73 : vector<8x128xf32>
    %75 = vector.extract_strided_slice %7 {offsets = [0, 96], sizes = [8, 32], strides = [1, 1]} : vector<8x384xbf16> to vector<8x32xbf16>
    %76 = vector.extract_strided_slice %7 {offsets = [0, 224], sizes = [8, 32], strides = [1, 1]} : vector<8x384xbf16> to vector<8x32xbf16>
    %77 = vector.extract_strided_slice %7 {offsets = [0, 352], sizes = [8, 32], strides = [1, 1]} : vector<8x384xbf16> to vector<8x32xbf16>
    %cst_29 = arith.constant dense<0.000000e+00> : vector<8x8xf32>
    %78 = tpu.matmul %75, %76, %cst_29 {dimension_numbers = #tpu.dot_dimension_numbers<[1], [1], [0], [0], [0, 0, 1, 0], [], []>} : vector<8x32xbf16>, vector<8x32xbf16>, vector<8x8xf32> -> vector<8x8xf32>
    %cst_30 = arith.constant 0.176776692 : f32
    %79 = vector.broadcast %cst_30 : f32 to vector<8x8xf32>
    %80 = arith.mulf %78, %79 : vector<8x8xf32>
    %cst_31 = arith.constant dense<0xFF800000> : vector<8xf32>
    %81 = vector.multi_reduction <maximumf>, %80, %cst_31 [1] : vector<8x8xf32> to vector<8xf32>
    %82 = vector.shape_cast %81 : vector<8xf32> to vector<8x1xf32>
    %83 = vector.broadcast %82 : vector<8x1xf32> to vector<8x8xf32>
    %84 = arith.subf %80, %83 : vector<8x8xf32>
    %85 = math.exp %84 : vector<8x8xf32>
    %cst_32 = arith.constant dense<0.000000e+00> : vector<8xf32>
    %86 = vector.multi_reduction <add>, %85, %cst_32 [1] : vector<8x8xf32> to vector<8xf32>
    %87 = vector.shape_cast %86 : vector<8xf32> to vector<8x1xf32>
    %88 = tpu.reciprocal %87 {approx = true} : vector<8x1xf32> -> vector<8x1xf32>
    %89 = vector.broadcast %88 : vector<8x1xf32> to vector<8x8xf32>
    %90 = arith.mulf %85, %89 : vector<8x8xf32>
    %91 = arith.truncf %90 : vector<8x8xf32> to vector<8x8xbf16>
    %cst_33 = arith.constant dense<0.000000e+00> : vector<8x32xf32>
    %92 = tpu.matmul %91, %77, %cst_33 {dimension_numbers = #tpu.dot_dimension_numbers<[1], [0], [0], [1], [0, 0, 1, 1], [], []>} : vector<8x8xbf16>, vector<8x32xbf16>, vector<8x32xf32> -> vector<8x32xf32>
    %93 = arith.truncf %92 : vector<8x32xf32> to vector<8x32xbf16>
    %c96 = arith.constant 96 : index
    %c0_34 = arith.constant 0 : index
    %94 = vector.load %arg4[%c96, %c0_34] : memref<128x128xbf16, #tpu.memory_space<vmem>>, vector<32x128xbf16>
    %cst_35 = arith.constant dense<0.000000e+00> : vector<8x128xf32>
    %95 = tpu.matmul %93, %94, %cst_35 {dimension_numbers = #tpu.dot_dimension_numbers<[1], [0], [0], [1], [0, 0, 1, 1], [], []>} : vector<8x32xbf16>, vector<32x128xbf16>, vector<8x128xf32> -> vector<8x128xf32>
    %96 = arith.addf %74, %95 : vector<8x128xf32>
    %c0_36 = arith.constant 0 : index
    %c0_37 = arith.constant 0 : index
    %97 = vector.load %arg5[%c0_36, %c0_37] : memref<1x128xf32, #tpu.memory_space<vmem>>, vector<1x128xf32>
    %98 = vector.broadcast %97 : vector<1x128xf32> to vector<8x128xf32>
    %99 = arith.addf %96, %98 : vector<8x128xf32>
    %100 = arith.extf %1 : vector<8x128xbf16> to vector<8x128xf32>
    %101 = arith.addf %99, %100 : vector<8x128xf32>
    %cst_38 = arith.constant dense<0.000000e+00> : vector<8xf32>
    %102 = vector.multi_reduction <add>, %101, %cst_38 [1] : vector<8x128xf32> to vector<8xf32>
    %103 = vector.shape_cast %102 : vector<8xf32> to vector<8x1xf32>
    %cst_39 = arith.constant 1.280000e+02 : f32
    %104 = vector.broadcast %cst_39 : f32 to vector<8x1xf32>
    %105 = arith.divf %103, %104 : vector<8x1xf32>
    %106 = vector.broadcast %105 : vector<8x1xf32> to vector<8x128xf32>
    %107 = arith.subf %101, %106 : vector<8x128xf32>
    %108 = arith.mulf %107, %107 : vector<8x128xf32>
    %cst_40 = arith.constant dense<0.000000e+00> : vector<8xf32>
    %109 = vector.multi_reduction <add>, %108, %cst_40 [1] : vector<8x128xf32> to vector<8xf32>
    %110 = vector.shape_cast %109 : vector<8xf32> to vector<8x1xf32>
    %cst_41 = arith.constant 1.280000e+02 : f32
    %111 = vector.broadcast %cst_41 : f32 to vector<8x1xf32>
    %112 = arith.divf %110, %111 : vector<8x1xf32>
    %113 = vector.broadcast %105 : vector<8x1xf32> to vector<8x128xf32>
    %114 = arith.subf %101, %113 : vector<8x128xf32>
    %cst_42 = arith.constant 9.99999974E-6 : f32
    %115 = vector.broadcast %cst_42 : f32 to vector<8x1xf32>
    %116 = arith.addf %112, %115 : vector<8x1xf32>
    %117 = math.rsqrt %116 : vector<8x1xf32>
    %118 = vector.broadcast %117 : vector<8x1xf32> to vector<8x128xf32>
    %119 = arith.mulf %114, %118 : vector<8x128xf32>
    %c0_43 = arith.constant 0 : index
    %c0_44 = arith.constant 0 : index
    %120 = vector.load %arg6[%c0_43, %c0_44] : memref<1x128xf32, #tpu.memory_space<vmem>>, vector<1x128xf32>
    %121 = vector.broadcast %120 : vector<1x128xf32> to vector<8x128xf32>
    %122 = arith.mulf %119, %121 : vector<8x128xf32>
    %c0_45 = arith.constant 0 : index
    %c0_46 = arith.constant 0 : index
    %123 = vector.load %arg7[%c0_45, %c0_46] : memref<1x128xf32, #tpu.memory_space<vmem>>, vector<1x128xf32>
    %124 = vector.broadcast %123 : vector<1x128xf32> to vector<8x128xf32>
    %125 = arith.addf %122, %124 : vector<8x128xf32>
    %126 = arith.truncf %125 : vector<8x128xf32> to vector<8x128xbf16>
    %c0_47 = arith.constant 0 : index
    %c0_48 = arith.constant 0 : index
    %c0_49 = arith.constant 0 : index
    %127 = vector.load %arg8[%c0_47, %c0_48, %c0_49] : memref<1x8x128xbf16, #tpu.memory_space<vmem>>, vector<1x8x128xbf16>
    %128 = vector.shape_cast %127 : vector<1x8x128xbf16> to vector<8x128xbf16>
    %129 = vector.shape_cast %126 : vector<8x128xbf16> to vector<1x8x128xbf16>
    tpu.vector_store %arg8[%c0_47, %c0_48, %c0_49], %129 {strides = array<i32>} : memref<1x8x128xbf16, #tpu.memory_space<vmem>>, vector<1x8x128xbf16>,
    return
  }
  func.func @transform_0(%arg0: i32) -> (i32, i32, i32) {
    %c0_i32 = arith.constant 0 : i32
    %c0_i32_0 = arith.constant 0 : i32
    %c0_i32_1 = arith.constant 0 : i32
    return %arg0, %c0_i32, %c0_i32_0 : i32, i32, i32
  }
  func.func @transform_1(%arg0: i32) -> (i32, i32) {
    %c0_i32 = arith.constant 0 : i32
    %c0_i32_0 = arith.constant 0 : i32
    %c0_i32_1 = arith.constant 0 : i32
    return %c0_i32, %c0_i32_0 : i32, i32
  }
  func.func @transform_2(%arg0: i32) -> (i32, i32) {
    %c0_i32 = arith.constant 0 : i32
    %c0_i32_0 = arith.constant 0 : i32
    %c0_i32_1 = arith.constant 0 : i32
    return %c0_i32, %c0_i32_0 : i32, i32
  }
  func.func @transform_3(%arg0: i32) -> (i32, i32) {
    %c0_i32 = arith.constant 0 : i32
    %c0_i32_0 = arith.constant 0 : i32
    %c0_i32_1 = arith.constant 0 : i32
    return %c0_i32, %c0_i32_0 : i32, i32
  }
  func.func @transform_4(%arg0: i32) -> (i32, i32) {
    %c0_i32 = arith.constant 0 : i32
    %c0_i32_0 = arith.constant 0 : i32
    %c0_i32_1 = arith.constant 0 : i32
    return %c0_i32, %c0_i32_0 : i32, i32
  }
  func.func @transform_5(%arg0: i32) -> (i32, i32) {
    %c0_i32 = arith.constant 0 : i32
    %c0_i32_0 = arith.constant 0 : i32
    %c0_i32_1 = arith.constant 0 : i32
    return %c0_i32, %c0_i32_0 : i32, i32
  }
  func.func @transform_6(%arg0: i32) -> (i32, i32) {
    %c0_i32 = arith.constant 0 : i32
    %c0_i32_0 = arith.constant 0 : i32
    %c0_i32_1 = arith.constant 0 : i32
    return %c0_i32, %c0_i32_0 : i32, i32
  }
  func.func @transform_7(%arg0: i32) -> (i32, i32, i32) {
    %c0_i32 = arith.constant 0 : i32
    %c0_i32_0 = arith.constant 0 : i32
    %c0_i32_1 = arith.constant 0 : i32
    return %arg0, %c0_i32, %c0_i32_0 : i32, i32, i32
  }
}

module attributes {stable_mosaic.version = 11 : i64} {
  func.func @_mean_fc_kernel(%arg0: i32, %arg1: memref<8x8x128xbf16, #tpu.memory_space<vmem>>, %arg2: memref<128x128xbf16, #tpu.memory_space<vmem>>, %arg3: memref<1x128xf32, #tpu.memory_space<vmem>>, %arg4: memref<8x128xf32, #tpu.memory_space<vmem>>) attributes {dimension_semantics = [#tpu.dimension_semantics<parallel>], iteration_bounds = array<i64: 1>, scalar_prefetch = 0 : i64, scratch_operands = 0 : i64, tpu.core_type = #tpu.core_type<tc>, window_params = [{transform_indices = @transform_0, window_bounds = array<i64: 8, 8, 128>}, {pipeline_mode = #tpu.pipeline_mode<synchronous>, transform_indices = @transform_1, window_bounds = array<i64: 128, 128>}, {pipeline_mode = #tpu.pipeline_mode<synchronous>, transform_indices = @transform_2, window_bounds = array<i64: 1, 128>}, {transform_indices = @transform_3, window_bounds = array<i64: 8, 128>}]} {
    %c0 = arith.constant 0 : index
    %c0_0 = arith.constant 0 : index
    %c0_1 = arith.constant 0 : index
    %0 = vector.load %arg1[%c0, %c0_0, %c0_1] : memref<8x8x128xbf16, #tpu.memory_space<vmem>>, vector<8x8x128xbf16>
    %1 = arith.extf %0 : vector<8x8x128xbf16> to vector<8x8x128xf32>
    %cst = arith.constant dense<0.000000e+00> : vector<8x128xf32>
    %2 = vector.multi_reduction <add>, %1, %cst [1] : vector<8x8x128xf32> to vector<8x128xf32>
    %cst_2 = arith.constant 8.000000e+00 : f32
    %3 = vector.broadcast %cst_2 : f32 to vector<8x128xf32>
    %4 = arith.divf %2, %3 : vector<8x128xf32>
    %5 = arith.truncf %4 : vector<8x128xf32> to vector<8x128xbf16>
    %c0_3 = arith.constant 0 : index
    %c0_4 = arith.constant 0 : index
    %6 = vector.load %arg2[%c0_3, %c0_4] : memref<128x128xbf16, #tpu.memory_space<vmem>>, vector<128x128xbf16>
    %cst_5 = arith.constant dense<0.000000e+00> : vector<8x128xf32>
    %7 = tpu.matmul %5, %6, %cst_5 {dimension_numbers = #tpu.dot_dimension_numbers<[1], [0], [0], [1], [0, 0, 1, 1], [], []>} : vector<8x128xbf16>, vector<128x128xbf16>, vector<8x128xf32> -> vector<8x128xf32>
    %c0_6 = arith.constant 0 : index
    %c0_7 = arith.constant 0 : index
    %8 = vector.load %arg3[%c0_6, %c0_7] : memref<1x128xf32, #tpu.memory_space<vmem>>, vector<1x128xf32>
    %9 = vector.broadcast %8 : vector<1x128xf32> to vector<8x128xf32>
    %10 = arith.addf %7, %9 : vector<8x128xf32>
    %c0_8 = arith.constant 0 : index
    %c0_9 = arith.constant 0 : index
    %11 = vector.load %arg4[%c0_8, %c0_9] : memref<8x128xf32, #tpu.memory_space<vmem>>, vector<8x128xf32>
    tpu.vector_store %arg4[%c0_8, %c0_9], %10 {strides = array<i32>} : memref<8x128xf32, #tpu.memory_space<vmem>>, vector<8x128xf32>,
    return
  }
  func.func @transform_0(%arg0: i32) -> (i32, i32, i32) {
    %c0_i32 = arith.constant 0 : i32
    %c0_i32_0 = arith.constant 0 : i32
    %c0_i32_1 = arith.constant 0 : i32
    return %arg0, %c0_i32, %c0_i32_0 : i32, i32, i32
  }
  func.func @transform_1(%arg0: i32) -> (i32, i32) {
    %c0_i32 = arith.constant 0 : i32
    %c0_i32_0 = arith.constant 0 : i32
    %c0_i32_1 = arith.constant 0 : i32
    return %c0_i32, %c0_i32_0 : i32, i32
  }
  func.func @transform_2(%arg0: i32) -> (i32, i32) {
    %c0_i32 = arith.constant 0 : i32
    %c0_i32_0 = arith.constant 0 : i32
    %c0_i32_1 = arith.constant 0 : i32
    return %c0_i32, %c0_i32_0 : i32, i32
  }
  func.func @transform_3(%arg0: i32) -> (i32, i32) {
    %c0_i32 = arith.constant 0 : i32
    %c0_i32_0 = arith.constant 0 : i32
    return %arg0, %c0_i32 : i32, i32
  }
}

module attributes {stable_mosaic.version = 11 : i64} {
  func.func @_bigru_kernel(%arg0: i32, %arg1: memref<8x8x384xbf16, #tpu.memory_space<vmem>>, %arg2: memref<128x384xbf16, #tpu.memory_space<vmem>>, %arg3: memref<1x384xf32, #tpu.memory_space<vmem>>, %arg4: memref<8x8x128xf32, #tpu.memory_space<vmem>>, %arg5: memref<8x128xf32, #tpu.memory_space<vmem>>) attributes {dimension_semantics = [#tpu.dimension_semantics<arbitrary>], iteration_bounds = array<i64: 1>, scalar_prefetch = 0 : i64, scratch_operands = 1 : i64, tpu.core_type = #tpu.core_type<tc>, window_params = [{transform_indices = @transform_0, window_bounds = array<i64: 8, 8, 384>}, {pipeline_mode = #tpu.pipeline_mode<synchronous>, transform_indices = @transform_1, window_bounds = array<i64: 128, 384>}, {pipeline_mode = #tpu.pipeline_mode<synchronous>, transform_indices = @transform_2, window_bounds = array<i64: 1, 384>}, {pipeline_mode = #tpu.pipeline_mode<synchronous>, transform_indices = @transform_3, window_bounds = array<i64: 8, 8, 128>}]} {
    %c8_i32 = arith.constant 8 : i32
    %0 = arith.muli %arg0, %c8_i32 : i32
    %c0_i32 = arith.constant 0 : i32
    %1 = arith.cmpi eq, %arg0, %c0_i32 : i32
    %2 = arith.extui %1 : i1 to i32
    %c0_i32_0 = arith.constant 0 : i32
    %3 = arith.cmpi ne, %2, %c0_i32_0 : i32
    scf.if %3 {
      %cst_124 = arith.constant 0.000000e+00 : f32
      %390 = vector.broadcast %cst_124 : f32 to vector<8x128xf32>
      %c0_125 = arith.constant 0 : index
      %c0_126 = arith.constant 0 : index
      %391 = vector.load %arg5[%c0_125, %c0_126] : memref<8x128xf32, #tpu.memory_space<vmem>>, vector<8x128xf32>
      tpu.vector_store %arg5[%c0_125, %c0_126], %390 {strides = array<i32>} : memref<8x128xf32, #tpu.memory_space<vmem>>, vector<8x128xf32>,
    } else {
    }
    %c0 = arith.constant 0 : index
    %c0_1 = arith.constant 0 : index
    %4 = vector.load %arg2[%c0, %c0_1] : memref<128x384xbf16, #tpu.memory_space<vmem>>, vector<128x384xbf16>
    %c0_2 = arith.constant 0 : index
    %c0_3 = arith.constant 0 : index
    %5 = vector.load %arg3[%c0_2, %c0_3] : memref<1x384xf32, #tpu.memory_space<vmem>>, vector<1x384xf32>
    %c0_i32_4 = arith.constant 0 : i32
    %6 = arith.addi %0, %c0_i32_4 : i32
    %c0_5 = arith.constant 0 : index
    %c0_6 = arith.constant 0 : index
    %7 = vector.load %arg5[%c0_5, %c0_6] : memref<8x128xf32, #tpu.memory_space<vmem>>, vector<8x128xf32>
    %8 = arith.truncf %7 : vector<8x128xf32> to vector<8x128xbf16>
    %cst = arith.constant dense<0.000000e+00> : vector<8x384xf32>
    %9 = tpu.matmul %8, %4, %cst {dimension_numbers = #tpu.dot_dimension_numbers<[1], [0], [0], [1], [0, 0, 1, 1], [], []>} : vector<8x128xbf16>, vector<128x384xbf16>, vector<8x384xf32> -> vector<8x384xf32>
    %10 = vector.broadcast %5 : vector<1x384xf32> to vector<8x384xf32>
    %11 = arith.addf %9, %10 : vector<8x384xf32>
    %12 = arith.index_cast %c0_i32_4 : i32 to index
    %c0_7 = arith.constant 0 : index
    %c0_8 = arith.constant 0 : index
    %13 = vector.load %arg1[%12, %c0_7, %c0_8] : memref<8x8x384xbf16, #tpu.memory_space<vmem>>, vector<1x8x384xbf16>
    %14 = vector.shape_cast %13 : vector<1x8x384xbf16> to vector<8x384xbf16>
    %15 = arith.extf %14 : vector<8x384xbf16> to vector<8x384xf32>
    %16 = vector.extract_strided_slice %15 {offsets = [0, 0], sizes = [8, 128], strides = [1, 1]} : vector<8x384xf32> to vector<8x128xf32>
    %17 = vector.extract_strided_slice %11 {offsets = [0, 0], sizes = [8, 128], strides = [1, 1]} : vector<8x384xf32> to vector<8x128xf32>
    %18 = arith.addf %16, %17 : vector<8x128xf32>
    %19 = arith.negf %18 : vector<8x128xf32>
    %20 = math.exp %19 : vector<8x128xf32>
    %cst_9 = arith.constant 1.000000e+00 : f32
    %21 = vector.broadcast %cst_9 : f32 to vector<8x128xf32>
    %22 = arith.addf %21, %20 : vector<8x128xf32>
    %23 = arith.divf %21, %22 : vector<8x128xf32>
    %24 = vector.extract_strided_slice %15 {offsets = [0, 128], sizes = [8, 128], strides = [1, 1]} : vector<8x384xf32> to vector<8x128xf32>
    %25 = vector.extract_strided_slice %11 {offsets = [0, 128], sizes = [8, 128], strides = [1, 1]} : vector<8x384xf32> to vector<8x128xf32>
    %26 = arith.addf %24, %25 : vector<8x128xf32>
    %27 = arith.negf %26 : vector<8x128xf32>
    %28 = math.exp %27 : vector<8x128xf32>
    %cst_10 = arith.constant 1.000000e+00 : f32
    %29 = vector.broadcast %cst_10 : f32 to vector<8x128xf32>
    %30 = arith.addf %29, %28 : vector<8x128xf32>
    %31 = arith.divf %29, %30 : vector<8x128xf32>
    %32 = vector.extract_strided_slice %15 {offsets = [0, 256], sizes = [8, 128], strides = [1, 1]} : vector<8x384xf32> to vector<8x128xf32>
    %33 = vector.extract_strided_slice %11 {offsets = [0, 256], sizes = [8, 128], strides = [1, 1]} : vector<8x384xf32> to vector<8x128xf32>
    %34 = arith.mulf %23, %33 : vector<8x128xf32>
    %35 = arith.addf %32, %34 : vector<8x128xf32>
    %36 = math.tanh %35 : vector<8x128xf32>
    %cst_11 = arith.constant 1.000000e+00 : f32
    %37 = vector.broadcast %cst_11 : f32 to vector<8x128xf32>
    %38 = arith.subf %37, %31 : vector<8x128xf32>
    %39 = arith.mulf %38, %36 : vector<8x128xf32>
    %40 = arith.mulf %31, %7 : vector<8x128xf32>
    %41 = arith.addf %39, %40 : vector<8x128xf32>
    %c0_12 = arith.constant 0 : index
    %c0_13 = arith.constant 0 : index
    %42 = vector.load %arg5[%c0_12, %c0_13] : memref<8x128xf32, #tpu.memory_space<vmem>>, vector<8x128xf32>
    tpu.vector_store %arg5[%c0_12, %c0_13], %41 {strides = array<i32>} : memref<8x128xf32, #tpu.memory_space<vmem>>, vector<8x128xf32>,
    %43 = vector.extract_strided_slice %41 {offsets = [0, 0], sizes = [8, 64], strides = [1, 1]} : vector<8x128xf32> to vector<8x64xf32>
    %44 = arith.index_cast %6 : i32 to index
    %c0_14 = arith.constant 0 : index
    %c0_15 = arith.constant 0 : index
    %45 = vector.load %arg4[%44, %c0_14, %c0_15] : memref<8x8x128xf32, #tpu.memory_space<vmem>>, vector<1x8x64xf32>
    %46 = vector.shape_cast %45 : vector<1x8x64xf32> to vector<8x64xf32>
    %47 = vector.shape_cast %43 : vector<8x64xf32> to vector<1x8x64xf32>
    tpu.vector_store %arg4[%44, %c0_14, %c0_15], %47 {strides = array<i32>} : memref<8x8x128xf32, #tpu.memory_space<vmem>>, vector<1x8x64xf32>,
    %48 = vector.extract_strided_slice %41 {offsets = [0, 64], sizes = [8, 64], strides = [1, 1]} : vector<8x128xf32> to vector<8x64xf32>
    %c7_i32 = arith.constant 7 : i32
    %49 = arith.subi %c7_i32, %6 : i32
    %50 = arith.index_cast %49 : i32 to index
    %c0_16 = arith.constant 0 : index
    %c64 = arith.constant 64 : index
    %51 = vector.load %arg4[%50, %c0_16, %c64] : memref<8x8x128xf32, #tpu.memory_space<vmem>>, vector<1x8x64xf32>
    %52 = vector.shape_cast %51 : vector<1x8x64xf32> to vector<8x64xf32>
    %53 = vector.shape_cast %48 : vector<8x64xf32> to vector<1x8x64xf32>
    tpu.vector_store %arg4[%50, %c0_16, %c64], %53 {strides = array<i32>} : memref<8x8x128xf32, #tpu.memory_space<vmem>>, vector<1x8x64xf32>,
    %c1_i32 = arith.constant 1 : i32
    %54 = arith.addi %0, %c1_i32 : i32
    %c0_17 = arith.constant 0 : index
    %c0_18 = arith.constant 0 : index
    %55 = vector.load %arg5[%c0_17, %c0_18] : memref<8x128xf32, #tpu.memory_space<vmem>>, vector<8x128xf32>
    %56 = arith.truncf %55 : vector<8x128xf32> to vector<8x128xbf16>
    %cst_19 = arith.constant dense<0.000000e+00> : vector<8x384xf32>
    %57 = tpu.matmul %56, %4, %cst_19 {dimension_numbers = #tpu.dot_dimension_numbers<[1], [0], [0], [1], [0, 0, 1, 1], [], []>} : vector<8x128xbf16>, vector<128x384xbf16>, vector<8x384xf32> -> vector<8x384xf32>
    %58 = vector.broadcast %5 : vector<1x384xf32> to vector<8x384xf32>
    %59 = arith.addf %57, %58 : vector<8x384xf32>
    %60 = arith.index_cast %c1_i32 : i32 to index
    %c0_20 = arith.constant 0 : index
    %c0_21 = arith.constant 0 : index
    %61 = vector.load %arg1[%60, %c0_20, %c0_21] : memref<8x8x384xbf16, #tpu.memory_space<vmem>>, vector<1x8x384xbf16>
    %62 = vector.shape_cast %61 : vector<1x8x384xbf16> to vector<8x384xbf16>
    %63 = arith.extf %62 : vector<8x384xbf16> to vector<8x384xf32>
    %64 = vector.extract_strided_slice %63 {offsets = [0, 0], sizes = [8, 128], strides = [1, 1]} : vector<8x384xf32> to vector<8x128xf32>
    %65 = vector.extract_strided_slice %59 {offsets = [0, 0], sizes = [8, 128], strides = [1, 1]} : vector<8x384xf32> to vector<8x128xf32>
    %66 = arith.addf %64, %65 : vector<8x128xf32>
    %67 = arith.negf %66 : vector<8x128xf32>
    %68 = math.exp %67 : vector<8x128xf32>
    %cst_22 = arith.constant 1.000000e+00 : f32
    %69 = vector.broadcast %cst_22 : f32 to vector<8x128xf32>
    %70 = arith.addf %69, %68 : vector<8x128xf32>
    %71 = arith.divf %69, %70 : vector<8x128xf32>
    %72 = vector.extract_strided_slice %63 {offsets = [0, 128], sizes = [8, 128], strides = [1, 1]} : vector<8x384xf32> to vector<8x128xf32>
    %73 = vector.extract_strided_slice %59 {offsets = [0, 128], sizes = [8, 128], strides = [1, 1]} : vector<8x384xf32> to vector<8x128xf32>
    %74 = arith.addf %72, %73 : vector<8x128xf32>
    %75 = arith.negf %74 : vector<8x128xf32>
    %76 = math.exp %75 : vector<8x128xf32>
    %cst_23 = arith.constant 1.000000e+00 : f32
    %77 = vector.broadcast %cst_23 : f32 to vector<8x128xf32>
    %78 = arith.addf %77, %76 : vector<8x128xf32>
    %79 = arith.divf %77, %78 : vector<8x128xf32>
    %80 = vector.extract_strided_slice %63 {offsets = [0, 256], sizes = [8, 128], strides = [1, 1]} : vector<8x384xf32> to vector<8x128xf32>
    %81 = vector.extract_strided_slice %59 {offsets = [0, 256], sizes = [8, 128], strides = [1, 1]} : vector<8x384xf32> to vector<8x128xf32>
    %82 = arith.mulf %71, %81 : vector<8x128xf32>
    %83 = arith.addf %80, %82 : vector<8x128xf32>
    %84 = math.tanh %83 : vector<8x128xf32>
    %cst_24 = arith.constant 1.000000e+00 : f32
    %85 = vector.broadcast %cst_24 : f32 to vector<8x128xf32>
    %86 = arith.subf %85, %79 : vector<8x128xf32>
    %87 = arith.mulf %86, %84 : vector<8x128xf32>
    %88 = arith.mulf %79, %55 : vector<8x128xf32>
    %89 = arith.addf %87, %88 : vector<8x128xf32>
    %c0_25 = arith.constant 0 : index
    %c0_26 = arith.constant 0 : index
    %90 = vector.load %arg5[%c0_25, %c0_26] : memref<8x128xf32, #tpu.memory_space<vmem>>, vector<8x128xf32>
    tpu.vector_store %arg5[%c0_25, %c0_26], %89 {strides = array<i32>} : memref<8x128xf32, #tpu.memory_space<vmem>>, vector<8x128xf32>,
    %91 = vector.extract_strided_slice %89 {offsets = [0, 0], sizes = [8, 64], strides = [1, 1]} : vector<8x128xf32> to vector<8x64xf32>
    %92 = arith.index_cast %54 : i32 to index
    %c0_27 = arith.constant 0 : index
    %c0_28 = arith.constant 0 : index
    %93 = vector.load %arg4[%92, %c0_27, %c0_28] : memref<8x8x128xf32, #tpu.memory_space<vmem>>, vector<1x8x64xf32>
    %94 = vector.shape_cast %93 : vector<1x8x64xf32> to vector<8x64xf32>
    %95 = vector.shape_cast %91 : vector<8x64xf32> to vector<1x8x64xf32>
    tpu.vector_store %arg4[%92, %c0_27, %c0_28], %95 {strides = array<i32>} : memref<8x8x128xf32, #tpu.memory_space<vmem>>, vector<1x8x64xf32>,
    %96 = vector.extract_strided_slice %89 {offsets = [0, 64], sizes = [8, 64], strides = [1, 1]} : vector<8x128xf32> to vector<8x64xf32>
    %c7_i32_29 = arith.constant 7 : i32
    %97 = arith.subi %c7_i32_29, %54 : i32
    %98 = arith.index_cast %97 : i32 to index
    %c0_30 = arith.constant 0 : index
    %c64_31 = arith.constant 64 : index
    %99 = vector.load %arg4[%98, %c0_30, %c64_31] : memref<8x8x128xf32, #tpu.memory_space<vmem>>, vector<1x8x64xf32>
    %100 = vector.shape_cast %99 : vector<1x8x64xf32> to vector<8x64xf32>
    %101 = vector.shape_cast %96 : vector<8x64xf32> to vector<1x8x64xf32>
    tpu.vector_store %arg4[%98, %c0_30, %c64_31], %101 {strides = array<i32>} : memref<8x8x128xf32, #tpu.memory_space<vmem>>, vector<1x8x64xf32>,
    %c2_i32 = arith.constant 2 : i32
    %102 = arith.addi %0, %c2_i32 : i32
    %c0_32 = arith.constant 0 : index
    %c0_33 = arith.constant 0 : index
    %103 = vector.load %arg5[%c0_32, %c0_33] : memref<8x128xf32, #tpu.memory_space<vmem>>, vector<8x128xf32>
    %104 = arith.truncf %103 : vector<8x128xf32> to vector<8x128xbf16>
    %cst_34 = arith.constant dense<0.000000e+00> : vector<8x384xf32>
    %105 = tpu.matmul %104, %4, %cst_34 {dimension_numbers = #tpu.dot_dimension_numbers<[1], [0], [0], [1], [0, 0, 1, 1], [], []>} : vector<8x128xbf16>, vector<128x384xbf16>, vector<8x384xf32> -> vector<8x384xf32>
    %106 = vector.broadcast %5 : vector<1x384xf32> to vector<8x384xf32>
    %107 = arith.addf %105, %106 : vector<8x384xf32>
    %108 = arith.index_cast %c2_i32 : i32 to index
    %c0_35 = arith.constant 0 : index
    %c0_36 = arith.constant 0 : index
    %109 = vector.load %arg1[%108, %c0_35, %c0_36] : memref<8x8x384xbf16, #tpu.memory_space<vmem>>, vector<1x8x384xbf16>
    %110 = vector.shape_cast %109 : vector<1x8x384xbf16> to vector<8x384xbf16>
    %111 = arith.extf %110 : vector<8x384xbf16> to vector<8x384xf32>
    %112 = vector.extract_strided_slice %111 {offsets = [0, 0], sizes = [8, 128], strides = [1, 1]} : vector<8x384xf32> to vector<8x128xf32>
    %113 = vector.extract_strided_slice %107 {offsets = [0, 0], sizes = [8, 128], strides = [1, 1]} : vector<8x384xf32> to vector<8x128xf32>
    %114 = arith.addf %112, %113 : vector<8x128xf32>
    %115 = arith.negf %114 : vector<8x128xf32>
    %116 = math.exp %115 : vector<8x128xf32>
    %cst_37 = arith.constant 1.000000e+00 : f32
    %117 = vector.broadcast %cst_37 : f32 to vector<8x128xf32>
    %118 = arith.addf %117, %116 : vector<8x128xf32>
    %119 = arith.divf %117, %118 : vector<8x128xf32>
    %120 = vector.extract_strided_slice %111 {offsets = [0, 128], sizes = [8, 128], strides = [1, 1]} : vector<8x384xf32> to vector<8x128xf32>
    %121 = vector.extract_strided_slice %107 {offsets = [0, 128], sizes = [8, 128], strides = [1, 1]} : vector<8x384xf32> to vector<8x128xf32>
    %122 = arith.addf %120, %121 : vector<8x128xf32>
    %123 = arith.negf %122 : vector<8x128xf32>
    %124 = math.exp %123 : vector<8x128xf32>
    %cst_38 = arith.constant 1.000000e+00 : f32
    %125 = vector.broadcast %cst_38 : f32 to vector<8x128xf32>
    %126 = arith.addf %125, %124 : vector<8x128xf32>
    %127 = arith.divf %125, %126 : vector<8x128xf32>
    %128 = vector.extract_strided_slice %111 {offsets = [0, 256], sizes = [8, 128], strides = [1, 1]} : vector<8x384xf32> to vector<8x128xf32>
    %129 = vector.extract_strided_slice %107 {offsets = [0, 256], sizes = [8, 128], strides = [1, 1]} : vector<8x384xf32> to vector<8x128xf32>
    %130 = arith.mulf %119, %129 : vector<8x128xf32>
    %131 = arith.addf %128, %130 : vector<8x128xf32>
    %132 = math.tanh %131 : vector<8x128xf32>
    %cst_39 = arith.constant 1.000000e+00 : f32
    %133 = vector.broadcast %cst_39 : f32 to vector<8x128xf32>
    %134 = arith.subf %133, %127 : vector<8x128xf32>
    %135 = arith.mulf %134, %132 : vector<8x128xf32>
    %136 = arith.mulf %127, %103 : vector<8x128xf32>
    %137 = arith.addf %135, %136 : vector<8x128xf32>
    %c0_40 = arith.constant 0 : index
    %c0_41 = arith.constant 0 : index
    %138 = vector.load %arg5[%c0_40, %c0_41] : memref<8x128xf32, #tpu.memory_space<vmem>>, vector<8x128xf32>
    tpu.vector_store %arg5[%c0_40, %c0_41], %137 {strides = array<i32>} : memref<8x128xf32, #tpu.memory_space<vmem>>, vector<8x128xf32>,
    %139 = vector.extract_strided_slice %137 {offsets = [0, 0], sizes = [8, 64], strides = [1, 1]} : vector<8x128xf32> to vector<8x64xf32>
    %140 = arith.index_cast %102 : i32 to index
    %c0_42 = arith.constant 0 : index
    %c0_43 = arith.constant 0 : index
    %141 = vector.load %arg4[%140, %c0_42, %c0_43] : memref<8x8x128xf32, #tpu.memory_space<vmem>>, vector<1x8x64xf32>
    %142 = vector.shape_cast %141 : vector<1x8x64xf32> to vector<8x64xf32>
    %143 = vector.shape_cast %139 : vector<8x64xf32> to vector<1x8x64xf32>
    tpu.vector_store %arg4[%140, %c0_42, %c0_43], %143 {strides = array<i32>} : memref<8x8x128xf32, #tpu.memory_space<vmem>>, vector<1x8x64xf32>,
    %144 = vector.extract_strided_slice %137 {offsets = [0, 64], sizes = [8, 64], strides = [1, 1]} : vector<8x128xf32> to vector<8x64xf32>
    %c7_i32_44 = arith.constant 7 : i32
    %145 = arith.subi %c7_i32_44, %102 : i32
    %146 = arith.index_cast %145 : i32 to index
    %c0_45 = arith.constant 0 : index
    %c64_46 = arith.constant 64 : index
    %147 = vector.load %arg4[%146, %c0_45, %c64_46] : memref<8x8x128xf32, #tpu.memory_space<vmem>>, vector<1x8x64xf32>
    %148 = vector.shape_cast %147 : vector<1x8x64xf32> to vector<8x64xf32>
    %149 = vector.shape_cast %144 : vector<8x64xf32> to vector<1x8x64xf32>
    tpu.vector_store %arg4[%146, %c0_45, %c64_46], %149 {strides = array<i32>} : memref<8x8x128xf32, #tpu.memory_space<vmem>>, vector<1x8x64xf32>,
    %c3_i32 = arith.constant 3 : i32
    %150 = arith.addi %0, %c3_i32 : i32
    %c0_47 = arith.constant 0 : index
    %c0_48 = arith.constant 0 : index
    %151 = vector.load %arg5[%c0_47, %c0_48] : memref<8x128xf32, #tpu.memory_space<vmem>>, vector<8x128xf32>
    %152 = arith.truncf %151 : vector<8x128xf32> to vector<8x128xbf16>
    %cst_49 = arith.constant dense<0.000000e+00> : vector<8x384xf32>
    %153 = tpu.matmul %152, %4, %cst_49 {dimension_numbers = #tpu.dot_dimension_numbers<[1], [0], [0], [1], [0, 0, 1, 1], [], []>} : vector<8x128xbf16>, vector<128x384xbf16>, vector<8x384xf32> -> vector<8x384xf32>
    %154 = vector.broadcast %5 : vector<1x384xf32> to vector<8x384xf32>
    %155 = arith.addf %153, %154 : vector<8x384xf32>
    %156 = arith.index_cast %c3_i32 : i32 to index
    %c0_50 = arith.constant 0 : index
    %c0_51 = arith.constant 0 : index
    %157 = vector.load %arg1[%156, %c0_50, %c0_51] : memref<8x8x384xbf16, #tpu.memory_space<vmem>>, vector<1x8x384xbf16>
    %158 = vector.shape_cast %157 : vector<1x8x384xbf16> to vector<8x384xbf16>
    %159 = arith.extf %158 : vector<8x384xbf16> to vector<8x384xf32>
    %160 = vector.extract_strided_slice %159 {offsets = [0, 0], sizes = [8, 128], strides = [1, 1]} : vector<8x384xf32> to vector<8x128xf32>
    %161 = vector.extract_strided_slice %155 {offsets = [0, 0], sizes = [8, 128], strides = [1, 1]} : vector<8x384xf32> to vector<8x128xf32>
    %162 = arith.addf %160, %161 : vector<8x128xf32>
    %163 = arith.negf %162 : vector<8x128xf32>
    %164 = math.exp %163 : vector<8x128xf32>
    %cst_52 = arith.constant 1.000000e+00 : f32
    %165 = vector.broadcast %cst_52 : f32 to vector<8x128xf32>
    %166 = arith.addf %165, %164 : vector<8x128xf32>
    %167 = arith.divf %165, %166 : vector<8x128xf32>
    %168 = vector.extract_strided_slice %159 {offsets = [0, 128], sizes = [8, 128], strides = [1, 1]} : vector<8x384xf32> to vector<8x128xf32>
    %169 = vector.extract_strided_slice %155 {offsets = [0, 128], sizes = [8, 128], strides = [1, 1]} : vector<8x384xf32> to vector<8x128xf32>
    %170 = arith.addf %168, %169 : vector<8x128xf32>
    %171 = arith.negf %170 : vector<8x128xf32>
    %172 = math.exp %171 : vector<8x128xf32>
    %cst_53 = arith.constant 1.000000e+00 : f32
    %173 = vector.broadcast %cst_53 : f32 to vector<8x128xf32>
    %174 = arith.addf %173, %172 : vector<8x128xf32>
    %175 = arith.divf %173, %174 : vector<8x128xf32>
    %176 = vector.extract_strided_slice %159 {offsets = [0, 256], sizes = [8, 128], strides = [1, 1]} : vector<8x384xf32> to vector<8x128xf32>
    %177 = vector.extract_strided_slice %155 {offsets = [0, 256], sizes = [8, 128], strides = [1, 1]} : vector<8x384xf32> to vector<8x128xf32>
    %178 = arith.mulf %167, %177 : vector<8x128xf32>
    %179 = arith.addf %176, %178 : vector<8x128xf32>
    %180 = math.tanh %179 : vector<8x128xf32>
    %cst_54 = arith.constant 1.000000e+00 : f32
    %181 = vector.broadcast %cst_54 : f32 to vector<8x128xf32>
    %182 = arith.subf %181, %175 : vector<8x128xf32>
    %183 = arith.mulf %182, %180 : vector<8x128xf32>
    %184 = arith.mulf %175, %151 : vector<8x128xf32>
    %185 = arith.addf %183, %184 : vector<8x128xf32>
    %c0_55 = arith.constant 0 : index
    %c0_56 = arith.constant 0 : index
    %186 = vector.load %arg5[%c0_55, %c0_56] : memref<8x128xf32, #tpu.memory_space<vmem>>, vector<8x128xf32>
    tpu.vector_store %arg5[%c0_55, %c0_56], %185 {strides = array<i32>} : memref<8x128xf32, #tpu.memory_space<vmem>>, vector<8x128xf32>,
    %187 = vector.extract_strided_slice %185 {offsets = [0, 0], sizes = [8, 64], strides = [1, 1]} : vector<8x128xf32> to vector<8x64xf32>
    %188 = arith.index_cast %150 : i32 to index
    %c0_57 = arith.constant 0 : index
    %c0_58 = arith.constant 0 : index
    %189 = vector.load %arg4[%188, %c0_57, %c0_58] : memref<8x8x128xf32, #tpu.memory_space<vmem>>, vector<1x8x64xf32>
    %190 = vector.shape_cast %189 : vector<1x8x64xf32> to vector<8x64xf32>
    %191 = vector.shape_cast %187 : vector<8x64xf32> to vector<1x8x64xf32>
    tpu.vector_store %arg4[%188, %c0_57, %c0_58], %191 {strides = array<i32>} : memref<8x8x128xf32, #tpu.memory_space<vmem>>, vector<1x8x64xf32>,
    %192 = vector.extract_strided_slice %185 {offsets = [0, 64], sizes = [8, 64], strides = [1, 1]} : vector<8x128xf32> to vector<8x64xf32>
    %c7_i32_59 = arith.constant 7 : i32
    %193 = arith.subi %c7_i32_59, %150 : i32
    %194 = arith.index_cast %193 : i32 to index
    %c0_60 = arith.constant 0 : index
    %c64_61 = arith.constant 64 : index
    %195 = vector.load %arg4[%194, %c0_60, %c64_61] : memref<8x8x128xf32, #tpu.memory_space<vmem>>, vector<1x8x64xf32>
    %196 = vector.shape_cast %195 : vector<1x8x64xf32> to vector<8x64xf32>
    %197 = vector.shape_cast %192 : vector<8x64xf32> to vector<1x8x64xf32>
    tpu.vector_store %arg4[%194, %c0_60, %c64_61], %197 {strides = array<i32>} : memref<8x8x128xf32, #tpu.memory_space<vmem>>, vector<1x8x64xf32>,
    %c4_i32 = arith.constant 4 : i32
    %198 = arith.addi %0, %c4_i32 : i32
    %c0_62 = arith.constant 0 : index
    %c0_63 = arith.constant 0 : index
    %199 = vector.load %arg5[%c0_62, %c0_63] : memref<8x128xf32, #tpu.memory_space<vmem>>, vector<8x128xf32>
    %200 = arith.truncf %199 : vector<8x128xf32> to vector<8x128xbf16>
    %cst_64 = arith.constant dense<0.000000e+00> : vector<8x384xf32>
    %201 = tpu.matmul %200, %4, %cst_64 {dimension_numbers = #tpu.dot_dimension_numbers<[1], [0], [0], [1], [0, 0, 1, 1], [], []>} : vector<8x128xbf16>, vector<128x384xbf16>, vector<8x384xf32> -> vector<8x384xf32>
    %202 = vector.broadcast %5 : vector<1x384xf32> to vector<8x384xf32>
    %203 = arith.addf %201, %202 : vector<8x384xf32>
    %204 = arith.index_cast %c4_i32 : i32 to index
    %c0_65 = arith.constant 0 : index
    %c0_66 = arith.constant 0 : index
    %205 = vector.load %arg1[%204, %c0_65, %c0_66] : memref<8x8x384xbf16, #tpu.memory_space<vmem>>, vector<1x8x384xbf16>
    %206 = vector.shape_cast %205 : vector<1x8x384xbf16> to vector<8x384xbf16>
    %207 = arith.extf %206 : vector<8x384xbf16> to vector<8x384xf32>
    %208 = vector.extract_strided_slice %207 {offsets = [0, 0], sizes = [8, 128], strides = [1, 1]} : vector<8x384xf32> to vector<8x128xf32>
    %209 = vector.extract_strided_slice %203 {offsets = [0, 0], sizes = [8, 128], strides = [1, 1]} : vector<8x384xf32> to vector<8x128xf32>
    %210 = arith.addf %208, %209 : vector<8x128xf32>
    %211 = arith.negf %210 : vector<8x128xf32>
    %212 = math.exp %211 : vector<8x128xf32>
    %cst_67 = arith.constant 1.000000e+00 : f32
    %213 = vector.broadcast %cst_67 : f32 to vector<8x128xf32>
    %214 = arith.addf %213, %212 : vector<8x128xf32>
    %215 = arith.divf %213, %214 : vector<8x128xf32>
    %216 = vector.extract_strided_slice %207 {offsets = [0, 128], sizes = [8, 128], strides = [1, 1]} : vector<8x384xf32> to vector<8x128xf32>
    %217 = vector.extract_strided_slice %203 {offsets = [0, 128], sizes = [8, 128], strides = [1, 1]} : vector<8x384xf32> to vector<8x128xf32>
    %218 = arith.addf %216, %217 : vector<8x128xf32>
    %219 = arith.negf %218 : vector<8x128xf32>
    %220 = math.exp %219 : vector<8x128xf32>
    %cst_68 = arith.constant 1.000000e+00 : f32
    %221 = vector.broadcast %cst_68 : f32 to vector<8x128xf32>
    %222 = arith.addf %221, %220 : vector<8x128xf32>
    %223 = arith.divf %221, %222 : vector<8x128xf32>
    %224 = vector.extract_strided_slice %207 {offsets = [0, 256], sizes = [8, 128], strides = [1, 1]} : vector<8x384xf32> to vector<8x128xf32>
    %225 = vector.extract_strided_slice %203 {offsets = [0, 256], sizes = [8, 128], strides = [1, 1]} : vector<8x384xf32> to vector<8x128xf32>
    %226 = arith.mulf %215, %225 : vector<8x128xf32>
    %227 = arith.addf %224, %226 : vector<8x128xf32>
    %228 = math.tanh %227 : vector<8x128xf32>
    %cst_69 = arith.constant 1.000000e+00 : f32
    %229 = vector.broadcast %cst_69 : f32 to vector<8x128xf32>
    %230 = arith.subf %229, %223 : vector<8x128xf32>
    %231 = arith.mulf %230, %228 : vector<8x128xf32>
    %232 = arith.mulf %223, %199 : vector<8x128xf32>
    %233 = arith.addf %231, %232 : vector<8x128xf32>
    %c0_70 = arith.constant 0 : index
    %c0_71 = arith.constant 0 : index
    %234 = vector.load %arg5[%c0_70, %c0_71] : memref<8x128xf32, #tpu.memory_space<vmem>>, vector<8x128xf32>
    tpu.vector_store %arg5[%c0_70, %c0_71], %233 {strides = array<i32>} : memref<8x128xf32, #tpu.memory_space<vmem>>, vector<8x128xf32>,
    %235 = vector.extract_strided_slice %233 {offsets = [0, 0], sizes = [8, 64], strides = [1, 1]} : vector<8x128xf32> to vector<8x64xf32>
    %236 = arith.index_cast %198 : i32 to index
    %c0_72 = arith.constant 0 : index
    %c0_73 = arith.constant 0 : index
    %237 = vector.load %arg4[%236, %c0_72, %c0_73] : memref<8x8x128xf32, #tpu.memory_space<vmem>>, vector<1x8x64xf32>
    %238 = vector.shape_cast %237 : vector<1x8x64xf32> to vector<8x64xf32>
    %239 = vector.shape_cast %235 : vector<8x64xf32> to vector<1x8x64xf32>
    tpu.vector_store %arg4[%236, %c0_72, %c0_73], %239 {strides = array<i32>} : memref<8x8x128xf32, #tpu.memory_space<vmem>>, vector<1x8x64xf32>,
    %240 = vector.extract_strided_slice %233 {offsets = [0, 64], sizes = [8, 64], strides = [1, 1]} : vector<8x128xf32> to vector<8x64xf32>
    %c7_i32_74 = arith.constant 7 : i32
    %241 = arith.subi %c7_i32_74, %198 : i32
    %242 = arith.index_cast %241 : i32 to index
    %c0_75 = arith.constant 0 : index
    %c64_76 = arith.constant 64 : index
    %243 = vector.load %arg4[%242, %c0_75, %c64_76] : memref<8x8x128xf32, #tpu.memory_space<vmem>>, vector<1x8x64xf32>
    %244 = vector.shape_cast %243 : vector<1x8x64xf32> to vector<8x64xf32>
    %245 = vector.shape_cast %240 : vector<8x64xf32> to vector<1x8x64xf32>
    tpu.vector_store %arg4[%242, %c0_75, %c64_76], %245 {strides = array<i32>} : memref<8x8x128xf32, #tpu.memory_space<vmem>>, vector<1x8x64xf32>,
    %c5_i32 = arith.constant 5 : i32
    %246 = arith.addi %0, %c5_i32 : i32
    %c0_77 = arith.constant 0 : index
    %c0_78 = arith.constant 0 : index
    %247 = vector.load %arg5[%c0_77, %c0_78] : memref<8x128xf32, #tpu.memory_space<vmem>>, vector<8x128xf32>
    %248 = arith.truncf %247 : vector<8x128xf32> to vector<8x128xbf16>
    %cst_79 = arith.constant dense<0.000000e+00> : vector<8x384xf32>
    %249 = tpu.matmul %248, %4, %cst_79 {dimension_numbers = #tpu.dot_dimension_numbers<[1], [0], [0], [1], [0, 0, 1, 1], [], []>} : vector<8x128xbf16>, vector<128x384xbf16>, vector<8x384xf32> -> vector<8x384xf32>
    %250 = vector.broadcast %5 : vector<1x384xf32> to vector<8x384xf32>
    %251 = arith.addf %249, %250 : vector<8x384xf32>
    %252 = arith.index_cast %c5_i32 : i32 to index
    %c0_80 = arith.constant 0 : index
    %c0_81 = arith.constant 0 : index
    %253 = vector.load %arg1[%252, %c0_80, %c0_81] : memref<8x8x384xbf16, #tpu.memory_space<vmem>>, vector<1x8x384xbf16>
    %254 = vector.shape_cast %253 : vector<1x8x384xbf16> to vector<8x384xbf16>
    %255 = arith.extf %254 : vector<8x384xbf16> to vector<8x384xf32>
    %256 = vector.extract_strided_slice %255 {offsets = [0, 0], sizes = [8, 128], strides = [1, 1]} : vector<8x384xf32> to vector<8x128xf32>
    %257 = vector.extract_strided_slice %251 {offsets = [0, 0], sizes = [8, 128], strides = [1, 1]} : vector<8x384xf32> to vector<8x128xf32>
    %258 = arith.addf %256, %257 : vector<8x128xf32>
    %259 = arith.negf %258 : vector<8x128xf32>
    %260 = math.exp %259 : vector<8x128xf32>
    %cst_82 = arith.constant 1.000000e+00 : f32
    %261 = vector.broadcast %cst_82 : f32 to vector<8x128xf32>
    %262 = arith.addf %261, %260 : vector<8x128xf32>
    %263 = arith.divf %261, %262 : vector<8x128xf32>
    %264 = vector.extract_strided_slice %255 {offsets = [0, 128], sizes = [8, 128], strides = [1, 1]} : vector<8x384xf32> to vector<8x128xf32>
    %265 = vector.extract_strided_slice %251 {offsets = [0, 128], sizes = [8, 128], strides = [1, 1]} : vector<8x384xf32> to vector<8x128xf32>
    %266 = arith.addf %264, %265 : vector<8x128xf32>
    %267 = arith.negf %266 : vector<8x128xf32>
    %268 = math.exp %267 : vector<8x128xf32>
    %cst_83 = arith.constant 1.000000e+00 : f32
    %269 = vector.broadcast %cst_83 : f32 to vector<8x128xf32>
    %270 = arith.addf %269, %268 : vector<8x128xf32>
    %271 = arith.divf %269, %270 : vector<8x128xf32>
    %272 = vector.extract_strided_slice %255 {offsets = [0, 256], sizes = [8, 128], strides = [1, 1]} : vector<8x384xf32> to vector<8x128xf32>
    %273 = vector.extract_strided_slice %251 {offsets = [0, 256], sizes = [8, 128], strides = [1, 1]} : vector<8x384xf32> to vector<8x128xf32>
    %274 = arith.mulf %263, %273 : vector<8x128xf32>
    %275 = arith.addf %272, %274 : vector<8x128xf32>
    %276 = math.tanh %275 : vector<8x128xf32>
    %cst_84 = arith.constant 1.000000e+00 : f32
    %277 = vector.broadcast %cst_84 : f32 to vector<8x128xf32>
    %278 = arith.subf %277, %271 : vector<8x128xf32>
    %279 = arith.mulf %278, %276 : vector<8x128xf32>
    %280 = arith.mulf %271, %247 : vector<8x128xf32>
    %281 = arith.addf %279, %280 : vector<8x128xf32>
    %c0_85 = arith.constant 0 : index
    %c0_86 = arith.constant 0 : index
    %282 = vector.load %arg5[%c0_85, %c0_86] : memref<8x128xf32, #tpu.memory_space<vmem>>, vector<8x128xf32>
    tpu.vector_store %arg5[%c0_85, %c0_86], %281 {strides = array<i32>} : memref<8x128xf32, #tpu.memory_space<vmem>>, vector<8x128xf32>,
    %283 = vector.extract_strided_slice %281 {offsets = [0, 0], sizes = [8, 64], strides = [1, 1]} : vector<8x128xf32> to vector<8x64xf32>
    %284 = arith.index_cast %246 : i32 to index
    %c0_87 = arith.constant 0 : index
    %c0_88 = arith.constant 0 : index
    %285 = vector.load %arg4[%284, %c0_87, %c0_88] : memref<8x8x128xf32, #tpu.memory_space<vmem>>, vector<1x8x64xf32>
    %286 = vector.shape_cast %285 : vector<1x8x64xf32> to vector<8x64xf32>
    %287 = vector.shape_cast %283 : vector<8x64xf32> to vector<1x8x64xf32>
    tpu.vector_store %arg4[%284, %c0_87, %c0_88], %287 {strides = array<i32>} : memref<8x8x128xf32, #tpu.memory_space<vmem>>, vector<1x8x64xf32>,
    %288 = vector.extract_strided_slice %281 {offsets = [0, 64], sizes = [8, 64], strides = [1, 1]} : vector<8x128xf32> to vector<8x64xf32>
    %c7_i32_89 = arith.constant 7 : i32
    %289 = arith.subi %c7_i32_89, %246 : i32
    %290 = arith.index_cast %289 : i32 to index
    %c0_90 = arith.constant 0 : index
    %c64_91 = arith.constant 64 : index
    %291 = vector.load %arg4[%290, %c0_90, %c64_91] : memref<8x8x128xf32, #tpu.memory_space<vmem>>, vector<1x8x64xf32>
    %292 = vector.shape_cast %291 : vector<1x8x64xf32> to vector<8x64xf32>
    %293 = vector.shape_cast %288 : vector<8x64xf32> to vector<1x8x64xf32>
    tpu.vector_store %arg4[%290, %c0_90, %c64_91], %293 {strides = array<i32>} : memref<8x8x128xf32, #tpu.memory_space<vmem>>, vector<1x8x64xf32>,
    %c6_i32 = arith.constant 6 : i32
    %294 = arith.addi %0, %c6_i32 : i32
    %c0_92 = arith.constant 0 : index
    %c0_93 = arith.constant 0 : index
    %295 = vector.load %arg5[%c0_92, %c0_93] : memref<8x128xf32, #tpu.memory_space<vmem>>, vector<8x128xf32>
    %296 = arith.truncf %295 : vector<8x128xf32> to vector<8x128xbf16>
    %cst_94 = arith.constant dense<0.000000e+00> : vector<8x384xf32>
    %297 = tpu.matmul %296, %4, %cst_94 {dimension_numbers = #tpu.dot_dimension_numbers<[1], [0], [0], [1], [0, 0, 1, 1], [], []>} : vector<8x128xbf16>, vector<128x384xbf16>, vector<8x384xf32> -> vector<8x384xf32>
    %298 = vector.broadcast %5 : vector<1x384xf32> to vector<8x384xf32>
    %299 = arith.addf %297, %298 : vector<8x384xf32>
    %300 = arith.index_cast %c6_i32 : i32 to index
    %c0_95 = arith.constant 0 : index
    %c0_96 = arith.constant 0 : index
    %301 = vector.load %arg1[%300, %c0_95, %c0_96] : memref<8x8x384xbf16, #tpu.memory_space<vmem>>, vector<1x8x384xbf16>
    %302 = vector.shape_cast %301 : vector<1x8x384xbf16> to vector<8x384xbf16>
    %303 = arith.extf %302 : vector<8x384xbf16> to vector<8x384xf32>
    %304 = vector.extract_strided_slice %303 {offsets = [0, 0], sizes = [8, 128], strides = [1, 1]} : vector<8x384xf32> to vector<8x128xf32>
    %305 = vector.extract_strided_slice %299 {offsets = [0, 0], sizes = [8, 128], strides = [1, 1]} : vector<8x384xf32> to vector<8x128xf32>
    %306 = arith.addf %304, %305 : vector<8x128xf32>
    %307 = arith.negf %306 : vector<8x128xf32>
    %308 = math.exp %307 : vector<8x128xf32>
    %cst_97 = arith.constant 1.000000e+00 : f32
    %309 = vector.broadcast %cst_97 : f32 to vector<8x128xf32>
    %310 = arith.addf %309, %308 : vector<8x128xf32>
    %311 = arith.divf %309, %310 : vector<8x128xf32>
    %312 = vector.extract_strided_slice %303 {offsets = [0, 128], sizes = [8, 128], strides = [1, 1]} : vector<8x384xf32> to vector<8x128xf32>
    %313 = vector.extract_strided_slice %299 {offsets = [0, 128], sizes = [8, 128], strides = [1, 1]} : vector<8x384xf32> to vector<8x128xf32>
    %314 = arith.addf %312, %313 : vector<8x128xf32>
    %315 = arith.negf %314 : vector<8x128xf32>
    %316 = math.exp %315 : vector<8x128xf32>
    %cst_98 = arith.constant 1.000000e+00 : f32
    %317 = vector.broadcast %cst_98 : f32 to vector<8x128xf32>
    %318 = arith.addf %317, %316 : vector<8x128xf32>
    %319 = arith.divf %317, %318 : vector<8x128xf32>
    %320 = vector.extract_strided_slice %303 {offsets = [0, 256], sizes = [8, 128], strides = [1, 1]} : vector<8x384xf32> to vector<8x128xf32>
    %321 = vector.extract_strided_slice %299 {offsets = [0, 256], sizes = [8, 128], strides = [1, 1]} : vector<8x384xf32> to vector<8x128xf32>
    %322 = arith.mulf %311, %321 : vector<8x128xf32>
    %323 = arith.addf %320, %322 : vector<8x128xf32>
    %324 = math.tanh %323 : vector<8x128xf32>
    %cst_99 = arith.constant 1.000000e+00 : f32
    %325 = vector.broadcast %cst_99 : f32 to vector<8x128xf32>
    %326 = arith.subf %325, %319 : vector<8x128xf32>
    %327 = arith.mulf %326, %324 : vector<8x128xf32>
    %328 = arith.mulf %319, %295 : vector<8x128xf32>
    %329 = arith.addf %327, %328 : vector<8x128xf32>
    %c0_100 = arith.constant 0 : index
    %c0_101 = arith.constant 0 : index
    %330 = vector.load %arg5[%c0_100, %c0_101] : memref<8x128xf32, #tpu.memory_space<vmem>>, vector<8x128xf32>
    tpu.vector_store %arg5[%c0_100, %c0_101], %329 {strides = array<i32>} : memref<8x128xf32, #tpu.memory_space<vmem>>, vector<8x128xf32>,
    %331 = vector.extract_strided_slice %329 {offsets = [0, 0], sizes = [8, 64], strides = [1, 1]} : vector<8x128xf32> to vector<8x64xf32>
    %332 = arith.index_cast %294 : i32 to index
    %c0_102 = arith.constant 0 : index
    %c0_103 = arith.constant 0 : index
    %333 = vector.load %arg4[%332, %c0_102, %c0_103] : memref<8x8x128xf32, #tpu.memory_space<vmem>>, vector<1x8x64xf32>
    %334 = vector.shape_cast %333 : vector<1x8x64xf32> to vector<8x64xf32>
    %335 = vector.shape_cast %331 : vector<8x64xf32> to vector<1x8x64xf32>
    tpu.vector_store %arg4[%332, %c0_102, %c0_103], %335 {strides = array<i32>} : memref<8x8x128xf32, #tpu.memory_space<vmem>>, vector<1x8x64xf32>,
    %336 = vector.extract_strided_slice %329 {offsets = [0, 64], sizes = [8, 64], strides = [1, 1]} : vector<8x128xf32> to vector<8x64xf32>
    %c7_i32_104 = arith.constant 7 : i32
    %337 = arith.subi %c7_i32_104, %294 : i32
    %338 = arith.index_cast %337 : i32 to index
    %c0_105 = arith.constant 0 : index
    %c64_106 = arith.constant 64 : index
    %339 = vector.load %arg4[%338, %c0_105, %c64_106] : memref<8x8x128xf32, #tpu.memory_space<vmem>>, vector<1x8x64xf32>
    %340 = vector.shape_cast %339 : vector<1x8x64xf32> to vector<8x64xf32>
    %341 = vector.shape_cast %336 : vector<8x64xf32> to vector<1x8x64xf32>
    tpu.vector_store %arg4[%338, %c0_105, %c64_106], %341 {strides = array<i32>} : memref<8x8x128xf32, #tpu.memory_space<vmem>>, vector<1x8x64xf32>,
    %c7_i32_107 = arith.constant 7 : i32
    %342 = arith.addi %0, %c7_i32_107 : i32
    %c0_108 = arith.constant 0 : index
    %c0_109 = arith.constant 0 : index
    %343 = vector.load %arg5[%c0_108, %c0_109] : memref<8x128xf32, #tpu.memory_space<vmem>>, vector<8x128xf32>
    %344 = arith.truncf %343 : vector<8x128xf32> to vector<8x128xbf16>
    %cst_110 = arith.constant dense<0.000000e+00> : vector<8x384xf32>
    %345 = tpu.matmul %344, %4, %cst_110 {dimension_numbers = #tpu.dot_dimension_numbers<[1], [0], [0], [1], [0, 0, 1, 1], [], []>} : vector<8x128xbf16>, vector<128x384xbf16>, vector<8x384xf32> -> vector<8x384xf32>
    %346 = vector.broadcast %5 : vector<1x384xf32> to vector<8x384xf32>
    %347 = arith.addf %345, %346 : vector<8x384xf32>
    %348 = arith.index_cast %c7_i32_107 : i32 to index
    %c0_111 = arith.constant 0 : index
    %c0_112 = arith.constant 0 : index
    %349 = vector.load %arg1[%348, %c0_111, %c0_112] : memref<8x8x384xbf16, #tpu.memory_space<vmem>>, vector<1x8x384xbf16>
    %350 = vector.shape_cast %349 : vector<1x8x384xbf16> to vector<8x384xbf16>
    %351 = arith.extf %350 : vector<8x384xbf16> to vector<8x384xf32>
    %352 = vector.extract_strided_slice %351 {offsets = [0, 0], sizes = [8, 128], strides = [1, 1]} : vector<8x384xf32> to vector<8x128xf32>
    %353 = vector.extract_strided_slice %347 {offsets = [0, 0], sizes = [8, 128], strides = [1, 1]} : vector<8x384xf32> to vector<8x128xf32>
    %354 = arith.addf %352, %353 : vector<8x128xf32>
    %355 = arith.negf %354 : vector<8x128xf32>
    %356 = math.exp %355 : vector<8x128xf32>
    %cst_113 = arith.constant 1.000000e+00 : f32
    %357 = vector.broadcast %cst_113 : f32 to vector<8x128xf32>
    %358 = arith.addf %357, %356 : vector<8x128xf32>
    %359 = arith.divf %357, %358 : vector<8x128xf32>
    %360 = vector.extract_strided_slice %351 {offsets = [0, 128], sizes = [8, 128], strides = [1, 1]} : vector<8x384xf32> to vector<8x128xf32>
    %361 = vector.extract_strided_slice %347 {offsets = [0, 128], sizes = [8, 128], strides = [1, 1]} : vector<8x384xf32> to vector<8x128xf32>
    %362 = arith.addf %360, %361 : vector<8x128xf32>
    %363 = arith.negf %362 : vector<8x128xf32>
    %364 = math.exp %363 : vector<8x128xf32>
    %cst_114 = arith.constant 1.000000e+00 : f32
    %365 = vector.broadcast %cst_114 : f32 to vector<8x128xf32>
    %366 = arith.addf %365, %364 : vector<8x128xf32>
    %367 = arith.divf %365, %366 : vector<8x128xf32>
    %368 = vector.extract_strided_slice %351 {offsets = [0, 256], sizes = [8, 128], strides = [1, 1]} : vector<8x384xf32> to vector<8x128xf32>
    %369 = vector.extract_strided_slice %347 {offsets = [0, 256], sizes = [8, 128], strides = [1, 1]} : vector<8x384xf32> to vector<8x128xf32>
    %370 = arith.mulf %359, %369 : vector<8x128xf32>
    %371 = arith.addf %368, %370 : vector<8x128xf32>
    %372 = math.tanh %371 : vector<8x128xf32>
    %cst_115 = arith.constant 1.000000e+00 : f32
    %373 = vector.broadcast %cst_115 : f32 to vector<8x128xf32>
    %374 = arith.subf %373, %367 : vector<8x128xf32>
    %375 = arith.mulf %374, %372 : vector<8x128xf32>
    %376 = arith.mulf %367, %343 : vector<8x128xf32>
    %377 = arith.addf %375, %376 : vector<8x128xf32>
    %c0_116 = arith.constant 0 : index
    %c0_117 = arith.constant 0 : index
    %378 = vector.load %arg5[%c0_116, %c0_117] : memref<8x128xf32, #tpu.memory_space<vmem>>, vector<8x128xf32>
    tpu.vector_store %arg5[%c0_116, %c0_117], %377 {strides = array<i32>} : memref<8x128xf32, #tpu.memory_space<vmem>>, vector<8x128xf32>,
    %379 = vector.extract_strided_slice %377 {offsets = [0, 0], sizes = [8, 64], strides = [1, 1]} : vector<8x128xf32> to vector<8x64xf32>
    %380 = arith.index_cast %342 : i32 to index
    %c0_118 = arith.constant 0 : index
    %c0_119 = arith.constant 0 : index
    %381 = vector.load %arg4[%380, %c0_118, %c0_119] : memref<8x8x128xf32, #tpu.memory_space<vmem>>, vector<1x8x64xf32>
    %382 = vector.shape_cast %381 : vector<1x8x64xf32> to vector<8x64xf32>
    %383 = vector.shape_cast %379 : vector<8x64xf32> to vector<1x8x64xf32>
    tpu.vector_store %arg4[%380, %c0_118, %c0_119], %383 {strides = array<i32>} : memref<8x8x128xf32, #tpu.memory_space<vmem>>, vector<1x8x64xf32>,
    %384 = vector.extract_strided_slice %377 {offsets = [0, 64], sizes = [8, 64], strides = [1, 1]} : vector<8x128xf32> to vector<8x64xf32>
    %c7_i32_120 = arith.constant 7 : i32
    %385 = arith.subi %c7_i32_120, %342 : i32
    %386 = arith.index_cast %385 : i32 to index
    %c0_121 = arith.constant 0 : index
    %c64_122 = arith.constant 64 : index
    %387 = vector.load %arg4[%386, %c0_121, %c64_122] : memref<8x8x128xf32, #tpu.memory_space<vmem>>, vector<1x8x64xf32>
    %388 = vector.shape_cast %387 : vector<1x8x64xf32> to vector<8x64xf32>
    %389 = vector.shape_cast %384 : vector<8x64xf32> to vector<1x8x64xf32>
    tpu.vector_store %arg4[%386, %c0_121, %c64_122], %389 {strides = array<i32>} : memref<8x8x128xf32, #tpu.memory_space<vmem>>, vector<1x8x64xf32>,
    %c8_i32_123 = arith.constant 8 : i32
    return
  }
  func.func @transform_0(%arg0: i32) -> (i32, i32, i32) {
    %c0_i32 = arith.constant 0 : i32
    %c0_i32_0 = arith.constant 0 : i32
    %c0_i32_1 = arith.constant 0 : i32
    return %arg0, %c0_i32, %c0_i32_0 : i32, i32, i32
  }
  func.func @transform_1(%arg0: i32) -> (i32, i32) {
    %c0_i32 = arith.constant 0 : i32
    %c0_i32_0 = arith.constant 0 : i32
    %c0_i32_1 = arith.constant 0 : i32
    return %c0_i32, %c0_i32_0 : i32, i32
  }
  func.func @transform_2(%arg0: i32) -> (i32, i32) {
    %c0_i32 = arith.constant 0 : i32
    %c0_i32_0 = arith.constant 0 : i32
    %c0_i32_1 = arith.constant 0 : i32
    return %c0_i32, %c0_i32_0 : i32, i32
  }
  func.func @transform_3(%arg0: i32) -> (i32, i32, i32) {
    %c0_i32 = arith.constant 0 : i32
    %c0_i32_0 = arith.constant 0 : i32
    %c0_i32_1 = arith.constant 0 : i32
    %c0_i32_2 = arith.constant 0 : i32
    return %c0_i32, %c0_i32_0, %c0_i32_1 : i32, i32, i32
  }
}

module attributes {stable_mosaic.version = 11 : i64} {
  func.func @_ffn_res_ln_kernel(%arg0: i32, %arg1: memref<8x128xbf16, #tpu.memory_space<vmem>>, %arg2: memref<128x256xbf16, #tpu.memory_space<vmem>>, %arg3: memref<1x256xf32, #tpu.memory_space<vmem>>, %arg4: memref<256x128xbf16, #tpu.memory_space<vmem>>, %arg5: memref<1x128xf32, #tpu.memory_space<vmem>>, %arg6: memref<1x128xf32, #tpu.memory_space<vmem>>, %arg7: memref<1x128xf32, #tpu.memory_space<vmem>>, %arg8: memref<8x128xbf16, #tpu.memory_space<vmem>>) attributes {dimension_semantics = [#tpu.dimension_semantics<parallel>], iteration_bounds = array<i64: 2>, scalar_prefetch = 0 : i64, scratch_operands = 0 : i64, tpu.core_type = #tpu.core_type<tc>, window_params = [{transform_indices = @transform_0, window_bounds = array<i64: 8, 128>}, {pipeline_mode = #tpu.pipeline_mode<synchronous>, transform_indices = @transform_1, window_bounds = array<i64: 128, 256>}, {pipeline_mode = #tpu.pipeline_mode<synchronous>, transform_indices = @transform_2, window_bounds = array<i64: 1, 256>}, {pipeline_mode = #tpu.pipeline_mode<synchronous>, transform_indices = @transform_3, window_bounds = array<i64: 256, 128>}, {pipeline_mode = #tpu.pipeline_mode<synchronous>, transform_indices = @transform_4, window_bounds = array<i64: 1, 128>}, {pipeline_mode = #tpu.pipeline_mode<synchronous>, transform_indices = @transform_5, window_bounds = array<i64: 1, 128>}, {pipeline_mode = #tpu.pipeline_mode<synchronous>, transform_indices = @transform_6, window_bounds = array<i64: 1, 128>}, {transform_indices = @transform_7, window_bounds = array<i64: 8, 128>}]} {
    %c0 = arith.constant 0 : index
    %c0_0 = arith.constant 0 : index
    %0 = vector.load %arg1[%c0, %c0_0] : memref<8x128xbf16, #tpu.memory_space<vmem>>, vector<8x128xbf16>
    %c0_1 = arith.constant 0 : index
    %c0_2 = arith.constant 0 : index
    %1 = vector.load %arg2[%c0_1, %c0_2] : memref<128x256xbf16, #tpu.memory_space<vmem>>, vector<128x256xbf16>
    %cst = arith.constant dense<0.000000e+00> : vector<8x256xf32>
    %2 = tpu.matmul %0, %1, %cst {dimension_numbers = #tpu.dot_dimension_numbers<[1], [0], [0], [1], [0, 0, 1, 1], [], []>} : vector<8x128xbf16>, vector<128x256xbf16>, vector<8x256xf32> -> vector<8x256xf32>
    %c0_3 = arith.constant 0 : index
    %c0_4 = arith.constant 0 : index
    %3 = vector.load %arg3[%c0_3, %c0_4] : memref<1x256xf32, #tpu.memory_space<vmem>>, vector<1x256xf32>
    %4 = vector.broadcast %3 : vector<1x256xf32> to vector<8x256xf32>
    %5 = arith.addf %2, %4 : vector<8x256xf32>
    %cst_5 = arith.constant 0.000000e+00 : f32
    %6 = vector.broadcast %cst_5 : f32 to vector<8x256xf32>
    %7 = arith.maximumf %5, %6 : vector<8x256xf32>
    %8 = arith.truncf %7 : vector<8x256xf32> to vector<8x256xbf16>
    %c0_6 = arith.constant 0 : index
    %c0_7 = arith.constant 0 : index
    %9 = vector.load %arg4[%c0_6, %c0_7] : memref<256x128xbf16, #tpu.memory_space<vmem>>, vector<256x128xbf16>
    %cst_8 = arith.constant dense<0.000000e+00> : vector<8x128xf32>
    %10 = tpu.matmul %8, %9, %cst_8 {dimension_numbers = #tpu.dot_dimension_numbers<[1], [0], [0], [1], [0, 0, 1, 1], [], []>} : vector<8x256xbf16>, vector<256x128xbf16>, vector<8x128xf32> -> vector<8x128xf32>
    %c0_9 = arith.constant 0 : index
    %c0_10 = arith.constant 0 : index
    %11 = vector.load %arg5[%c0_9, %c0_10] : memref<1x128xf32, #tpu.memory_space<vmem>>, vector<1x128xf32>
    %12 = vector.broadcast %11 : vector<1x128xf32> to vector<8x128xf32>
    %13 = arith.addf %10, %12 : vector<8x128xf32>
    %14 = arith.extf %0 : vector<8x128xbf16> to vector<8x128xf32>
    %15 = arith.addf %13, %14 : vector<8x128xf32>
    %cst_11 = arith.constant dense<0.000000e+00> : vector<8xf32>
    %16 = vector.multi_reduction <add>, %15, %cst_11 [1] : vector<8x128xf32> to vector<8xf32>
    %17 = vector.shape_cast %16 : vector<8xf32> to vector<8x1xf32>
    %cst_12 = arith.constant 1.280000e+02 : f32
    %18 = vector.broadcast %cst_12 : f32 to vector<8x1xf32>
    %19 = arith.divf %17, %18 : vector<8x1xf32>
    %20 = vector.broadcast %19 : vector<8x1xf32> to vector<8x128xf32>
    %21 = arith.subf %15, %20 : vector<8x128xf32>
    %22 = arith.mulf %21, %21 : vector<8x128xf32>
    %cst_13 = arith.constant dense<0.000000e+00> : vector<8xf32>
    %23 = vector.multi_reduction <add>, %22, %cst_13 [1] : vector<8x128xf32> to vector<8xf32>
    %24 = vector.shape_cast %23 : vector<8xf32> to vector<8x1xf32>
    %cst_14 = arith.constant 1.280000e+02 : f32
    %25 = vector.broadcast %cst_14 : f32 to vector<8x1xf32>
    %26 = arith.divf %24, %25 : vector<8x1xf32>
    %27 = vector.broadcast %19 : vector<8x1xf32> to vector<8x128xf32>
    %28 = arith.subf %15, %27 : vector<8x128xf32>
    %cst_15 = arith.constant 9.99999974E-6 : f32
    %29 = vector.broadcast %cst_15 : f32 to vector<8x1xf32>
    %30 = arith.addf %26, %29 : vector<8x1xf32>
    %31 = math.rsqrt %30 : vector<8x1xf32>
    %32 = vector.broadcast %31 : vector<8x1xf32> to vector<8x128xf32>
    %33 = arith.mulf %28, %32 : vector<8x128xf32>
    %c0_16 = arith.constant 0 : index
    %c0_17 = arith.constant 0 : index
    %34 = vector.load %arg6[%c0_16, %c0_17] : memref<1x128xf32, #tpu.memory_space<vmem>>, vector<1x128xf32>
    %35 = vector.broadcast %34 : vector<1x128xf32> to vector<8x128xf32>
    %36 = arith.mulf %33, %35 : vector<8x128xf32>
    %c0_18 = arith.constant 0 : index
    %c0_19 = arith.constant 0 : index
    %37 = vector.load %arg7[%c0_18, %c0_19] : memref<1x128xf32, #tpu.memory_space<vmem>>, vector<1x128xf32>
    %38 = vector.broadcast %37 : vector<1x128xf32> to vector<8x128xf32>
    %39 = arith.addf %36, %38 : vector<8x128xf32>
    %40 = arith.truncf %39 : vector<8x128xf32> to vector<8x128xbf16>
    %c0_20 = arith.constant 0 : index
    %c0_21 = arith.constant 0 : index
    %41 = vector.load %arg8[%c0_20, %c0_21] : memref<8x128xbf16, #tpu.memory_space<vmem>>, vector<8x128xbf16>
    tpu.vector_store %arg8[%c0_20, %c0_21], %40 {strides = array<i32>} : memref<8x128xbf16, #tpu.memory_space<vmem>>, vector<8x128xbf16>,
    return
  }
  func.func @transform_0(%arg0: i32) -> (i32, i32) {
    %c0_i32 = arith.constant 0 : i32
    %c0_i32_0 = arith.constant 0 : i32
    return %arg0, %c0_i32 : i32, i32
  }
  func.func @transform_1(%arg0: i32) -> (i32, i32) {
    %c0_i32 = arith.constant 0 : i32
    %c0_i32_0 = arith.constant 0 : i32
    %c0_i32_1 = arith.constant 0 : i32
    return %c0_i32, %c0_i32_0 : i32, i32
  }
  func.func @transform_2(%arg0: i32) -> (i32, i32) {
    %c0_i32 = arith.constant 0 : i32
    %c0_i32_0 = arith.constant 0 : i32
    %c0_i32_1 = arith.constant 0 : i32
    return %c0_i32, %c0_i32_0 : i32, i32
  }
  func.func @transform_3(%arg0: i32) -> (i32, i32) {
    %c0_i32 = arith.constant 0 : i32
    %c0_i32_0 = arith.constant 0 : i32
    %c0_i32_1 = arith.constant 0 : i32
    return %c0_i32, %c0_i32_0 : i32, i32
  }
  func.func @transform_4(%arg0: i32) -> (i32, i32) {
    %c0_i32 = arith.constant 0 : i32
    %c0_i32_0 = arith.constant 0 : i32
    %c0_i32_1 = arith.constant 0 : i32
    return %c0_i32, %c0_i32_0 : i32, i32
  }
  func.func @transform_5(%arg0: i32) -> (i32, i32) {
    %c0_i32 = arith.constant 0 : i32
    %c0_i32_0 = arith.constant 0 : i32
    %c0_i32_1 = arith.constant 0 : i32
    return %c0_i32, %c0_i32_0 : i32, i32
  }
  func.func @transform_6(%arg0: i32) -> (i32, i32) {
    %c0_i32 = arith.constant 0 : i32
    %c0_i32_0 = arith.constant 0 : i32
    %c0_i32_1 = arith.constant 0 : i32
    return %c0_i32, %c0_i32_0 : i32, i32
  }
  func.func @transform_7(%arg0: i32) -> (i32, i32) {
    %c0_i32 = arith.constant 0 : i32
    %c0_i32_0 = arith.constant 0 : i32
    return %arg0, %c0_i32 : i32, i32
  }
}

</mosaic_0001>

<bundles_post_ra>
// kernel: forward.9
= control target key start
LH: loop header
LB: loop body
LE: loop exit
PB: predicated region body
PF: predicated region fallthrough
CT: control target
= control target key end

     0   :  { %s1614_s21 = smov 0   ;;  %s1882_s0 = inlined_call_operand.vmem [shape: bf16[256,9], index: 0, kind: input, shape index: {}]   ;;  %s1883_s1 = inlined_call_operand.vmem [shape: bf16[256,9], index: 1, kind: input, shape index: {}]   ;;  %s1884_s2 = inlined_call_operand.vmem [shape: bf16[256,9], index: 2, kind: input, shape index: {}]   ;;  %s1885_s3 = inlined_call_operand.vmem [shape: bf16[256,9], index: 3, kind: input, shape index: {}]   ;;  %s1886_s4 = inlined_call_operand.vmem [shape: bf16[9,8], index: 4, kind: input, shape index: {}]   ;;  %s1887_s5 = inlined_call_operand.vmem [shape: f32[1,8], index: 5, kind: input, shape index: {}]   ;;  %s1888_s6 = inlined_call_operand.vmem [shape: bf16[256,8], index: 6, kind: output, shape index: {}]  }
   0x1 LB: > { %s1305_s22 = sadd.s32 4294967295, %s1576_s21   ;;  %p1309_p0 = scmp.ge.s32.totalorder %s1576_s21, 1  ;;  %s1576_s21 = sphi %s1614_s21, %s16_s21  }
   0x2   : > { %p246_p1 = scmp.lt.s32.totalorder %s1576_s21, 3 }
   0x4   : > { %p247_p2 = pnand %p1309_p0, %p246_p1 }
   0x5   : > { %v1537_v0 = vld [vmem:[%s1886_s4] sm:$0x1f] (!%p247_p2)   ;;  %vm410_vm0 = vcmask (!%p247_p2), 1043456   ;;  %vm411_vm1 = vcmask (!%p247_p2), 1044480   ;;  %s1310_s25 = sshll.u32 (!%p247_p2), %s1305_s22, 4  ;;  %v1578_v1 = vmov (!%p247_p2), 65535  }
   0x6   : > { %250 = sbr.rel (%p247_p2) target bundleno = 300 (0x12c), region = 44  ;;  %v412_v2 = vsel (!%p247_p2), %vm410_vm0, 4294967295, %v1578_v1  ;;  %p292_p3 = scmp.lt.s32.totalorder (!%p247_p2), %s1310_s25, 31  ;;  %vm385_vm2 = vcmask (!%p247_p2), 72704   ;;  %vm1196_vm3 = vcmask (!%p247_p2), 60416  }
   0x7   : > { %v413_v3 = vsel (!%p247_p2), %vm411_vm1, %v412_v2, 0 }
   0x8   : > { %v415_v4 = vand.u32 (!%p247_p2), %v1537_v0, %v413_v3 }
   0xa   : > { %1456 = vmatprep.subr.bf16.mxu0 (!%p247_p2), %v415_v4  ;;  %1474 = vmatprep.subr.bf16.mxu1 (!%p247_p2), %v415_v4 }
   0xb   : > { %1457 = vmatpush3.bf16.msra.mxu0 (!%p247_p2), %v415_v4  ;;  %1475 = vmatpush3.bf16.msra.mxu1 (!%p247_p2), %v415_v4 }
   0xc   : > { %1492 = vmatprep.subr.bf16.mxu0 (!%p247_p2), %v415_v4  ;;  %1510 = vmatprep.subr.bf16.mxu1 (!%p247_p2), %v415_v4 }
   0xd   : > { %s1890_s25 = smov (!%p292_p3, %s1310_s25), 31 }
   0xe   : > { %s1625_s26 = sshll.u32 %s1890_s25, 2 }
   0xf   : > { %s1631_s29 = scalar_lea.vmem %s1882_s0, %s1625_s26  ;;  %s1637_s8 = scalar_lea.vmem %s1883_s1, %s1625_s26 }
  0x10   : > { %v1538_v5 = vld [vmem:[%s1631_s29] sm:$0xff]   ;;  %v1540_v7 = vld [vmem:[%s1631_s29 + $0x8] sm:$0xff]   ;;  %v1542_v9 = vld [vmem:[%s1631_s29 + $0x10] sm:$0xff]   ;;  %s1664_s11 = scalar_lea.vmem %s1884_s2, %s1625_s26  ;;  %s1671_s14 = scalar_lea.vmem %s1885_s3, %s1625_s26 }
  0x11   : > { %v1539_v6 = vld [vmem:[%s1637_s8] sm:$0xff]   ;;  %1458 = vmatprep.mubr.msk.bf16.mxu0 %vm385_vm2, %v1538_v5  ;;  %v1541_v8 = vld [vmem:[%s1637_s8 + $0x8] sm:$0xff]   ;;  %v1543_v10 = vld [vmem:[%s1637_s8 + $0x10] sm:$0xff]   ;;  %s1799_s19 = scalar_lea.vmem %s1888_s6, %s1625_s26 }
  0x12   : > { %1476 = vmatprep.mubr.msk.bf16.mxu1 %vm385_vm2, %v1539_v6  ;;  %1459 = vmatmul.mubr.msk.bf16.vlgmr.msra.gmra.mrb[0].mxu0 %vm385_vm2, %v1540_v7  ;;  %v1544_v11 = vld [vmem:[%s1631_s29 + $0x18] sm:$0xff]   ;;  %v1546_v13 = vld [vmem:[%s1631_s29 + $0x20] sm:$0xff]   ;;  %v1548_v15 = vld [vmem:[%s1631_s29 + $0x28] sm:$0xff]  }
  0x13   : > { %1477 = vmatmul.mubr.msk.bf16.vlgmr.msra.gmra.mrb[0].mxu1 %vm385_vm2, %v1541_v8  ;;  %1493 = vmatpush3.bf16.msra.mxu0 %v415_v4  ;;  %v1545_v12 = vld [vmem:[%s1637_s8 + $0x18] sm:$0xff]   ;;  %v1547_v14 = vld [vmem:[%s1637_s8 + $0x20] sm:$0xff]   ;;  %v1549_v16 = vld [vmem:[%s1637_s8 + $0x28] sm:$0xff]  }
  0x14   : > { %1511 = vmatpush3.bf16.msra.mxu1 %v415_v4  ;;  %1462 = vmatprep.mubr.msk.bf16.mxu0 %vm385_vm2, %v1542_v9  ;;  %v1550_v17 = vld [vmem:[%s1631_s29 + $0x30] sm:$0xff]   ;;  %v1552_v19 = vld [vmem:[%s1631_s29 + $0x38] sm:$0xff]   ;;  %v1554_v21 = vld [vmem:[%s1664_s11] sm:$0xff]  }
  0x15   : > { %1480 = vmatprep.mubr.msk.bf16.mxu1 %vm385_vm2, %v1543_v10  ;;  %v1551_v18 = vld [vmem:[%s1637_s8 + $0x30] sm:$0xff]   ;;  %v1553_v20 = vld [vmem:[%s1637_s8 + $0x38] sm:$0xff]   ;;  %v1555_v22 = vld [vmem:[%s1671_s14] sm:$0xff]  }
  0x16   : > { %v1556_v23 = vld [vmem:[%s1664_s11 + $0x8] sm:$0xff]   ;;  %v1558_v25 = vld [vmem:[%s1664_s11 + $0x10] sm:$0xff]   ;;  %v1560_v27 = vld [vmem:[%s1664_s11 + $0x18] sm:$0xff]  }
  0x17   : > { %v1557_v24 = vld [vmem:[%s1671_s14 + $0x8] sm:$0xff]   ;;  %v1559_v26 = vld [vmem:[%s1671_s14 + $0x10] sm:$0xff]   ;;  %v1561_v28 = vld [vmem:[%s1671_s14 + $0x18] sm:$0xff]  }
  0x18   : > { %v1562_v29 = vld [vmem:[%s1664_s11 + $0x20] sm:$0xff]   ;;  %v1564_v31 = vld [vmem:[%s1664_s11 + $0x28] sm:$0xff]   ;;  %v1566_v33 = vld [vmem:[%s1664_s11 + $0x30] sm:$0xff]  }
  0x19   : > { %v1563_v30 = vld [vmem:[%s1671_s14 + $0x20] sm:$0xff]   ;;  %v1565_v32 = vld [vmem:[%s1671_s14 + $0x28] sm:$0xff]   ;;  %v1567_v34 = vld [vmem:[%s1671_s14 + $0x30] sm:$0xff]  }
  0x1a   : > { %1463 = vmatmul.mubr.msk.bf16.gmra.mrb[4].mxu0 %vm385_vm2, %v1544_v11  ;;  %v1568_v35 = vld [vmem:[%s1664_s11 + $0x38] sm:$0xff]  }
  0x1b   : > { %1481 = vmatmul.mubr.msk.bf16.gmra.mrb[4].mxu1 %vm385_vm2, %v1545_v12  ;;  %1466 = vmatprep.mubr.msk.bf16.mxu0 %vm385_vm2, %v1546_v13  ;;  %v1569_v36 = vld [vmem:[%s1671_s14 + $0x38] sm:$0xff]  }
  0x1c   : > { %1484 = vmatprep.mubr.msk.bf16.mxu1 %vm385_vm2, %v1547_v14 }
  0x22   : > { %1467 = vmatmul.mubr.msk.bf16.gmra.mrb[8].mxu0 %vm385_vm2, %v1548_v15 }
  0x23   : > { %1485 = vmatmul.mubr.msk.bf16.gmra.mrb[8].mxu1 %vm385_vm2, %v1549_v16  ;;  %1470 = vmatprep.mubr.msk.bf16.mxu0 %vm385_vm2, %v1550_v17 }
  0x24   : > { %1488 = vmatprep.mubr.msk.bf16.mxu1 %vm385_vm2, %v1551_v18 }
  0x2a   : > { %1471 = vmatmul.mubr.msk.bf16.gmra.mrb[12].mxu0 %vm385_vm2, %v1552_v19 }
  0x2b   : > { %1489 = vmatmul.mubr.msk.bf16.gmra.mrb[12].mxu1 %vm385_vm2, %v1553_v20  ;;  %1494 = vmatprep.mubr.msk.bf16.mxu0 %vm385_vm2, %v1554_v21 }
  0x2c   : > { %1512 = vmatprep.mubr.msk.bf16.mxu1 %vm385_vm2, %v1555_v22 }
  0x32   : > { %1495 = vmatmul.mubr.msk.bf16.vlgmr.msra.gmra.mrb[16].mxu0 %vm385_vm2, %v1556_v23 }
  0x33   : > { %1513 = vmatmul.mubr.msk.bf16.vlgmr.msra.gmra.mrb[16].mxu1 %vm385_vm2, %v1557_v24  ;;  %1498 = vmatprep.mubr.msk.bf16.mxu0 %vm385_vm2, %v1558_v25  ;;  %v1790_v25 = vld [vmem:[%s1887_s5] ss:$0 sm:$0xff] }
  0x34   : > { %1516 = vmatprep.mubr.msk.bf16.mxu1 %vm385_vm2, %v1559_v26 }
  0x3a   : > { %1499 = vmatmul.mubr.msk.bf16.gmra.mrb[20].mxu0 %vm385_vm2, %v1560_v27 }
  0x3b   : > { %1517 = vmatmul.mubr.msk.bf16.gmra.mrb[20].mxu1 %vm385_vm2, %v1561_v28  ;;  %1502 = vmatprep.mubr.msk.bf16.mxu0 %vm385_vm2, %v1562_v29 }
  0x3c   : > { %1520 = vmatprep.mubr.msk.bf16.mxu1 %vm385_vm2, %v1563_v30 }
  0x42   : > { %1503 = vmatmul.mubr.msk.bf16.gmra.mrb[24].mxu0 %vm385_vm2, %v1564_v31 }
  0x43   : > { %1521 = vmatmul.mubr.msk.bf16.gmra.mrb[24].mxu1 %vm385_vm2, %v1565_v32  ;;  %1506 = vmatprep.mubr.msk.bf16.mxu0 %vm385_vm2, %v1566_v33 }
  0x44   : > { %1524 = vmatprep.mubr.msk.bf16.mxu1 %vm385_vm2, %v1567_v34 }
  0x4a   : > { %1507 = vmatmul.mubr.msk.bf16.gmra.mrb[28].mxu0 %vm385_vm2, %v1568_v35 }
  0x4b   : > { %1525 = vmatmul.mubr.msk.bf16.gmra.mrb[28].mxu1 %vm385_vm2, %v1569_v36 }
  0xe5   : > { %v1460_v37 = vpop.f32.mrb[0].mxu0 }
  0xe6   : > { %v1478_v38 = vpop.f32.mrb[0].mxu1  ;;  %v451_v39 = vpop.f32.mrb[1].mxu0 }
  0xe7   : > { %v693_v40 = vmax.f32 %v1460_v37, %v1478_v38  ;;  %v628_v41 = vpop.f32.mrb[1].mxu1  ;;  %v1461_v42 = vpop.f32.mrb[2].mxu0 }
  0xe8   : > { %v691_v43 = vmax.f32 %v451_v39, %v628_v41  ;;  %v1479_v44 = vpop.f32.mrb[2].mxu1  ;;  %v454_v45 = vpop.f32.mrb[3].mxu0 }
  0xe9   : > { %v694_v46 = vmax.f32 %v1461_v42, %v1479_v44  ;;  %v631_v47 = vpop.f32.mrb[3].mxu1 }
  0xea   : > { %v692_v48 = vmax.f32 %v454_v45, %v631_v47 }
  0xed   : > { %v1715_v49 = vpop.f32.mrb[4].mxu0 }
  0xee   : > { %v1717_v50 = vpop.f32.mrb[4].mxu1  ;;  %v1719_v51 = vpop.f32.mrb[5].mxu0 }
  0xef   : > { %v697_v52 = vmax.f32 %v1715_v49, %v1717_v50  ;;  %v1723_v53 = vpop.f32.mrb[5].mxu1  ;;  %v1725_v54 = vpop.f32.mrb[6].mxu0 }
  0xf0   : > { %v695_v55 = vmax.f32 %v1719_v51, %v1723_v53  ;;  %v1729_v56 = vpop.f32.mrb[6].mxu1  ;;  %v1731_v57 = vpop.f32.mrb[7].mxu0 }
  0xf1   : > { %v698_v58 = vmax.f32 %v1725_v54, %v1729_v56  ;;  %v1735_v59 = vpop.f32.mrb[7].mxu1 }
  0xf2   : > { %v696_v60 = vmax.f32 %v1731_v57, %v1735_v59 }
  0xf5   : > { %v1739_v61 = vpop.f32.mrb[8].mxu0 }
  0xf6   : > { %v1741_v62 = vpop.f32.mrb[8].mxu1  ;;  %v1743_v63 = vpop.f32.mrb[9].mxu0 }
  0xf7   : > { %v701_v0 = vmax.f32 %v1739_v61, %v1741_v62  ;;  %v1747_v1 = vpop.f32.mrb[9].mxu1  ;;  %v1749_v2 = vpop.f32.mrb[10].mxu0 }
  0xf8   : > { %v699_v3 = vmax.f32 %v1743_v63, %v1747_v1  ;;  %v1753_v4 = vpop.f32.mrb[10].mxu1  ;;  %v1755_v5 = vpop.f32.mrb[11].mxu0 }
  0xf9   : > { %v702_v6 = vmax.f32 %v1749_v2, %v1753_v4  ;;  %v1759_v7 = vpop.f32.mrb[11].mxu1 }
  0xfa   : > { %v700_v8 = vmax.f32 %v1755_v5, %v1759_v7 }
  0xfd   : > { %v1763_v9 = vpop.f32.mrb[12].mxu0 }
  0xfe   : > { %v1765_v10 = vpop.f32.mrb[12].mxu1  ;;  %v1767_v11 = vpop.f32.mrb[13].mxu0 }
  0xff   : > { %v705_v12 = vmax.f32 %v1763_v9, %v1765_v10  ;;  %v1771_v13 = vpop.f32.mrb[13].mxu1  ;;  %v1773_v14 = vpop.f32.mrb[14].mxu0 }
 0x100   : > { %v703_v15 = vmax.f32 %v1767_v11, %v1771_v13  ;;  %v1777_v16 = vpop.f32.mrb[14].mxu1  ;;  %v1779_v17 = vpop.f32.mrb[15].mxu0 }
 0x101   : > { %v706_v18 = vmax.f32 %v1773_v14, %v1777_v16  ;;  %v1783_v19 = vpop.f32.mrb[15].mxu1 }
 0x102   : > { %v704_v20 = vmax.f32 %v1779_v17, %v1783_v19 }
 0x105   : > { %v1496_v21 = vpop.f32.mrb[16].mxu0 }
 0x106   : > { %v886_v22 = vmax.f32 %v693_v40, %v1496_v21  ;;  %v1514_v23 = vpop.f32.mrb[16].mxu1  ;;  %v821_v24 = vpop.f32.mrb[17].mxu0 }
 0x107   : > { %v884_v26 = vmax.f32 %v691_v43, %v821_v24  ;;  %v1014_v27 = vpop.f32.mrb[17].mxu1  ;;  %v1497_v28 = vpop.f32.mrb[18].mxu0 }
 0x108   : > { %v1079_v29 = vmax.f32 %v886_v22, %v1514_v23  ;;  %v887_v30 = vmax.f32 %v694_v46, %v1497_v28  ;;  %v1515_v31 = vpop.f32.mrb[18].mxu1  ;;  %v824_v32 = vpop.f32.mrb[19].mxu0 }
 0x109   : > { %v1077_v33 = vmax.f32 %v884_v26, %v1014_v27  ;;  %v885_v34 = vmax.f32 %v692_v48, %v824_v32  ;;  %v1017_v35 = vpop.f32.mrb[19].mxu1 }
 0x10a   : > { %v1102_v36 = vadd.f32 %v1790_v25, %v1079_v29  ;;  %v1080_v37 = vmax.f32 %v887_v30, %v1515_v31 }
 0x10b   : > { %v1100_v38 = vadd.f32 %v1790_v25, %v1077_v33  ;;  %v1078_v39 = vmax.f32 %v885_v34, %v1017_v35 }
 0x10c   : > { %v1118_v40 = vmax.f32 %v1102_v36, 0.0  ;;  %v1103_v41 = vadd.f32 %v1790_v25, %v1080_v37 }
 0x10d   : > { %v1116_v42 = vmax.f32 %v1100_v38, 0.0  ;;  %v1101_v43 = vadd.f32 %v1790_v25, %v1078_v39  ;;  %v1500_v44 = vpop.f32.mrb[20].mxu0 }
 0x10e   : > { %v1406_v45 = vpack.c.bf16 %v1118_v40, %v1118_v40  ;;  %v1119_v46 = vmax.f32 %v1103_v41, 0.0  ;;  %v890_v47 = vmax.f32 %v697_v52, %v1500_v44  ;;  %v1518_v48 = vpop.f32.mrb[20].mxu1  ;;  %v837_v49 = vpop.f32.mrb[21].mxu0 }
 0x10f   : > { %v1404_v50 = vpack.c.bf16 %v1116_v42, %v1116_v42  ;;  %v1117_v21 = vmax.f32 %v1101_v43, 0.0  ;;  %v888_v22 = vmax.f32 %v695_v55, %v837_v49  ;;  %v1030_v23 = vpop.f32.mrb[21].mxu1  ;;  %v1501_v24 = vpop.f32.mrb[22].mxu0 }
 0x110   : > { %1199 = vst.msk [vmem:[%s1799_s19 + $0x8] sm:$0xf] %vm1196_vm3, %v1406_v45  ;;  %v1407_v26 = vpack.c.bf16 %v1119_v46, %v1119_v46  ;;  %v1083_v27 = vmax.f32 %v890_v47, %v1518_v48  ;;  %v891_v52 = vmax.f32 %v698_v58, %v1501_v24  ;;  %v1519_v28 = vpop.f32.mrb[22].mxu1  ;;  %v840_v29 = vpop.f32.mrb[23].mxu0 }
 0x111   : > { %1197 = vst.msk [vmem:[%s1799_s19] sm:$0xf] %vm1196_vm3, %v1404_v50  ;;  %v1405_v30 = vpack.c.bf16 %v1117_v21, %v1117_v21  ;;  %v1081_v31 = vmax.f32 %v888_v22, %v1030_v23  ;;  %v889_v51 = vmax.f32 %v696_v60, %v840_v29  ;;  %v1033_v53 = vpop.f32.mrb[23].mxu1 }
 0x112   : > { %1200 = vst.msk [vmem:[%s1799_s19 + $0xc] sm:$0xf] %vm1196_vm3, %v1407_v26  ;;  %v1106_v55 = vadd.f32 %v1790_v25, %v1083_v27  ;;  %v1084_v32 = vmax.f32 %v891_v52, %v1519_v28 }
 0x113   : > { %1198 = vst.msk [vmem:[%s1799_s19 + $0x4] sm:$0xf] %vm1196_vm3, %v1405_v30  ;;  %v1104_v54 = vadd.f32 %v1790_v25, %v1081_v31  ;;  %v1082_v56 = vmax.f32 %v889_v51, %v1033_v53 }
 0x114   : > { %v1122_v58 = vmax.f32 %v1106_v55, 0.0  ;;  %v1107_v33 = vadd.f32 %v1790_v25, %v1084_v32 }
 0x115   : > { %v1120_v34 = vmax.f32 %v1104_v54, 0.0  ;;  %v1105_v35 = vadd.f32 %v1790_v25, %v1082_v56  ;;  %v1504_v57 = vpop.f32.mrb[24].mxu0 }
 0x116   : > { %v1410_v59 = vpack.c.bf16 %v1122_v58, %v1122_v58  ;;  %v1123_v60 = vmax.f32 %v1107_v33, 0.0  ;;  %v894_v36 = vmax.f32 %v701_v0, %v1504_v57  ;;  %v1522_v37 = vpop.f32.mrb[24].mxu1  ;;  %v853_v38 = vpop.f32.mrb[25].mxu0 }
 0x117   : > { %v1408_v39 = vpack.c.bf16 %v1120_v34, %v1120_v34  ;;  %v1121_v40 = vmax.f32 %v1105_v35, 0.0  ;;  %v892_v41 = vmax.f32 %v699_v3, %v853_v38  ;;  %v1046_v42 = vpop.f32.mrb[25].mxu1  ;;  %v1505_v43 = vpop.f32.mrb[26].mxu0 }
 0x118   : > { %1203 = vst.msk [vmem:[%s1799_s19 + $0x18] sm:$0xf] %vm1196_vm3, %v1410_v59  ;;  %v1411_v44 = vpack.c.bf16 %v1123_v60, %v1123_v60  ;;  %v1087_v45 = vmax.f32 %v894_v36, %v1522_v37  ;;  %v895_v61 = vmax.f32 %v702_v6, %v1505_v43  ;;  %v1523_v62 = vpop.f32.mrb[26].mxu1  ;;  %v856_v0 = vpop.f32.mrb[27].mxu0 }
 0x119   : > { %1201 = vst.msk [vmem:[%s1799_s19 + $0x10] sm:$0xf] %vm1196_vm3, %v1408_v39  ;;  %v1409_v46 = vpack.c.bf16 %v1121_v40, %v1121_v40  ;;  %v1085_v47 = vmax.f32 %v892_v41, %v1046_v42  ;;  %v893_v63 = vmax.f32 %v700_v8, %v856_v0  ;;  %v1049_v1 = vpop.f32.mrb[27].mxu1 }
 0x11a   : > { %1204 = vst.msk [vmem:[%s1799_s19 + $0x1c] sm:$0xf] %vm1196_vm3, %v1411_v44  ;;  %v1110_v3 = vadd.f32 %v1790_v25, %v1087_v45  ;;  %v1088_v48 = vmax.f32 %v895_v61, %v1523_v62 }
 0x11b   : > { %1202 = vst.msk [vmem:[%s1799_s19 + $0x14] sm:$0xf] %vm1196_vm3, %v1409_v46  ;;  %v1108_v2 = vadd.f32 %v1790_v25, %v1085_v47  ;;  %v1086_v4 = vmax.f32 %v893_v63, %v1049_v1 }
 0x11c   : > { %v1126_v6 = vmax.f32 %v1110_v3, 0.0  ;;  %v1111_v49 = vadd.f32 %v1790_v25, %v1088_v48 }
 0x11d   : > { %v1124_v50 = vmax.f32 %v1108_v2, 0.0  ;;  %v1109_v21 = vadd.f32 %v1790_v25, %v1086_v4  ;;  %v1508_v5 = vpop.f32.mrb[28].mxu0 }
 0x11e   : > { %v1414_v7 = vpack.c.bf16 %v1126_v6, %v1126_v6  ;;  %v1127_v8 = vmax.f32 %v1111_v49, 0.0  ;;  %v898_v22 = vmax.f32 %v705_v12, %v1508_v5  ;;  %v1526_v23 = vpop.f32.mrb[28].mxu1  ;;  %v869_v24 = vpop.f32.mrb[29].mxu0 }
 0x11f   : > { %v1412_v26 = vpack.c.bf16 %v1124_v50, %v1124_v50  ;;  %v1125_v27 = vmax.f32 %v1109_v21, 0.0  ;;  %v896_v52 = vmax.f32 %v703_v15, %v869_v24  ;;  %v1062_v28 = vpop.f32.mrb[29].mxu1  ;;  %v1509_v29 = vpop.f32.mrb[30].mxu0 }
 0x120   : > { %1207 = vst.msk [vmem:[%s1799_s19 + $0x28] sm:$0xf] %vm1196_vm3, %v1414_v7  ;;  %v1415_v30 = vpack.c.bf16 %v1127_v8, %v1127_v8  ;;  %v1091_v31 = vmax.f32 %v898_v22, %v1526_v23  ;;  %v899_v9 = vmax.f32 %v706_v18, %v1509_v29  ;;  %v1527_v10 = vpop.f32.mrb[30].mxu1  ;;  %v872_v12 = vpop.f32.mrb[31].mxu0 }
 0x121   : > { %1205 = vst.msk [vmem:[%s1799_s19 + $0x20] sm:$0xf] %vm1196_vm3, %v1412_v26  ;;  %v1413_v51 = vpack.c.bf16 %v1125_v27, %v1125_v27  ;;  %v1089_v53 = vmax.f32 %v896_v52, %v1062_v28  ;;  %v897_v11 = vmax.f32 %v704_v20, %v872_v12  ;;  %v1065_v13 = vpop.f32.mrb[31].mxu1 }
 0x122   : > { %1208 = vst.msk [vmem:[%s1799_s19 + $0x2c] sm:$0xf] %vm1196_vm3, %v1415_v30  ;;  %v1114_v15 = vadd.f32 %v1790_v25, %v1091_v31  ;;  %v1092_v55 = vmax.f32 %v899_v9, %v1527_v10 }
 0x123   : > { %1206 = vst.msk [vmem:[%s1799_s19 + $0x24] sm:$0xf] %vm1196_vm3, %v1413_v51  ;;  %v1112_v14 = vadd.f32 %v1790_v25, %v1089_v53  ;;  %v1090_v16 = vmax.f32 %v897_v11, %v1065_v13 }
 0x124   : > { %v1130_v18 = vmax.f32 %v1114_v15, 0.0  ;;  %v1115_v32 = vadd.f32 %v1790_v25, %v1092_v55 }
 0x125   : > { %v1128_v17 = vmax.f32 %v1112_v14, 0.0  ;;  %v1113_v19 = vadd.f32 %v1790_v25, %v1090_v16 }
 0x126   : > { %v1418_v20 = vpack.c.bf16 %v1130_v18, %v1130_v18  ;;  %v1131_v54 = vmax.f32 %v1115_v32, 0.0 }
 0x127   : > { %v1416_v56 = vpack.c.bf16 %v1128_v17, %v1128_v17  ;;  %v1129_v58 = vmax.f32 %v1113_v19, 0.0 }
 0x128   : > { %1211 = vst.msk [vmem:[%s1799_s19 + $0x38] sm:$0xf] %vm1196_vm3, %v1418_v20  ;;  %v1419_v33 = vpack.c.bf16 %v1131_v54, %v1131_v54 }
 0x129   : > { %1209 = vst.msk [vmem:[%s1799_s19 + $0x30] sm:$0xf] %vm1196_vm3, %v1416_v56  ;;  %v1417_v34 = vpack.c.bf16 %v1129_v58, %v1129_v58 }
 0x12a   : > { %1212 = vst.msk [vmem:[%s1799_s19 + $0x3c] sm:$0xf] %vm1196_vm3, %v1419_v33 }
 0x12b   : > { %1210 = vst.msk [vmem:[%s1799_s19 + $0x34] sm:$0xf] %vm1196_vm3, %v1417_v34 }
 0x12c PF: > { %s16_s21 = sadd.s32 1, %s1576_s21  }
 0x12d   : > { %p13_p4 = scmp.ge.s32.totalorder %s16_s21, 4  }
 0x12f   :  { %15 = sbr.rel (!%p13_p4) target bundleno = 1 (0x1), region = 83 }

// kernel: forward.10
= control target key start
LH: loop header
LB: loop body
LE: loop exit
PB: predicated region body
PF: predicated region fallthrough
CT: control target
= control target key end

     0   :  { %s999_s12 = smov 0   ;;  %s1001_s13 = smov 0   ;;  %s1149_s0 = inlined_call_operand.vmem [shape: bf16[256,72], index: 0, kind: input, shape index: {}]   ;;  %s1150_s1 = inlined_call_operand.vmem [shape: bf16[72,8], index: 1, kind: input, shape index: {}]   ;;  %s1151_s2 = inlined_call_operand.vmem [shape: f32[1,8], index: 2, kind: input, shape index: {}]   ;;  %s1152_s3 = inlined_call_operand.vmem [shape: bf16[256,8], index: 3, kind: output, shape index: {}]  }
   0x1   :  { %s1003_s14 = smov 0  }
   0x2 LB: > { %s32_s15 = sadd.s32 1, %s972_s13  ;;  %p804_p0 = scmp.ge.s32.totalorder %s976_s14, 1  ;;  %s976_s14 = sphi %s1003_s14, %s13_s14   ;;  %s972_s13 = sphi %s1001_s13, %s1154_s13   ;;  %s968_s12 = sphi %s999_s12, %s1153_s12  }
   0x3   : > { %p34_p1 = scmp.ge.s32.totalorder %s32_s15, 2  ;;  %p188_p2 = scmp.lt.s32.totalorder %s976_s14, 3 }
   0x5   : > { %s1156_s15 = smov (%p34_p1, %s32_s15), 0  ;;  %p189_p3 = pnand %p804_p0, %p188_p2 }
   0x6   : > { %v941_v0 = vld [vmem:[%s1150_s1] sm:$0xff] (!%p189_p3)   ;;  %v942_v1 = vld [vmem:[%s1150_s1 + $0x8] sm:$0xff] (!%p189_p3)   ;;  %s805_s20 = sshll.u32 (!%p189_p3), %s968_s12, 4  ;;  %v943_v2 = vld [vmem:[%s1150_s1 + $0x10] sm:$0xff] (!%p189_p3)   ;;  %vm264_vm0 = vcmask (!%p189_p3), 64512   ;;  %v978_v3 = vmov (!%p189_p3), 0.0  }
   0x7   : > { %192 = sbr.rel (%p189_p3) target bundleno = 268 (0x10c), region = 32  ;;  %878 = vmatprep.subr.bf16.mxu0 (!%p189_p3), %v941_v0  ;;  %904 = vmatprep.subr.bf16.mxu1 (!%p189_p3), %v941_v0  ;;  %p230_p4 = scmp.lt.s32.totalorder (!%p189_p3), %s805_s20, 31  ;;  %267 = vst.msk [vmem:[#allocation2 + $0x10] sm:$0xff] (!%p189_p3), %vm264_vm0, %v978_v3  ;;  %265 = vst.msk [vmem:[#allocation2] sm:$0xff] (!%p189_p3), %vm264_vm0, %v978_v3  ;;  %v944_v4 = vld [vmem:[%s1150_s1 + $0x18] sm:$0xff] (!%p189_p3)   ;;  %vm389_vm1 = vcmask (!%p189_p3), 588800  }
   0x8   : > { %879 = vmatpush3.bf16.msra.mxu0 (!%p189_p3), %v941_v0  ;;  %909 = vmatpush3.bf16.msra.mxu1 (!%p189_p3), %v941_v0  ;;  %266 = vst.msk [vmem:[#allocation2 + $0x8] sm:$0xff] (!%p189_p3), %vm264_vm0, %v978_v3  ;;  %268 = vst.msk [vmem:[#allocation2 + $0x18] sm:$0xff] (!%p189_p3), %vm264_vm0, %v978_v3  ;;  %v945_v7 = vld [vmem:[%s1150_s1 + $0x20] ss:$0 sps:$4 sm:$0xff] (!%p189_p3)   ;;  %vm414_vm2 = vcmask (!%p189_p3), 1043456   ;;  %vm670_vm3 = vcmask (!%p189_p3), 60416  }
   0x9   : > { %880 = vmatprep.subr.bf16.mxu0 (!%p189_p3), %v942_v1  ;;  %905 = vmatprep.subr.bf16.mxu1 (!%p189_p3), %v942_v1  ;;  %269 = vst.msk [vmem:[#allocation2 + $0x20] sm:$0xff] (!%p189_p3), %vm264_vm0, %v978_v3  ;;  %270 = vst.msk [vmem:[#allocation2 + $0x28] sm:$0xff] (!%p189_p3), %vm264_vm0, %v978_v3  ;;  %v416_v8 = vsel (!%p189_p3), %vm414_vm2, %v945_v7, 0  ;;  %v1075_v43 = vld [vmem:[%s1151_s2] ss:$0 sm:$0xff] (!%p189_p3) }
   0xa   : > { %271 = vst.msk [vmem:[#allocation2 + $0x30] sm:$0xff] (!%p189_p3), %vm264_vm0, %v978_v3  ;;  %272 = vst.msk [vmem:[#allocation2 + $0x38] sm:$0xff] (!%p189_p3), %vm264_vm0, %v978_v3 }
   0xb   : > { %273 = vst.msk [vmem:[#allocation2 + $0x40] sm:$0xff] (!%p189_p3), %vm264_vm0, %v978_v3  ;;  %274 = vst.msk [vmem:[#allocation2 + $0x48] sm:$0xff] (!%p189_p3), %vm264_vm0, %v978_v3 }
   0xc   : > { %275 = vst.msk [vmem:[#allocation2 + $0x50] sm:$0xff] (!%p189_p3), %vm264_vm0, %v978_v3  ;;  %276 = vst.msk [vmem:[#allocation2 + $0x58] sm:$0xff] (!%p189_p3), %vm264_vm0, %v978_v3  ;;  %881 = vmatpush3.bf16.msra.mxu0 (!%p189_p3), %v942_v1  ;;  %910 = vmatpush3.bf16.msra.mxu1 (!%p189_p3), %v942_v1 }
   0xd   : > { %277 = vst.msk [vmem:[#allocation2 + $0x60] sm:$0xff] (!%p189_p3), %vm264_vm0, %v978_v3  ;;  %278 = vst.msk [vmem:[#allocation2 + $0x68] sm:$0xff] (!%p189_p3), %vm264_vm0, %v978_v3  ;;  %882 = vmatprep.subr.bf16.mxu0 (!%p189_p3), %v943_v2  ;;  %906 = vmatprep.subr.bf16.mxu1 (!%p189_p3), %v943_v2 }
   0xe   : > { %s1158_s20 = smov (!%p230_p4, %s805_s20), 31  ;;  %279 = vst.msk [vmem:[#allocation2 + $0x70] sm:$0xff] %vm264_vm0, %v978_v3  ;;  %280 = vst.msk [vmem:[#allocation2 + $0x78] sm:$0xff] %vm264_vm0, %v978_v3  ;;  %v283_v15 = vld [vmem:[#allocation2 + $0x10] sm:$0xff]  ;;  %v281_v17 = vld [vmem:[#allocation2] sm:$0xff] }
   0xf   : > { %s806_s23 = sshll.u32 %s1158_s20, 2  ;;  %v284_v21 = vld [vmem:[#allocation2 + $0x18] sm:$0xff]  ;;  %v282_v27 = vld [vmem:[#allocation2 + $0x8] sm:$0xff] }
  0x10   : > { %s236_s28 = scalar_lea.vmem %s1149_s0, %s806_s23  ;;  %883 = vmatpush3.bf16.msra.mxu0 %v943_v2  ;;  %911 = vmatpush3.bf16.msra.mxu1 %v943_v2  ;;  %v285_v41 = vld [vmem:[#allocation2 + $0x20] sm:$0xff]  ;;  %v286_v52 = vld [vmem:[#allocation2 + $0x28] sm:$0xff]  ;;  %s1094_s8 = scalar_lea.vmem %s1152_s3, %s806_s23 }
  0x11   : > { %v946_v5 = vld [vmem:[%s236_s28] sm:$0xff]   ;;  %884 = vmatprep.subr.bf16.mxu0 %v944_v4  ;;  %907 = vmatprep.subr.bf16.mxu1 %v944_v4  ;;  %v948_v9 = vld [vmem:[%s236_s28 + $0x8] sm:$0xff]   ;;  %v950_v11 = vld [vmem:[%s236_s28 + $0x10] sm:$0xff]  }
  0x12   : > { %v947_v6 = vld [vmem:[%s236_s28 + $0x20] sm:$0xff]   ;;  %888 = vmatprep.mubr.msk.bf16.mxu0 %vm389_vm1, %v946_v5  ;;  %v949_v10 = vld [vmem:[%s236_s28 + $0x28] sm:$0xff]   ;;  %v951_v12 = vld [vmem:[%s236_s28 + $0x30] sm:$0xff]  }
  0x13   : > { %896 = vmatprep.mubr.msk.bf16.mxu1 %vm389_vm1, %v947_v6  ;;  %v952_v13 = vld [vmem:[%s236_s28 + $0x18] sm:$0xff]   ;;  %v291_v16 = vld [vmem:[#allocation2 + $0x50] sm:$0xff]  ;;  %v289_v18 = vld [vmem:[#allocation2 + $0x40] sm:$0xff] }
  0x14   : > { %885 = vmatpush3.bf16.msra.mxu0 %v944_v4  ;;  %912 = vmatpush3.bf16.msra.mxu1 %v944_v4  ;;  %v953_v14 = vld [vmem:[%s236_s28 + $0x38] sm:$0xff]   ;;  %v290_v28 = vld [vmem:[#allocation2 + $0x48] sm:$0xff]  ;;  %v287_v39 = vld [vmem:[#allocation2 + $0x30] sm:$0xff] }
  0x15   : > { %914 = vmatprep.subr.msk.bf16.mxu0 %vm414_vm2, %v945_v7  ;;  %915 = vmatprep.subr.msk.bf16.mxu1 %vm414_vm2, %v945_v7  ;;  %v292_v22 = vld [vmem:[#allocation2 + $0x58] sm:$0xff]  ;;  %v295_v40 = vld [vmem:[#allocation2 + $0x70] sm:$0xff]  ;;  %v293_v42 = vld [vmem:[#allocation2 + $0x60] sm:$0xff] }
  0x16   : > { %v288_v46 = vld [vmem:[#allocation2 + $0x38] sm:$0xff]  ;;  %v294_v53 = vld [vmem:[#allocation2 + $0x68] sm:$0xff] }
  0x17   : > { %v296_v47 = vld [vmem:[#allocation2 + $0x78] sm:$0xff] }
  0x18   : > { %887 = vmatpush3.bf16.msra.mxu0 %v416_v8  ;;  %913 = vmatpush3.bf16.msra.mxu1 %v416_v8 }
  0x1b   : > { %889 = vmatmul.mubr.msk.bf16.vlgmr.msra.gmra.mrb[0].mxu0 %vm389_vm1, %v948_v9  ;;  %897 = vmatmul.mubr.msk.bf16.vlgmr.msra.gmra.mrb[0].mxu1 %vm389_vm1, %v949_v10 }
  0x1c   : > { %892 = vmatprep.mubr.msk.bf16.mxu0 %vm389_vm1, %v950_v11  ;;  %900 = vmatprep.mubr.msk.bf16.mxu1 %vm389_vm1, %v951_v12 }
  0x23   : > { %893 = vmatmul.mubr.msk.bf16.gmra.mrb[4].mxu0 %vm389_vm1, %v952_v13  ;;  %901 = vmatmul.mubr.msk.bf16.gmra.mrb[4].mxu1 %vm389_vm1, %v953_v14 }
  0xee   : > { %v890_v19 = vpop.f32.mrb[0].mxu0  ;;  %v898_v20 = vpop.f32.mrb[0].mxu1 }
  0xef   : > { %v517_v23 = vadd.f32 %v890_v19, %v283_v15  ;;  %v525_v24 = vadd.f32 %v898_v20, %v291_v16  ;;  %v452_v25 = vpop.f32.mrb[1].mxu0  ;;  %v484_v26 = vpop.f32.mrb[1].mxu1 }
  0xf0   : > { %v515_v29 = vadd.f32 %v452_v25, %v281_v17  ;;  %v523_v30 = vadd.f32 %v484_v26, %v289_v18  ;;  %v891_v31 = vpop.f32.mrb[2].mxu0  ;;  %v899_v32 = vpop.f32.mrb[2].mxu1 }
  0xf1   : > { %534 = vst.msk [vmem:[#allocation2 + $0x10] sm:$0xff] %vm264_vm0, %v517_v23  ;;  %542 = vst.msk [vmem:[#allocation2 + $0x50] sm:$0xff] %vm264_vm0, %v525_v24  ;;  %v518_v33 = vadd.f32 %v891_v31, %v284_v21  ;;  %v526_v34 = vadd.f32 %v899_v32, %v292_v22  ;;  %v455_v35 = vpop.f32.mrb[3].mxu0  ;;  %v487_v36 = vpop.f32.mrb[3].mxu1 }
  0xf2   : > { %532 = vst.msk [vmem:[#allocation2] sm:$0xff] %vm264_vm0, %v515_v29  ;;  %540 = vst.msk [vmem:[#allocation2 + $0x40] sm:$0xff] %vm264_vm0, %v523_v30  ;;  %v516_v37 = vadd.f32 %v455_v35, %v282_v27  ;;  %v524_v38 = vadd.f32 %v487_v36, %v290_v28 }
  0xf3   : > { %535 = vst.msk [vmem:[#allocation2 + $0x18] sm:$0xff] %vm264_vm0, %v518_v33  ;;  %543 = vst.msk [vmem:[#allocation2 + $0x58] sm:$0xff] %vm264_vm0, %v526_v34 }
  0xf4   : > { %533 = vst.msk [vmem:[#allocation2 + $0x8] sm:$0xff] %vm264_vm0, %v516_v37  ;;  %541 = vst.msk [vmem:[#allocation2 + $0x48] sm:$0xff] %vm264_vm0, %v524_v38 }
  0xf6   : > { %v894_v44 = vpop.f32.mrb[4].mxu0  ;;  %v902_v45 = vpop.f32.mrb[4].mxu1 }
  0xf7   : > { %v521_v48 = vadd.f32 %v894_v44, %v287_v39  ;;  %v529_v49 = vadd.f32 %v902_v45, %v295_v40  ;;  %v468_v50 = vpop.f32.mrb[5].mxu0  ;;  %v500_v51 = vpop.f32.mrb[5].mxu1 }
  0xf8   : > { %v553_v54 = vld [vmem:[#allocation2 + $0x10] sm:$0xff]  ;;  %v519_v56 = vadd.f32 %v468_v50, %v285_v41  ;;  %v527_v57 = vadd.f32 %v500_v51, %v293_v42  ;;  %v895_v58 = vpop.f32.mrb[6].mxu0  ;;  %v903_v59 = vpop.f32.mrb[6].mxu1 }
  0xf9   : > { %v561_v55 = vld [vmem:[#allocation2 + $0x50] sm:$0xff]  ;;  %v576_v60 = vadd.f32 %v1075_v43, %v553_v54  ;;  %v551_v62 = vld [vmem:[#allocation2] sm:$0xff]  ;;  %538 = vst.msk [vmem:[#allocation2 + $0x30] sm:$0xff] %vm264_vm0, %v521_v48  ;;  %546 = vst.msk [vmem:[#allocation2 + $0x70] sm:$0xff] %vm264_vm0, %v529_v49  ;;  %v522_v0 = vadd.f32 %v895_v58, %v288_v46  ;;  %v530_v1 = vadd.f32 %v903_v59, %v296_v47  ;;  %v471_v2 = vpop.f32.mrb[7].mxu0  ;;  %v503_v3 = vpop.f32.mrb[7].mxu1 }
  0xfa   : > { %v584_v61 = vadd.f32 %v1075_v43, %v561_v55  ;;  %v559_v63 = vld [vmem:[#allocation2 + $0x40] sm:$0xff]  ;;  %v574_v4 = vadd.f32 %v1075_v43, %v551_v62  ;;  %v554_v6 = vld [vmem:[#allocation2 + $0x18] sm:$0xff]  ;;  %536 = vst.msk [vmem:[#allocation2 + $0x20] sm:$0xff] %vm264_vm0, %v519_v56  ;;  %544 = vst.msk [vmem:[#allocation2 + $0x60] sm:$0xff] %vm264_vm0, %v527_v57  ;;  %v520_v8 = vadd.f32 %v471_v2, %v286_v52 }
  0xfb   : > { %v582_v5 = vadd.f32 %v1075_v43, %v559_v63  ;;  %v562_v7 = vld [vmem:[#allocation2 + $0x58] sm:$0xff]  ;;  %v528_v9 = vadd.f32 %v503_v3, %v294_v53  ;;  %v592_v10 = vmax.f32 %v576_v60, 0.0  ;;  %v577_v12 = vadd.f32 %v1075_v43, %v554_v6  ;;  %v552_v14 = vld [vmem:[#allocation2 + $0x8] sm:$0xff]  ;;  %539 = vst.msk [vmem:[#allocation2 + $0x38] sm:$0xff] %vm264_vm0, %v522_v0  ;;  %547 = vst.msk [vmem:[#allocation2 + $0x78] sm:$0xff] %vm264_vm0, %v530_v1 }
  0xfc   : > { %v600_v11 = vmax.f32 %v584_v61, 0.0  ;;  %v585_v13 = vadd.f32 %v1075_v43, %v562_v7  ;;  %v560_v15 = vld [vmem:[#allocation2 + $0x48] sm:$0xff]  ;;  %v590_v16 = vmax.f32 %v574_v4, 0.0  ;;  %v575_v18 = vadd.f32 %v1075_v43, %v552_v14  ;;  %537 = vst.msk [vmem:[#allocation2 + $0x28] sm:$0xff] %vm264_vm0, %v520_v8 }
  0xfd   : > { %v598_v17 = vmax.f32 %v582_v5, 0.0  ;;  %v583_v19 = vadd.f32 %v1075_v43, %v560_v15  ;;  %545 = vst.msk [vmem:[#allocation2 + $0x68] sm:$0xff] %vm264_vm0, %v528_v9  ;;  %v851_v20 = vpack.c.bf16 %v592_v10, %v592_v10  ;;  %v593_v22 = vmax.f32 %v577_v12, 0.0 }
  0xfe   : > { %v859_v21 = vpack.c.bf16 %v600_v11, %v600_v11  ;;  %v601_v23 = vmax.f32 %v585_v13, 0.0  ;;  %v849_v24 = vpack.c.bf16 %v590_v16, %v590_v16  ;;  %v591_v26 = vmax.f32 %v575_v18, 0.0 }
  0xff   : > { %v857_v25 = vpack.c.bf16 %v598_v17, %v598_v17  ;;  %v599_v27 = vmax.f32 %v583_v19, 0.0  ;;  %673 = vst.msk [vmem:[%s1094_s8 + $0x8] sm:$0xf] %vm670_vm3, %v851_v20  ;;  %v852_v28 = vpack.c.bf16 %v593_v22, %v593_v22 }
 0x100   : > { %681 = vst.msk [vmem:[%s1094_s8 + $0x28] sm:$0xf] %vm670_vm3, %v859_v21  ;;  %v860_v29 = vpack.c.bf16 %v601_v23, %v601_v23  ;;  %671 = vst.msk [vmem:[%s1094_s8] sm:$0xf] %vm670_vm3, %v849_v24  ;;  %v850_v30 = vpack.c.bf16 %v591_v26, %v591_v26  ;;  %v557_v32 = vld [vmem:[#allocation2 + $0x30] sm:$0xff] }
 0x101   : > { %679 = vst.msk [vmem:[%s1094_s8 + $0x20] sm:$0xf] %vm670_vm3, %v857_v25  ;;  %v858_v31 = vpack.c.bf16 %v599_v27, %v599_v27  ;;  %v565_v33 = vld [vmem:[#allocation2 + $0x70] sm:$0xff]  ;;  %674 = vst.msk [vmem:[%s1094_s8 + $0xc] sm:$0xf] %vm670_vm3, %v852_v28  ;;  %v580_v34 = vadd.f32 %v1075_v43, %v557_v32  ;;  %v555_v36 = vld [vmem:[#allocation2 + $0x20] sm:$0xff] }
 0x102   : > { %682 = vst.msk [vmem:[%s1094_s8 + $0x2c] sm:$0xf] %vm670_vm3, %v860_v29  ;;  %v588_v35 = vadd.f32 %v1075_v43, %v565_v33  ;;  %v563_v37 = vld [vmem:[#allocation2 + $0x60] sm:$0xff]  ;;  %672 = vst.msk [vmem:[%s1094_s8 + $0x4] sm:$0xf] %vm670_vm3, %v850_v30  ;;  %v578_v38 = vadd.f32 %v1075_v43, %v555_v36  ;;  %v558_v40 = vld [vmem:[#allocation2 + $0x38] sm:$0xff] }
 0x103   : > { %680 = vst.msk [vmem:[%s1094_s8 + $0x24] sm:$0xf] %vm670_vm3, %v858_v31  ;;  %v586_v39 = vadd.f32 %v1075_v43, %v563_v37  ;;  %v566_v41 = vld [vmem:[#allocation2 + $0x78] sm:$0xff]  ;;  %v596_v42 = vmax.f32 %v580_v34, 0.0  ;;  %v581_v45 = vadd.f32 %v1075_v43, %v558_v40  ;;  %v556_v47 = vld [vmem:[#allocation2 + $0x28] sm:$0xff] }
 0x104   : > { %v604_v44 = vmax.f32 %v588_v35, 0.0  ;;  %v589_v46 = vadd.f32 %v1075_v43, %v566_v41  ;;  %v564_v48 = vld [vmem:[#allocation2 + $0x68] sm:$0xff]  ;;  %v594_v49 = vmax.f32 %v578_v38, 0.0  ;;  %v579_v51 = vadd.f32 %v1075_v43, %v556_v47 }
 0x105   : > { %v602_v50 = vmax.f32 %v586_v39, 0.0  ;;  %v587_v52 = vadd.f32 %v1075_v43, %v564_v48  ;;  %v855_v53 = vpack.c.bf16 %v596_v42, %v596_v42  ;;  %v597_v55 = vmax.f32 %v581_v45, 0.0 }
 0x106   : > { %v863_v54 = vpack.c.bf16 %v604_v44, %v604_v44  ;;  %v605_v56 = vmax.f32 %v589_v46, 0.0  ;;  %v853_v57 = vpack.c.bf16 %v594_v49, %v594_v49  ;;  %v595_v59 = vmax.f32 %v579_v51, 0.0 }
 0x107   : > { %v861_v58 = vpack.c.bf16 %v602_v50, %v602_v50  ;;  %v603_v60 = vmax.f32 %v587_v52, 0.0  ;;  %677 = vst.msk [vmem:[%s1094_s8 + $0x18] sm:$0xf] %vm670_vm3, %v855_v53  ;;  %v856_v61 = vpack.c.bf16 %v597_v55, %v597_v55 }
 0x108   : > { %685 = vst.msk [vmem:[%s1094_s8 + $0x38] sm:$0xf] %vm670_vm3, %v863_v54  ;;  %v864_v62 = vpack.c.bf16 %v605_v56, %v605_v56  ;;  %675 = vst.msk [vmem:[%s1094_s8 + $0x10] sm:$0xf] %vm670_vm3, %v853_v57  ;;  %v854_v43 = vpack.c.bf16 %v595_v59, %v595_v59 }
 0x109   : > { %683 = vst.msk [vmem:[%s1094_s8 + $0x30] sm:$0xf] %vm670_vm3, %v861_v58  ;;  %v862_v63 = vpack.c.bf16 %v603_v60, %v603_v60  ;;  %678 = vst.msk [vmem:[%s1094_s8 + $0x1c] sm:$0xf] %vm670_vm3, %v856_v61 }
 0x10a   : > { %686 = vst.msk [vmem:[%s1094_s8 + $0x3c] sm:$0xf] %vm670_vm3, %v864_v62  ;;  %676 = vst.msk [vmem:[%s1094_s8 + $0x14] sm:$0xf] %vm670_vm3, %v854_v43 }
 0x10b   : > { %684 = vst.msk [vmem:[%s1094_s8 + $0x34] sm:$0xf] %vm670_vm3, %v862_v63 }
 0x10c PF: > { %s13_s14 = sadd.s32 1, %s976_s14   ;;  %s1153_s12 = smov %s972_s13 }
 0x10d   : > { %p10_p5 = scmp.ge.s32.totalorder %s13_s14, 4   ;;  %s1154_s13 = smov %s1156_s15 }
 0x10f   :  { %12 = sbr.rel (!%p10_p5) target bundleno = 2 (0x2), region = 76 }

// kernel: forward.11
= control target key start
LH: loop header
LB: loop body
LE: loop exit
PB: predicated region body
PF: predicated region fallthrough
CT: control target
= control target key end

     0   :  { %s864_s12 = smov 0   ;;  %s866_s13 = smov 0   ;;  %s980_s0 = inlined_call_operand.vmem [shape: bf16[16,128], index: 0, kind: input, shape index: {}]   ;;  %s981_s1 = inlined_call_operand.vmem [shape: bf16[128,384], index: 1, kind: input, shape index: {}]   ;;  %s982_s2 = inlined_call_operand.vmem [shape: f32[1,384], index: 2, kind: input, shape index: {}]   ;;  %s983_s3 = inlined_call_operand.vmem [shape: bf16[16,384], index: 3, kind: output, shape index: {}]  }
   0x1   :  { %s868_s14 = smov 0  }
   0x2 LB: > { %s32_s15 = sadd.s32 1, %s835_s13  ;;  %p695_p0 = scmp.ge.s32.totalorder %s839_s14, 1  ;;  %s839_s14 = sphi %s868_s14, %s13_s14   ;;  %s835_s13 = sphi %s866_s13, %s985_s13   ;;  %s831_s12 = sphi %s864_s12, %s984_s12  }
   0x3   : > { %p34_p1 = scmp.ge.s32.totalorder %s32_s15, 2  ;;  %p191_p2 = scmp.lt.s32.totalorder %s839_s14, 3 }
   0x5   : > { %s987_s15 = smov (%p34_p1, %s32_s15), 0  ;;  %p192_p3 = pnand %p695_p0, %p191_p2 }
   0x6   : > { %v785_v0 = vld [vmem:[%s981_s1 + $0x4] ss:$12 sps:$4 sm:$0xff] (!%p192_p3)   ;;  %v841_v1 = vmov (!%p192_p3), 0.0   ;;  %v787_v2 = vld [vmem:[%s981_s1 + $0x8] ss:$12 sps:$4 sm:$0xff] (!%p192_p3)   ;;  %vm842_vm0 = vmmov (!%p192_p3), 0   ;;  %v536_v27 = vlaneseq (!%p192_p3) }
   0x7   : > { %195 = sbr.rel (%p192_p3) target bundleno = 258 (0x102), region = 32  ;;  %737 = vmatprep.subr.bf16.mxu1 (!%p192_p3), %v841_v1  ;;  %753 = vmatprep.mubr.msk.bf16.mxu1 (!%p192_p3), %vm842_vm0, %v841_v1  ;;  %v788_v3 = vld [vmem:[%s981_s1] ss:$12 sps:$4 sm:$0xff] (!%p192_p3)   ;;  %v789_v4 = vld [vmem:[%s981_s1 + $0x1c] ss:$12 sps:$4 sm:$0xff] (!%p192_p3)   ;;  %v843_v5 = vmov (!%p192_p3), 0  }
   0x8   : > { %441 = vmatprep.subr.bf16.mxu0 (!%p192_p3), %v785_v0  ;;  %738 = vmatpush3.bf16.msra.mxu1 (!%p192_p3), %v787_v2  ;;  %v791_v6 = vld [vmem:[%s981_s1 + $0x20] ss:$12 sps:$4 sm:$0xff] (!%p192_p3)   ;;  %v792_v7 = vld [vmem:[%s981_s1 + $0x18] ss:$12 sps:$4 sm:$0xff] (!%p192_p3)   ;;  %v796_v10 = vld [vmem:[%s981_s1 + $0x30] ss:$12 sps:$4 sm:$0xff] (!%p192_p3)  }
   0x9   : > { %473 = vmatprep.mubr.bf16.mxu0 (!%p192_p3), %v843_v5  ;;  %442 = vmatpush1.bf16.msra.mxu0 (!%p192_p3), %v788_v3  ;;  %v793_v8 = vld [vmem:[%s981_s1 + $0x34] ss:$12 sps:$4 sm:$0xff] (!%p192_p3)   ;;  %v795_v9 = vld [vmem:[%s981_s1 + $0x38] ss:$12 sps:$4 sm:$0xff] (!%p192_p3)   ;;  %v799_v12 = vld [vmem:[%s981_s1 + $0x50] ss:$12 sps:$4 sm:$0xff] (!%p192_p3)  }
   0xa   : > { %739 = vmatprep.subr.bf16.mxu1 (!%p192_p3), %v841_v1  ;;  %443 = vmatprep.subr.bf16.mxu0 (!%p192_p3), %v789_v4  ;;  %v797_v11 = vld [vmem:[%s981_s1 + $0x4c] ss:$12 sps:$4 sm:$0xff] (!%p192_p3)   ;;  %v800_v13 = vld [vmem:[%s981_s1 + $0x48] ss:$12 sps:$4 sm:$0xff] (!%p192_p3)   ;;  %v801_v14 = vld [vmem:[%s981_s1 + $0x64] ss:$12 sps:$4 sm:$0xff] (!%p192_p3)  }
   0xb   : > { %v803_v15 = vld [vmem:[%s981_s1 + $0x68] ss:$12 sps:$4 sm:$0xff] (!%p192_p3)   ;;  %v804_v16 = vld [vmem:[%s981_s1 + $0x60] ss:$12 sps:$4 sm:$0xff] (!%p192_p3)   ;;  %p235_p4 = scmp.lt.s32.totalorder (!%p192_p3), %s831_s12, 1  ;;  %v537_v28 = vshrl.u32 (!%p192_p3), %v536_v27, 7 }
   0xc   : > { %740 = vmatpush3.bf16.msra.mxu1 (!%p192_p3), %v791_v6  ;;  %v805_v17 = vld [vmem:[%s981_s1 + $0x7c] ss:$12 sps:$4 sm:$0xff] (!%p192_p3)   ;;  %v807_v18 = vld [vmem:[%s981_s1 + $0x80] ss:$12 sps:$4 sm:$0xff] (!%p192_p3)   ;;  %v808_v19 = vld [vmem:[%s981_s1 + $0x78] ss:$12 sps:$4 sm:$0xff] (!%p192_p3)  }
   0xd   : > { %444 = vmatpush1.bf16.msra.mxu0 (!%p192_p3), %v792_v7  ;;  %741 = vmatprep.subr.bf16.mxu1 (!%p192_p3), %v841_v1  ;;  %v809_v20 = vld [vmem:[%s981_s1 + $0x94] ss:$12 sps:$4 sm:$0xff] (!%p192_p3)   ;;  %v811_v21 = vld [vmem:[%s981_s1 + $0x98] ss:$12 sps:$4 sm:$0xff] (!%p192_p3)   ;;  %v812_v22 = vld [vmem:[%s981_s1 + $0x90] ss:$12 sps:$4 sm:$0xff] (!%p192_p3)  }
   0xe   : > { %445 = vmatprep.subr.bf16.mxu0 %v793_v8  ;;  %s989_s12 = smov (!%p235_p4, %s831_s12), 1  ;;  %v813_v23 = vld [vmem:[%s981_s1 + $0xac] ss:$12 sps:$4 sm:$0xff]   ;;  %v815_v24 = vld [vmem:[%s981_s1 + $0xb0] ss:$12 sps:$4 sm:$0xff]   ;;  %v546_v29 = vsub.s32 2, %v537_v28 }
   0xf   : > { %s696_s10 = sshll.u32 %s989_s12, 2  ;;  %v816_v25 = vld [vmem:[%s981_s1 + $0xa8] ss:$12 sps:$4 sm:$0xff]   ;;  %v534_v30 = vld [vmem:[%s982_s2] sm:$0x7]  ;;  %v538_v31 = vsub.s32 0, %v537_v28 }
  0x10   : > { %742 = vmatpush3.bf16.msra.mxu1 %v795_v9  ;;  %s241_s21 = scalar_lea.vmem %s980_s0, %s696_s10  ;;  %v542_v32 = vsub.s32 1, %v537_v28  ;;  %v547_v33 = vrot.slane %v534_v30, %v546_v29  ;;  %s757_s24 = smul.u32 12, %s989_s12 }
  0x11   : > { %446 = vmatpush1.bf16.msra.mxu0 %v796_v10  ;;  %743 = vmatprep.subr.bf16.mxu1 %v841_v1  ;;  %v280_v26 = vld [vmem:[%s241_s21] sm:$0xf]  ;;  %v539_v34 = vrot.slane %v534_v30, %v538_v31 }
  0x12   : > { %447 = vmatprep.subr.bf16.mxu0 %v797_v11  ;;  %v543_v35 = vrot.slane %v534_v30, %v542_v32  ;;  %s267_s27 = scalar_lea.vmem %s983_s3, %s757_s24 }
  0x14   : > { %744 = vmatpush3.bf16.msra.mxu1 %v799_v12 }
  0x15   : > { %448 = vmatpush1.bf16.msra.mxu0 %v800_v13  ;;  %745 = vmatprep.subr.bf16.mxu1 %v841_v1 }
  0x16   : > { %449 = vmatprep.subr.bf16.mxu0 %v801_v14 }
  0x18   : > { %746 = vmatpush3.bf16.msra.mxu1 %v803_v15 }
  0x19   : > { %450 = vmatpush1.bf16.msra.mxu0 %v804_v16  ;;  %747 = vmatprep.subr.bf16.mxu1 %v841_v1 }
  0x1a   : > { %451 = vmatprep.subr.bf16.mxu0 %v805_v17 }
  0x1c   : > { %748 = vmatpush3.bf16.msra.mxu1 %v807_v18 }
  0x1d   : > { %452 = vmatpush1.bf16.msra.mxu0 %v808_v19  ;;  %749 = vmatprep.subr.bf16.mxu1 %v841_v1 }
  0x1e   : > { %453 = vmatprep.subr.bf16.mxu0 %v809_v20 }
  0x20   : > { %750 = vmatpush3.bf16.msra.mxu1 %v811_v21 }
  0x21   : > { %454 = vmatpush1.bf16.msra.mxu0 %v812_v22  ;;  %751 = vmatprep.subr.bf16.mxu1 %v841_v1 }
  0x22   : > { %455 = vmatprep.subr.bf16.mxu0 %v813_v23 }
  0x24   : > { %752 = vmatpush3.bf16.msra.mxu1 %v815_v24 }
  0x25   : > { %456 = vmatpush1.bf16.msra.mxu0 %v816_v25 }
  0x27   : > { %754 = vmatmul.mubr.bf16.vlgmr.msra.gmra.mrb[0].mxu1 %v280_v26 }
  0x28   : > { %474 = vmatmul.mubr.bf16.vlgmr.msra.gmra.mrb[0].mxu0 %v280_v26 }
  0xfa   : > { %v516_v36 = vpop.f32.mrb[0].mxu1 }
  0xfb   : > { %v553_v37 = vadd.f32 %v547_v33, %v516_v36  ;;  %v475_v38 = vpop.f32.mrb[0].mxu0  ;;  %v755_v39 = vpop.f32.mrb[1].mxu1 }
  0xfc   : > { %v551_v40 = vadd.f32 %v539_v34, %v475_v38  ;;  %v477_v41 = vpop.f32.mrb[1].mxu0  ;;  %v519_v42 = vpop.f32.mrb[2].mxu1 }
  0xfd   : > { %v727_v43 = vpack.c.bf16 %v553_v37, %v553_v37  ;;  %v552_v44 = vadd.f32 %v543_v35, %v477_v41  ;;  %v479_v45 = vpop.f32.mrb[2].mxu0  ;;  %v756_v46 = vpop.f32.mrb[3].mxu1 }
  0xfe   : > { %v480_v47 = vpop.f32.mrb[3].mxu0 }
  0xff   : > { %568 = vst [vmem:[%s267_s27 + $0x8] sm:$0xf] %v727_v43  ;;  %v726_v48 = vpack.c.bf16 %v552_v44, %v551_v40 }
 0x101   : > { %567 = vst [vmem:[%s267_s27] sm:$0xff] %v726_v48 }
 0x102 PF: > { %s13_s14 = sadd.s32 1, %s839_s14   ;;  %s984_s12 = smov %s835_s13 }
 0x103   : > { %p10_p5 = scmp.ge.s32.totalorder %s13_s14, 4   ;;  %s985_s13 = smov %s987_s15 }
 0x105   :  { %12 = sbr.rel (!%p10_p5) target bundleno = 2 (0x2), region = 76 }

// kernel: forward.17
= control target key start
LH: loop header
LB: loop body
LE: loop exit
PB: predicated region body
PF: predicated region fallthrough
CT: control target
= control target key end

     0   :  { %v311_v0 = vmov 0.0   ;;  %vm312_vm0 = vmmov 0   ;;  %vm135_vm1 = vcmask 1041409   ;;  %vm137_vm2 = vcmask 1042434   ;;  %s386_s1 = inlined_call_operand.vmem [shape: bf16[128,128], index: 1, kind: input, shape index: {}]   ;;  %s387_s0 = inlined_call_operand.vmem [shape: bf16[8,8,128], index: 0, kind: input, shape index: {}]   ;;  %s388_s2 = inlined_call_operand.vmem [shape: f32[1,128], index: 2, kind: input, shape index: {}]   ;;  %s389_s3 = inlined_call_operand.vmem [shape: f32[8,128], index: 3, kind: output, shape index: {}]  }
   0x1   :  { %281 = vmatprep.subr.bf16.mxu0 %v311_v0  ;;  %v303_v1 = vld [vmem:[%s386_s1] sm:$0xff]   ;;  %297 = vmatprep.mubr.msk.bf16.mxu0 %vm312_vm0, %v311_v0  ;;  %v304_v2 = vld [vmem:[%s386_s1 + $0x8] sm:$0xff]   ;;  %v305_v3 = vld [vmem:[%s386_s1 + $0x10] sm:$0xff]   ;;  %vm139_vm3 = vcmask 1043459   ;;  %vm141_vm4 = vcmask 1044484   ;;  %vm143_vm5 = vcmask 1045509  }
   0x2   :  { %282 = vmatpush3.bf16.msra.mxu0 %v303_v1  ;;  %v254_v4 = vld [vmem:[%s387_s0] sm:$0xff]   ;;  %v269_v5 = vld [vmem:[%s387_s0 + $0x8] sm:$0xff]   ;;  %v270_v6 = vld [vmem:[%s387_s0 + $0x10] sm:$0xff]   ;;  %vm145_vm6 = vcmask 1046534   ;;  %vm147_vm7 = vcmask 1047559  }
   0x3   :  { %283 = vmatprep.subr.bf16.mxu0 %v311_v0  ;;  %v255_v7 = vunpack.c.l.bf16 %v254_v4  ;;  %v256_v8 = vunpack.c.h.bf16 %v254_v4  ;;  %v259_v9 = vunpack.c.l.bf16 %v269_v5  ;;  %v260_v10 = vunpack.c.h.bf16 %v269_v5  ;;  %v271_v11 = vld [vmem:[%s387_s0 + $0x18] sm:$0xff]   ;;  %v307_v29 = vld [vmem:[%s386_s1 + $0x20] sm:$0xff]   ;;  %v308_v46 = vld [vmem:[%s386_s1 + $0x28] sm:$0xff]  }
   0x4   :  { %v306_v12 = vld [vmem:[%s386_s1 + $0x18] sm:$0xff]   ;;  %v263_v13 = vunpack.c.l.bf16 %v270_v6  ;;  %v264_v14 = vunpack.c.h.bf16 %v270_v6  ;;  %v267_v15 = vunpack.c.l.bf16 %v271_v11  ;;  %v268_v16 = vunpack.c.h.bf16 %v271_v11  ;;  %v309_v63 = vld [vmem:[%s386_s1 + $0x30] sm:$0xff]  }
   0x5   :  { %v31_v17 = vrot.slane %v255_v7, 4  ;;  %v37_v18 = vrot.slane %v256_v8, 4  ;;  %v43_v19 = vrot.slane %v259_v9, 4  ;;  %v49_v20 = vrot.slane %v260_v10, 4 }
   0x6   :  { %284 = vmatpush3.bf16.msra.mxu0 %v304_v2  ;;  %v55_v21 = vrot.slane %v263_v13, 4  ;;  %v61_v22 = vrot.slane %v264_v14, 4  ;;  %v67_v23 = vrot.slane %v267_v15, 4  ;;  %v73_v24 = vrot.slane %v268_v16, 4 }
   0x7   :  { %285 = vmatprep.subr.bf16.mxu0 %v311_v0  ;;  %v32_v25 = vadd.f32 %v255_v7, %v31_v17  ;;  %v38_v26 = vadd.f32 %v256_v8, %v37_v18  ;;  %v44_v27 = vadd.f32 %v259_v9, %v43_v19  ;;  %v50_v28 = vadd.f32 %v260_v10, %v49_v20  ;;  %v310_v17 = vld [vmem:[%s386_s1 + $0x38] sm:$0xff]  }
   0x8   :  { %v56_v30 = vadd.f32 %v263_v13, %v55_v21  ;;  %v62_v31 = vadd.f32 %v264_v14, %v61_v22  ;;  %v68_v32 = vadd.f32 %v267_v15, %v67_v23  ;;  %v74_v33 = vadd.f32 %v268_v16, %v73_v24 }
   0x9   :  { %v33_v34 = vrot.slane %v32_v25, 2  ;;  %v39_v35 = vrot.slane %v38_v26, 2  ;;  %v45_v36 = vrot.slane %v44_v27, 2  ;;  %v51_v37 = vrot.slane %v50_v28, 2 }
   0xa   :  { %286 = vmatpush3.bf16.msra.mxu0 %v305_v3  ;;  %v57_v38 = vrot.slane %v56_v30, 2  ;;  %v63_v39 = vrot.slane %v62_v31, 2  ;;  %v69_v40 = vrot.slane %v68_v32, 2  ;;  %v75_v41 = vrot.slane %v74_v33, 2 }
   0xb   :  { %287 = vmatprep.subr.bf16.mxu0 %v311_v0  ;;  %v34_v42 = vadd.f32 %v33_v34, %v32_v25  ;;  %v40_v43 = vadd.f32 %v39_v35, %v38_v26  ;;  %v46_v44 = vadd.f32 %v45_v36, %v44_v27  ;;  %v52_v45 = vadd.f32 %v51_v37, %v50_v28  ;;  %v244_v37 = vld [vmem:[%s388_s2] ss:$0 sm:$0xff] }
   0xc   :  { %v58_v47 = vadd.f32 %v57_v38, %v56_v30  ;;  %v64_v48 = vadd.f32 %v63_v39, %v62_v31  ;;  %v70_v49 = vadd.f32 %v69_v40, %v68_v32  ;;  %v76_v50 = vadd.f32 %v75_v41, %v74_v33 }
   0xd   :  { %v35_v51 = vrot.slane %v34_v42, 1  ;;  %v41_v52 = vrot.slane %v40_v43, 1  ;;  %v47_v53 = vrot.slane %v46_v44, 1  ;;  %v53_v54 = vrot.slane %v52_v45, 1 }
   0xe   :  { %288 = vmatpush3.bf16.msra.mxu0 %v306_v12  ;;  %v59_v55 = vrot.slane %v58_v47, 1  ;;  %v65_v56 = vrot.slane %v64_v48, 1  ;;  %v71_v57 = vrot.slane %v70_v49, 1  ;;  %v77_v58 = vrot.slane %v76_v50, 1 }
   0xf   :  { %289 = vmatprep.subr.bf16.mxu0 %v311_v0  ;;  %v36_v59 = vadd.f32 %v35_v51, %v34_v42  ;;  %v42_v60 = vadd.f32 %v41_v52, %v40_v43  ;;  %v48_v61 = vadd.f32 %v47_v53, %v46_v44  ;;  %v54_v62 = vadd.f32 %v53_v54, %v52_v45 }
  0x10   :  { %v60_v1 = vadd.f32 %v59_v55, %v58_v47  ;;  %v66_v2 = vadd.f32 %v65_v56, %v64_v48  ;;  %v72_v3 = vadd.f32 %v71_v57, %v70_v49  ;;  %v78_v4 = vadd.f32 %v77_v58, %v76_v50 }
  0x11   :  { %v80_v5 = vmul.f32 0.125, %v36_v59  ;;  %v81_v6 = vmul.f32 0.125, %v42_v60  ;;  %v82_v7 = vmul.f32 0.125, %v48_v61  ;;  %v83_v8 = vmul.f32 0.125, %v54_v62 }
  0x12   :  { %290 = vmatpush3.bf16.msra.mxu0 %v307_v29  ;;  %v84_v9 = vmul.f32 0.125, %v60_v1  ;;  %v85_v10 = vmul.f32 0.125, %v66_v2  ;;  %v86_v11 = vmul.f32 0.125, %v72_v3  ;;  %v87_v12 = vmul.f32 0.125, %v78_v4 }
  0x13   :  { %291 = vmatprep.subr.bf16.mxu0 %v311_v0  ;;  %v88_v13 = vpack.c.bf16 %v80_v5, %v80_v5  ;;  %v89_v14 = vpack.c.bf16 %v81_v6, %v81_v6  ;;  %v90_v15 = vpack.c.bf16 %v82_v7, %v82_v7  ;;  %v91_v16 = vpack.c.bf16 %v83_v8, %v83_v8 }
  0x14   :  { %v92_v18 = vpack.c.bf16 %v84_v9, %v84_v9  ;;  %v93_v19 = vpack.c.bf16 %v85_v10, %v85_v10  ;;  %v94_v20 = vpack.c.bf16 %v86_v11, %v86_v11  ;;  %v95_v21 = vpack.c.bf16 %v87_v12, %v87_v12 }
  0x15   :  { %v127_v22 = vunpack.c.l.b16 %v88_v13  ;;  %v128_v23 = vunpack.c.l.b16 %v89_v14  ;;  %v129_v24 = vunpack.c.l.b16 %v90_v15  ;;  %v130_v25 = vunpack.c.l.b16 %v91_v16 }
  0x16   :  { %292 = vmatpush3.bf16.msra.mxu0 %v308_v46  ;;  %v131_v26 = vunpack.c.l.b16 %v92_v18  ;;  %v132_v27 = vunpack.c.l.b16 %v93_v19  ;;  %v133_v29 = vunpack.c.l.b16 %v94_v20  ;;  %v134_v31 = vunpack.c.l.b16 %v95_v21 }
  0x17   :  { %293 = vmatprep.subr.bf16.mxu0 %v311_v0  ;;  %v136_v28 = vsel %vm135_vm1, %v128_v23, %v127_v22 }
  0x18   :  { %v138_v30 = vsel %vm137_vm2, %v129_v24, %v136_v28 }
  0x19   :  { %v140_v32 = vsel %vm139_vm3, %v130_v25, %v138_v30 }
  0x1a   :  { %294 = vmatpush3.bf16.msra.mxu0 %v309_v63  ;;  %v142_v33 = vsel %vm141_vm4, %v131_v26, %v140_v32 }
  0x1b   :  { %295 = vmatprep.subr.bf16.mxu0 %v311_v0  ;;  %v144_v0 = vsel %vm143_vm5, %v132_v27, %v142_v33 }
  0x1c   :  { %v146_v34 = vsel %vm145_vm6, %v133_v29, %v144_v0 }
  0x1d   :  { %v148_v35 = vsel %vm147_vm7, %v134_v31, %v146_v34 }
  0x1e   :  { %296 = vmatpush3.bf16.msra.mxu0 %v310_v17  ;;  %v149_v36 = vpack.c.b16 %v148_v35, %v148_v35 }
  0x21   :  { %298 = vmatmul.mubr.bf16.vlgmr.msra.gmra.mrb[0].mxu0 %v149_v36 }
  0xf4   :  { %v233_v38 = vpop.f32.mrb[0].mxu0 }
  0xf5   :  { %v234_v39 = vadd.f32 %v244_v37, %v233_v38  ;;  %v299_v40 = vpop.f32.mrb[1].mxu0 }
  0xf6   :  { %v236_v41 = vpop.f32.mrb[2].mxu0 }
  0xf7   :  { %239 = vst [vmem:[%s389_s3] sm:$0xff] %v234_v39  ;;  %v300_v42 = vpop.f32.mrb[3].mxu0 }

// kernel: forward.14
= control target key start
LH: loop header
LB: loop body
LE: loop exit
PB: predicated region body
PF: predicated region fallthrough
CT: control target
= control target key end

     0   :  { %s855_s24 = smov 0   ;;  %s991_s0 = inlined_call_operand.vmem [shape: bf16[16,128], index: 0, kind: input, shape index: {}]   ;;  %s992_s1 = inlined_call_operand.vmem [shape: bf16[128,256], index: 1, kind: input, shape index: {}]   ;;  %s993_s2 = inlined_call_operand.vmem [shape: f32[1,256], index: 2, kind: input, shape index: {}]   ;;  %s994_s3 = inlined_call_operand.vmem [shape: bf16[256,128], index: 3, kind: input, shape index: {}]   ;;  %s995_s4 = inlined_call_operand.vmem [shape: f32[1,128], index: 4, kind: input, shape index: {}]   ;;  %s996_s5 = inlined_call_operand.vmem [shape: f32[1,128], index: 5, kind: input, shape index: {}]   ;;  %s997_s6 = inlined_call_operand.vmem [shape: f32[1,128], index: 6, kind: input, shape index: {}]   ;;  %s998_s7 = inlined_call_operand.vmem [shape: bf16[16,128], index: 7, kind: output, shape index: {}]  }
   0x1 LB: > { %s689_s25 = sadd.s32 4294967295, %s812_s24   ;;  %p693_p0 = scmp.ge.s32.totalorder %s812_s24, 1  ;;  %s812_s24 = sphi %s855_s24, %s17_s24  }
   0x2   : > { %p236_p1 = scmp.lt.s32.totalorder %s812_s24, 3 }
   0x4   : > { %p237_p2 = pnand %p693_p0, %p236_p1 }
   0x5   : > { %v764_v0 = vld [vmem:[%s992_s1 + $0x4] ss:$8 sps:$4 sm:$0xff] (!%p237_p2)   ;;  %v766_v1 = vld [vmem:[%s992_s1] ss:$8 sps:$4 sm:$0xff] (!%p237_p2)   ;;  %v814_v2 = vmov (!%p237_p2), 0   ;;  %p266_p3 = scmp.lt.s32.totalorder (!%p237_p2), %s689_s25, 1  ;;  %v294_v34 = vlaneseq (!%p237_p2) }
   0x6   : > { %240 = sbr.rel (%p237_p2) target bundleno = 791 (0x317), region = 48  ;;  %416 = vmatprep.mubr.bf16.mxu0 (!%p237_p2), %v814_v2  ;;  %384 = vmatprep.subr.bf16.mxu0 (!%p237_p2), %v764_v0  ;;  %v767_v3 = vld [vmem:[%s992_s1 + $0x14] ss:$8 sps:$4 sm:$0xff] (!%p237_p2)   ;;  %v769_v4 = vld [vmem:[%s992_s1 + $0x10] ss:$8 sps:$4 sm:$0xff] (!%p237_p2)   ;;  %v788_v10 = vld [vmem:[%s994_s3 + $0x40] sm:$0xff] (!%p237_p2)  }
   0x7   : > { %385 = vmatpush1.bf16.msra.mxu0 (!%p237_p2), %v766_v1  ;;  %v770_v5 = vld [vmem:[%s992_s1 + $0x24] ss:$8 sps:$4 sm:$0xff] (!%p237_p2)   ;;  %v772_v6 = vld [vmem:[%s992_s1 + $0x20] ss:$8 sps:$4 sm:$0xff] (!%p237_p2)   ;;  %v773_v7 = vld [vmem:[%s992_s1 + $0x34] ss:$8 sps:$4 sm:$0xff] (!%p237_p2)   ;;  %733 = vmatprep.subr.bf16.mxu1 (!%p237_p2), %v788_v10 }
   0x8   : > { %386 = vmatprep.subr.bf16.mxu0 (!%p237_p2), %v767_v3  ;;  %v775_v8 = vld [vmem:[%s992_s1 + $0x30] ss:$8 sps:$4 sm:$0xff] (!%p237_p2)   ;;  %v776_v9 = vld [vmem:[%s992_s1 + $0x44] ss:$8 sps:$4 sm:$0xff] (!%p237_p2)   ;;  %v778_v12 = vld [vmem:[%s992_s1 + $0x40] ss:$8 sps:$4 sm:$0xff] (!%p237_p2)  }
   0x9   : > { %v789_v11 = vld [vmem:[%s994_s3] sm:$0xff] (!%p237_p2)   ;;  %v790_v13 = vld [vmem:[%s994_s3 + $0x48] sm:$0xff] (!%p237_p2)   ;;  %v792_v15 = vld [vmem:[%s994_s3 + $0x50] sm:$0xff] (!%p237_p2)   ;;  %v295_v35 = vshrl.u32 (!%p237_p2), %v294_v34, 7 }
   0xa   : > { %734 = vmatpush3.bf16.msra.mxu1 (!%p237_p2), %v789_v11  ;;  %v791_v14 = vld [vmem:[%s994_s3 + $0x8] sm:$0xff] (!%p237_p2)   ;;  %v779_v16 = vld [vmem:[%s992_s1 + $0x54] ss:$8 sps:$4 sm:$0xff] (!%p237_p2)   ;;  %v781_v17 = vld [vmem:[%s992_s1 + $0x50] ss:$8 sps:$4 sm:$0xff] (!%p237_p2)  }
   0xb   : > { %387 = vmatpush1.bf16.msra.mxu0 (!%p237_p2), %v769_v4  ;;  %735 = vmatprep.subr.bf16.mxu1 (!%p237_p2), %v790_v13  ;;  %v793_v18 = vld [vmem:[%s994_s3 + $0x10] sm:$0xff] (!%p237_p2)   ;;  %v794_v19 = vld [vmem:[%s994_s3 + $0x58] sm:$0xff] (!%p237_p2)   ;;  %v782_v20 = vld [vmem:[%s992_s1 + $0x64] ss:$8 sps:$4 sm:$0xff] (!%p237_p2)   ;;  %v296_v36 = vsub.s32 (!%p237_p2), 0, %v295_v35  ;;  %v300_v38 = vsub.s32 (!%p237_p2), 1, %v295_v35 }
   0xc   : > { %388 = vmatprep.subr.bf16.mxu0 (!%p237_p2), %v770_v5  ;;  %v784_v21 = vld [vmem:[%s992_s1 + $0x60] ss:$8 sps:$4 sm:$0xff] (!%p237_p2)   ;;  %v785_v22 = vld [vmem:[%s992_s1 + $0x74] ss:$8 sps:$4 sm:$0xff] (!%p237_p2)   ;;  %v787_v26 = vld [vmem:[%s992_s1 + $0x70] ss:$8 sps:$4 sm:$0xff] (!%p237_p2)  }
   0xd   : > { %s1000_s25 = smov (!%p266_p3, %s689_s25), 1  ;;  %v795_v23 = vld [vmem:[%s994_s3 + $0x18] sm:$0xff]   ;;  %v796_v24 = vld [vmem:[%s994_s3 + $0x60] sm:$0xff]   ;;  %v798_v27 = vld [vmem:[%s994_s3 + $0x68] sm:$0xff]  }
   0xe   : > { %736 = vmatpush3.bf16.msra.mxu1 %v791_v14  ;;  %s694_s30 = sshll.u32 %s1000_s25, 2  ;;  %v797_v25 = vld [vmem:[%s994_s3 + $0x20] sm:$0xff]   ;;  %v799_v28 = vld [vmem:[%s994_s3 + $0x28] sm:$0xff]   ;;  %v800_v30 = vld [vmem:[%s994_s3 + $0x70] sm:$0xff]  }
   0xf   : > { %389 = vmatpush1.bf16.msra.mxu0 %v772_v6  ;;  %737 = vmatprep.subr.bf16.mxu1 %v792_v15  ;;  %s269_s18 = scalar_lea.vmem %s991_s0, %s694_s30  ;;  %v801_v31 = vld [vmem:[%s994_s3 + $0x30] sm:$0xff]   ;;  %v802_v32 = vld [vmem:[%s994_s3 + $0x78] sm:$0xff]   ;;  %v292_v37 = vld [vmem:[%s993_s2] sm:$0x3]  ;;  %s273_s19 = scalar_lea.vmem %s998_s7, %s694_s30 }
  0x10   : > { %390 = vmatprep.subr.bf16.mxu0 %v773_v7  ;;  %v275_v29 = vld [vmem:[%s269_s18] sm:$0xf]  ;;  %v803_v33 = vld [vmem:[%s994_s3 + $0x38] sm:$0xff]   ;;  %v297_v39 = vrot.slane %v292_v37, %v296_v36  ;;  %v301_v40 = vrot.slane %v292_v37, %v300_v38 }
  0x11   : > { %v712_v52 = vld [vmem:[%s995_s4] ss:$0 sm:$0xff]  ;;  %v604_v54 = vunpack.c.l.bf16 %v275_v29 }
  0x12   : > { %738 = vmatpush3.bf16.msra.mxu1 %v793_v18  ;;  %v729_v4 = vld [vmem:[%s996_s5] ss:$0 sm:$0xff] }
  0x13   : > { %391 = vmatpush1.bf16.msra.mxu0 %v775_v8  ;;  %739 = vmatprep.subr.bf16.mxu1 %v794_v19  ;;  %v730_v6 = vld [vmem:[%s997_s6] ss:$0 sm:$0xff] }
  0x14   : > { %392 = vmatprep.subr.bf16.mxu0 %v776_v9 }
  0x16   : > { %740 = vmatpush3.bf16.msra.mxu1 %v795_v23 }
  0x17   : > { %393 = vmatpush1.bf16.msra.mxu0 %v778_v12  ;;  %741 = vmatprep.subr.bf16.mxu1 %v796_v24 }
  0x18   : > { %394 = vmatprep.subr.bf16.mxu0 %v779_v16 }
  0x1a   : > { %742 = vmatpush3.bf16.msra.mxu1 %v797_v25 }
  0x1b   : > { %395 = vmatpush1.bf16.msra.mxu0 %v781_v17  ;;  %743 = vmatprep.subr.bf16.mxu1 %v798_v27 }
  0x1c   : > { %396 = vmatprep.subr.bf16.mxu0 %v782_v20 }
  0x1e   : > { %744 = vmatpush3.bf16.msra.mxu1 %v799_v28 }
  0x1f   : > { %397 = vmatpush1.bf16.msra.mxu0 %v784_v21  ;;  %745 = vmatprep.subr.bf16.mxu1 %v800_v30 }
  0x20   : > { %398 = vmatprep.subr.bf16.mxu0 %v785_v22 }
  0x22   : > { %746 = vmatpush3.bf16.msra.mxu1 %v801_v31 }
  0x23   : > { %399 = vmatpush1.bf16.msra.mxu0 %v787_v26  ;;  %747 = vmatprep.subr.bf16.mxu1 %v802_v32 }
  0x26   : > { %417 = vmatmul.mubr.bf16.vlgmr.msra.gmra.mrb[0].mxu0 %v275_v29  ;;  %748 = vmatpush3.bf16.msra.mxu1 %v803_v33 }
  0xf9   : > { %v418_v41 = vpop.f32.mrb[0].mxu0 }
  0xfa   : > { %v419_v42 = vadd.f32 %v418_v41, %v297_v39  ;;  %v420_v43 = vpop.f32.mrb[1].mxu0 }
  0xfb   : > { %v421_v44 = vadd.f32 %v420_v43, %v301_v40  ;;  %v422_v45 = vpop.f32.mrb[2].mxu0 }
  0xfc   : > { %v425_v46 = vmax.f32 %v419_v42, 0.0  ;;  %v423_v47 = vpop.f32.mrb[3].mxu0 }
  0xfd   : > { %v426_v48 = vmax.f32 %v421_v44, 0.0 }
  0xfe   : > { %v427_v50 = vpack.c.bf16 %v425_v46, %v425_v46 }
  0xff   : > { %v428_v49 = vpack.c.bf16 %v426_v48, %v426_v48 }
 0x101   : > { %596 = vmatprep.mubr.bf16.mxu1 %v428_v49 }
 0x102   : > { %597 = vmatmul.mubr.bf16.vlgmr.msra.gmra.mrb[0].mxu1 %v427_v50 }
 0x1d5   : > { %v749_v51 = vpop.f32.mrb[0].mxu1 }
 0x1d6   : > { %v750_v53 = vpop.f32.mrb[1].mxu1 }
 0x1d7   : > { %v751_v55 = vadd.f32 %v750_v53, %v749_v51  ;;  %v752_v56 = vpop.f32.mrb[2].mxu1 }
 0x1d8   : > { %v753_v57 = vpop.f32.mrb[3].mxu1 }
 0x1d9   : > { %v599_v58 = vadd.f32 %v751_v55, %v712_v52 }
 0x1db   : > { %v605_v59 = vadd.f32 %v604_v54, %v599_v58 }
 0x1dd   : > { %606 = vadd.xlane.f32.xlu0 %v605_v59 }
 0x26a   : > { %v607_v60 = vpop.xlane.xlu0 %606 }
 0x26b   : > { %v609_v61 = vmul.f32 0.0078125, %v607_v60 }
 0x26d   : > { %v610_v62 = vsub.f32 %v605_v59, %v609_v61 }
 0x26f   : > { %v611_v63 = vmul.f32 %v610_v62, %v610_v62 }
 0x271   : > { %612 = vadd.xlane.f32.xlu0 %v611_v63 }
 0x2fe   : > { %v613_v0 = vpop.xlane.xlu0 %612 }
 0x2ff   : > { %v614_v1 = vmul.f32 0.0078125, %v613_v0 }
 0x301   : > { %v615_v2 = vadd.f32 1e-05, %v614_v1 }
 0x303   : > { %804 = vrsqrt.f32 %v615_v2 }
 0x30d   : > { %v805_v3 = vpop.eup %804 }
 0x30e   : > { %v617_v5 = vmul.f32 %v805_v3, %v610_v62 }
 0x310   : > { %v625_v7 = vmul.f32 %v729_v4, %v617_v5 }
 0x312   : > { %v633_v8 = vadd.f32 %v730_v6, %v625_v7 }
 0x314   : > { %v634_v9 = vpack.c.bf16 %v633_v8, %v633_v8 }
 0x316   : > { %635 = vst [vmem:[%s273_s19] sm:$0xf] %v634_v9 }
 0x317 PF: > { %s17_s24 = sadd.s32 1, %s812_s24  }
 0x318   : > { %p14_p4 = scmp.ge.s32.totalorder %s17_s24, 4  }
 0x31a   :  { %16 = sbr.rel (!%p14_p4) target bundleno = 1 (0x1), region = 78 }

// kernel: forward.13
= control target key start
LH: loop header
LB: loop body
LE: loop exit
PB: predicated region body
PF: predicated region fallthrough
CT: control target
= control target key end

     0   :  { %s1635_s24 = smov 0   ;;  %s1887_s0 = inlined_call_operand.vmem [shape: bf16[2,8,128], index: 0, kind: input, shape index: {}]   ;;  %s1888_s1 = inlined_call_operand.vmem [shape: bf16[128,384], index: 1, kind: input, shape index: {}]   ;;  %s1889_s2 = inlined_call_operand.vmem [shape: f32[1,384], index: 2, kind: input, shape index: {}]   ;;  %s1890_s3 = inlined_call_operand.vmem [shape: bf16[128,128], index: 3, kind: input, shape index: {}]   ;;  %s1891_s4 = inlined_call_operand.vmem [shape: f32[1,128], index: 4, kind: input, shape index: {}]   ;;  %s1892_s5 = inlined_call_operand.vmem [shape: f32[1,128], index: 5, kind: input, shape index: {}]   ;;  %s1893_s6 = inlined_call_operand.vmem [shape: f32[1,128], index: 6, kind: input, shape index: {}]   ;;  %s1894_s7 = inlined_call_operand.vmem [shape: bf16[2,8,128], index: 7, kind: output, shape index: {}]  }
   0x1 LB: > { %s1316_s25 = sadd.s32 4294967295, %s1587_s24   ;;  %p1320_p0 = scmp.ge.s32.totalorder %s1587_s24, 1  ;;  %s1587_s24 = sphi %s1635_s24, %s17_s24  }
   0x2   : > { %p236_p1 = scmp.lt.s32.totalorder %s1587_s24, 3 }
   0x4   : > { %p237_p2 = pnand %p1320_p0, %p236_p1 }
   0x5   : > { %v1523_v0 = vld [vmem:[%s1888_s1 + $0x4] ss:$12 sps:$4 sm:$0xff] (!%p237_p2)   ;;  %v1525_v1 = vld [vmem:[%s1888_s1] ss:$12 sps:$4 sm:$0xff] (!%p237_p2)   ;;  %v1589_v2 = vmov (!%p237_p2), 0   ;;  %p266_p3 = scmp.lt.s32.totalorder (!%p237_p2), %s1316_s25, 1  ;;  %v310_v19 = vlaneseq (!%p237_p2) }
   0x6   : > { %240 = sbr.rel (%p237_p2) target bundleno = 2944 (0xb80), region = 48  ;;  %485 = vmatprep.mubr.bf16.mxu0 (!%p237_p2), %v1589_v2  ;;  %453 = vmatprep.subr.bf16.mxu0 (!%p237_p2), %v1523_v0  ;;  %v1526_v3 = vld [vmem:[%s1888_s1 + $0x1c] ss:$12 sps:$4 sm:$0xff] (!%p237_p2)   ;;  %v1528_v4 = vld [vmem:[%s1888_s1 + $0x18] ss:$12 sps:$4 sm:$0xff] (!%p237_p2)   ;;  %v1590_v18 = vmov (!%p237_p2), 0.0  }
   0x7   : > { %454 = vmatpush1.bf16.msra.mxu0 (!%p237_p2), %v1525_v1  ;;  %v1529_v5 = vld [vmem:[%s1888_s1 + $0x34] ss:$12 sps:$4 sm:$0xff] (!%p237_p2)   ;;  %v1531_v6 = vld [vmem:[%s1888_s1 + $0x30] ss:$12 sps:$4 sm:$0xff] (!%p237_p2)   ;;  %v1532_v7 = vld [vmem:[%s1888_s1 + $0x4c] ss:$12 sps:$4 sm:$0xff] (!%p237_p2)   ;;  %1409 = vmatprep.subr.bf16.mxu1 (!%p237_p2), %v1590_v18 }
   0x8   : > { %455 = vmatprep.subr.bf16.mxu0 (!%p237_p2), %v1526_v3  ;;  %v1534_v8 = vld [vmem:[%s1888_s1 + $0x48] ss:$12 sps:$4 sm:$0xff] (!%p237_p2)   ;;  %v1535_v9 = vld [vmem:[%s1888_s1 + $0x64] ss:$12 sps:$4 sm:$0xff] (!%p237_p2)   ;;  %v1537_v10 = vld [vmem:[%s1888_s1 + $0x60] ss:$12 sps:$4 sm:$0xff] (!%p237_p2)  }
   0x9   : > { %v1538_v11 = vld [vmem:[%s1888_s1 + $0x7c] ss:$12 sps:$4 sm:$0xff] (!%p237_p2)   ;;  %v1540_v12 = vld [vmem:[%s1888_s1 + $0x78] ss:$12 sps:$4 sm:$0xff] (!%p237_p2)   ;;  %v1541_v13 = vld [vmem:[%s1888_s1 + $0x94] ss:$12 sps:$4 sm:$0xff] (!%p237_p2)  }
   0xa   : > { %v1543_v14 = vld [vmem:[%s1888_s1 + $0x90] ss:$12 sps:$4 sm:$0xff] (!%p237_p2)   ;;  %v1544_v15 = vld [vmem:[%s1888_s1 + $0xac] ss:$12 sps:$4 sm:$0xff] (!%p237_p2)   ;;  %v1546_v16 = vld [vmem:[%s1888_s1 + $0xa8] ss:$12 sps:$4 sm:$0xff] (!%p237_p2)  }
   0xb   : > { %456 = vmatpush1.bf16.msra.mxu0 (!%p237_p2), %v1528_v4  ;;  %vm1591_vm0 = vmmov (!%p237_p2), 0   ;;  %v1708_v20 = vshrl.u32 (!%p237_p2), %v310_v19, 7  ;;  %v1714_v22 = vld [vmem:[%s1889_s2] sm:$0x7] (!%p237_p2)  ;;  %vm537_vm1 = vcmask (!%p237_p2), 261120   ;;  %s1592_s20 = smov (!%p237_p2), 96  }
   0xc   : > { %457 = vmatprep.subr.bf16.mxu0 (!%p237_p2), %v1529_v5  ;;  %1425 = vmatprep.mubr.msk.bf16.mxu1 (!%p237_p2), %vm1591_vm0, %v1590_v18  ;;  %v1547_v35 = vld [vmem:[%s1888_s1 + $0x8] ss:$12 sps:$4 sm:$0xff] (!%p237_p2)   ;;  %v1548_v36 = vld [vmem:[%s1888_s1 + $0x20] ss:$12 sps:$4 sm:$0xff] (!%p237_p2)   ;;  %v1549_v37 = vld [vmem:[%s1888_s1 + $0x38] ss:$12 sps:$4 sm:$0xff] (!%p237_p2)  }
   0xd   : > { %s1896_s25 = smov (!%p266_p3, %s1316_s25), 1  ;;  %v316_v21 = vsub.s32 1, %v1708_v20  ;;  %v312_v23 = vsub.s32 0, %v1708_v20  ;;  %1410 = vmatpush3.bf16.msra.mxu1 %v1547_v35  ;;  %v1550_v38 = vld [vmem:[%s1888_s1 + $0x50] ss:$12 sps:$4 sm:$0xff]   ;;  %vm585_vm2 = vcmask 64512  }
   0xe   : > { %s1321_s12 = sshll.u32 %s1896_s25, 2  ;;  %1411 = vmatprep.subr.bf16.mxu1 %v1590_v18  ;;  %v1551_v39 = vld [vmem:[%s1888_s1 + $0x68] ss:$12 sps:$4 sm:$0xff]   ;;  %v1552_v40 = vld [vmem:[%s1888_s1 + $0x80] ss:$12 sps:$4 sm:$0xff]   ;;  %v320_v3 = vsub.s32 2, %v1708_v20 }
   0xf   : > { %458 = vmatpush1.bf16.msra.mxu0 %v1531_v6  ;;  %s269_s17 = scalar_lea.vmem %s1887_s0, %s1321_s12  ;;  %v317_v24 = vrot.slane %v1714_v22, %v316_v21  ;;  %v313_v25 = vrot.slane %v1714_v22, %v312_v23  ;;  %v1553_v43 = vld [vmem:[%s1888_s1 + $0x98] ss:$12 sps:$4 sm:$0xff]   ;;  %v1554_v44 = vld [vmem:[%s1888_s1 + $0xb0] ss:$12 sps:$4 sm:$0xff]   ;;  %vm601_vm3 = vcmask 1043456   ;;  %s1594_s28 = smov 32  }
  0x10   : > { %459 = vmatprep.subr.bf16.mxu0 %v1532_v7  ;;  %v1699_v17 = vld [vmem:[%s269_s17] sm:$0xf]  ;;  %v321_v4 = vrot.slane %v1714_v22, %v320_v3  ;;  %s1593_s17 = smov 64   ;;  %v1557_v19 = vld [vmem:[%s1890_s3 + $0x10] sm:$0xff]   ;;  %v1558_v20 = vld [vmem:[%s1890_s3 + $0x18] sm:$0xff]   ;;  %s273_s23 = scalar_lea.vmem %s1894_s7, %s1321_s12 }
  0x11   : > { %1412 = vmatpush3.bf16.msra.mxu1 %v1548_v36 }
  0x12   : > { %1413 = vmatprep.subr.bf16.mxu1 %v1590_v18 }
  0x13   : > { %460 = vmatpush1.bf16.msra.mxu0 %v1534_v8 }
  0x14   : > { %461 = vmatprep.subr.bf16.mxu0 %v1535_v9 }
  0x15   : > { %1414 = vmatpush3.bf16.msra.mxu1 %v1549_v37 }
  0x16   : > { %1415 = vmatprep.subr.bf16.mxu1 %v1590_v18 }
  0x17   : > { %462 = vmatpush1.bf16.msra.mxu0 %v1537_v10 }
  0x18   : > { %463 = vmatprep.subr.bf16.mxu0 %v1538_v11 }
  0x19   : > { %1416 = vmatpush3.bf16.msra.mxu1 %v1550_v38 }
  0x1a   : > { %1417 = vmatprep.subr.bf16.mxu1 %v1590_v18 }
  0x1b   : > { %464 = vmatpush1.bf16.msra.mxu0 %v1540_v12 }
  0x1c   : > { %465 = vmatprep.subr.bf16.mxu0 %v1541_v13 }
  0x1d   : > { %1418 = vmatpush3.bf16.msra.mxu1 %v1551_v39 }
  0x1e   : > { %1419 = vmatprep.subr.bf16.mxu1 %v1590_v18 }
  0x1f   : > { %466 = vmatpush1.bf16.msra.mxu0 %v1543_v14 }
  0x20   : > { %467 = vmatprep.subr.bf16.mxu0 %v1544_v15 }
  0x21   : > { %1420 = vmatpush3.bf16.msra.mxu1 %v1552_v40 }
  0x22   : > { %1421 = vmatprep.subr.bf16.mxu1 %v1590_v18 }
  0x23   : > { %468 = vmatpush1.bf16.msra.mxu0 %v1546_v16 }
  0x24   : > { %1429 = vmatprep.subr.bf16.mxu0 %v1590_v18 }
  0x25   : > { %1422 = vmatpush3.bf16.msra.mxu1 %v1553_v43 }
  0x26   : > { %486 = vmatmul.mubr.bf16.vlgmr.msra.gmra.mrb[0].mxu0 %v1699_v17  ;;  %1423 = vmatprep.subr.bf16.mxu1 %v1590_v18 }
  0x27   : > { %1431 = vmatprep.mubr.msk.bf16.mxu0 %vm1591_vm0, %v1590_v18 }
  0x29   : > { %1424 = vmatpush3.bf16.msra.mxu1 %v1554_v44 }
  0x2a   : > { %1435 = vmatprep.subr.bf16.mxu1 %v1590_v18 }
  0x2c   : > { %1426 = vmatmul.mubr.bf16.vlgmr.msra.gmra.mrb[0].mxu1 %v1699_v17 }
  0x2d   : > { %1437 = vmatprep.mubr.msk.bf16.mxu1 %vm1591_vm0, %v1590_v18 }
  0xf9   : > { %v487_v26 = vpop.f32.mrb[0].mxu0 }
  0xfa   : > { %v489_v27 = vpop.f32.mrb[1].mxu0  ;;  %v488_v31 = vadd.f32 %v487_v26, %v313_v25  ;;  %v1555_v26 = vld [vmem:[%s1890_s3] sm:$0xff]  }
  0xfb   : > { %v490_v28 = vadd.f32 %v489_v27, %v317_v24  ;;  %v491_v29 = vpop.f32.mrb[2].mxu0 }
  0xfc   : > { %v492_v30 = vpop.f32.mrb[3].mxu0  ;;  %v1725_v34 = vpack.c.bf16 %v488_v31, %v488_v31 }
  0xfd   : > { %v1719_v32 = vpack.c.bf16 %v490_v28, %v490_v28  ;;  %v1556_v28 = vld [vmem:[%s1890_s3 + $0x8] sm:$0xff]  }
  0xff   : > { %654 = vrot.lane.b32.xlu0 %v1719_v32, %s1592_s20  ;;  %v542_v33 = vsel %vm537_vm1, %v1719_v32, 0  ;;  %v528_v61 = vpop.f32.mrb[0].mxu1 }
 0x100   : > { %1430 = vmatpush3.bf16.xpose.msra.mxu0 %v542_v33  ;;  %v1427_v62 = vpop.f32.mrb[1].mxu1  ;;  %v529_v5 = vadd.f32 %v528_v61, %v321_v4 }
 0x101   : > { %1441 = vmatprep.subr.bf16.mxu0 %v1590_v18  ;;  %v531_v63 = vpop.f32.mrb[2].mxu1 }
 0x102   : > { %v1428_v0 = vpop.f32.mrb[3].mxu1  ;;  %v1779_v6 = vpack.c.bf16 %v529_v5, %v529_v5 }
 0x103   : > { %651 = vrot.lane.b32.xlu0 %v1725_v34, %s1592_s20 }
 0x104   : > { %v603_v7 = vsel %vm601_vm3, %v1779_v6, 0 }
 0x105   : > { %1436 = vmatpush3.bf16.msra.mxu1 %v603_v7 }
 0x106   : > { %1447 = vmatprep.subr.bf16.mxu1 %v1590_v18 }
 0x107   : > { %1432 = vmatmul.mubr.msk.bf16.vlgmr.msra.gmra.mrb[4].mxu0 %vm537_vm1, %v1725_v34 }
 0x108   : > { %1443 = vmatprep.mubr.msk.bf16.mxu0 %vm1591_vm0, %v1590_v18 }
 0x171   : > { %v655_v41 = vpop.permute.xlu0 %654 }
 0x172   : > { %v660_v42 = vsel %vm537_vm1, %v655_v41, 0 }
 0x173   : > { %1442 = vmatpush3.bf16.xpose.msra.mxu0 %v660_v42 }
 0x174   : > { %1453 = vmatprep.subr.bf16.mxu0 %v1590_v18 }
 0x175   : > { %v652_v45 = vpop.permute.xlu0 %651 }
 0x17a   : > { %1444 = vmatmul.mubr.msk.bf16.vlgmr.msra.gmra.mrb[8].mxu0 %vm537_vm1, %v652_v45 }
 0x17b   : > { %1457 = vmatprep.mubr.msk.bf16.mxu0 %vm1591_vm0, %v1590_v18  ;;  %1454 = vmatpush3.bf16.msra.mxu0 %v1557_v19 }
 0x17c   : > { %1455 = vmatprep.subr.bf16.mxu0 %v1590_v18 }
 0x17f   : > { %1456 = vmatpush3.bf16.msra.mxu0 %v1558_v20 }
 0x180   : > { %1469 = vmatprep.subr.bf16.mxu0 %v1590_v18 }
 0x1da   : > { %v578_v46 = vpop.f32.mrb[4].mxu0 }
 0x1db   : > { %v584_v47 = vmul.f32 0.17677669, %v578_v46  ;;  %v1433_v48 = vpop.f32.mrb[5].mxu0 }
 0x1dc   : > { %v581_v49 = vpop.f32.mrb[6].mxu0 }
 0x1dd   : > { %v1434_v50 = vpop.f32.mrb[7].mxu0  ;;  %v586_v51 = vsel %vm585_vm2, %v584_v47, -inf }
 0x1de   : > { %587 = vmax.xlane.f32.xlu1 %v586_v51 }
 0x24d   : > { %v696_v52 = vpop.f32.mrb[8].mxu0 }
 0x24e   : > { %v702_v53 = vmul.f32 0.17677669, %v696_v52  ;;  %v1445_v54 = vpop.f32.mrb[9].mxu0 }
 0x24f   : > { %v699_v55 = vpop.f32.mrb[10].mxu0 }
 0x250   : > { %v1446_v56 = vpop.f32.mrb[11].mxu0  ;;  %v703_v57 = vsel %vm585_vm2, %v702_v53, -inf }
 0x251   : > { %704 = vmax.xlane.f32.xlu1 %v703_v57 }
 0x26b   : > { %v588_v58 = vpop.xlane.xlu1 %587 }
 0x26c   : > { %v589_v59 = vsub.f32 %v584_v47, %v588_v58 }
 0x26e   : > { %v590_v60 = vmul.f32 1.442695, %v589_v59 }
 0x270   : > { %1563 = vpow2.f32 %v590_v60 }
 0x27a   : > { %v1564_v1 = vpop.eup %1563 }
 0x27b   : > { %v592_v2 = vsel %vm585_vm2, %v1564_v1, 0.0 }
 0x27c   : > { %593 = vadd.xlane.f32.xlu0 %v592_v2  ;;  %v1559_v2 = vld [vmem:[%s1890_s3 + $0x20] sm:$0xff]  }
 0x292   : > { %942 = vrot.lane.b32.xlu0 %v1779_v6, %s1593_s17 }
 0x2de   : > { %v705_v8 = vpop.xlane.xlu1 %704 }
 0x2df   : > { %v706_v9 = vsub.f32 %v702_v53, %v705_v8 }
 0x2e1   : > { %v707_v10 = vmul.f32 1.442695, %v706_v9 }
 0x2e3   : > { %1565 = vpow2.f32 %v707_v10 }
 0x2ed   : > { %v1566_v11 = vpop.eup %1565 }
 0x2ee   : > { %v709_v12 = vsel %vm585_vm2, %v1566_v11, 0.0 }
 0x2ef   : > { %710 = vadd.xlane.f32.xlu1 %v709_v12 }
 0x300   : > { %716 = vrot.lane.b32.xlu1 %v1779_v6, %s1592_s20 }
 0x304   : > { %881 = vrot.lane.b32.xlu1 %v1719_v32, %s1593_s17 }
 0x308   : > { %879 = vrot.lane.b32.xlu1 %v1725_v34, %s1593_s17 }
 0x309   : > { %v594_v13 = vpop.xlane.xlu0 %593 }
 0x30a   : > { %1567 = vrcp.f32 %v594_v13 }
 0x30d   : > { %v943_v29 = vpop.permute.xlu0 %942 }
 0x30e   : > { %v948_v36 = vsel %vm601_vm3, %v943_v29, 0 }
 0x314   : > { %v1568_v14 = vpop.eup %1567 }
 0x315   : > { %v596_v15 = vmul.f32 %v1568_v14, %v1564_v1 }
 0x317   : > { %v597_v16 = vpack.c.bf16 %v596_v15, %v596_v15 }
 0x319   : > { %1438 = vmatmul.mubr.msk.bf16.vlgmr.msra.gmra.mrb[4].mxu1 %vm585_vm2, %v597_v16 }
 0x31a   : > { %1449 = vmatprep.mubr.msk.bf16.mxu1 %vm1591_vm0, %v1590_v18 }
 0x37c   : > { %v711_v21 = vpop.xlane.xlu1 %710 }
 0x37d   : > { %1569 = vrcp.f32 %v711_v21 }
 0x380   : > { %v717_v22 = vpop.permute.xlu1 %716 }
 0x381   : > { %v722_v23 = vsel %vm601_vm3, %v717_v22, 0 }
 0x382   : > { %1448 = vmatpush3.bf16.msra.mxu1 %v722_v23 }
 0x383   : > { %1461 = vmatprep.subr.bf16.mxu1 %v1590_v18 }
 0x384   : > { %v882_v38 = vpop.permute.xlu1 %881 }
 0x385   : > { %v887_v43 = vsel %vm537_vm1, %v882_v38, 0 }
 0x387   : > { %v1570_v24 = vpop.eup %1569 }
 0x388   : > { %v713_v25 = vmul.f32 %v1570_v24, %v1566_v11  ;;  %v880_v45 = vpop.permute.xlu1 %879 }
 0x38a   : > { %v714_v27 = vpack.c.bf16 %v713_v25, %v713_v25 }
 0x38c   : > { %1450 = vmatmul.mubr.msk.bf16.vlgmr.msra.gmra.mrb[8].mxu1 %vm585_vm2, %v714_v27 }
 0x38d   : > { %1462 = vmatpush3.bf16.msra.mxu1 %v1555_v26  ;;  %1465 = vmatprep.mubr.msk.bf16.mxu1 %vm1591_vm0, %v1590_v18 }
 0x38e   : > { %1463 = vmatprep.subr.bf16.mxu1 %v1590_v18 }
 0x391   : > { %1464 = vmatpush3.bf16.msra.mxu1 %v1556_v28  ;;  %v1561_v28 = vld [vmem:[%s1890_s3 + $0x30] sm:$0xff]  }
 0x392   : > { %1475 = vmatprep.subr.bf16.mxu1 %v1590_v18 }
 0x3ec   : > { %v639_v30 = vpop.f32.mrb[4].mxu1 }
 0x3ed   : > { %v645_v31 = vpack.c.bf16 %v639_v30, %v639_v30  ;;  %v1439_v33 = vpop.f32.mrb[5].mxu1 }
 0x3ee   : > { %v642_v35 = vpop.f32.mrb[6].mxu1 }
 0x3ef   : > { %v1440_v37 = vpop.f32.mrb[7].mxu1  ;;  %1466 = vmatmul.mubr.msk.bf16.vlgmr.msra.gmra.mrb[12].mxu1 %vm537_vm1, %v645_v31 }
 0x3f0   : > { %1476 = vmatpush3.bf16.msra.mxu1 %v948_v36  ;;  %1477 = vmatprep.mubr.msk.bf16.mxu1 %vm1591_vm0, %v1590_v18 }
 0x3f1   : > { %1489 = vmatprep.subr.bf16.mxu1 %v1590_v18 }
 0x45f   : > { %v758_v39 = vpop.f32.mrb[8].mxu1 }
 0x460   : > { %v764_v40 = vpack.c.bf16 %v758_v39, %v758_v39  ;;  %v1451_v41 = vpop.f32.mrb[9].mxu1 }
 0x461   : > { %v761_v42 = vpop.f32.mrb[10].mxu1 }
 0x462   : > { %v1452_v44 = vpop.f32.mrb[11].mxu1  ;;  %1458 = vmatmul.mubr.msk.bf16.vlgmr.msra.gmra.mrb[12].mxu0 %vm537_vm1, %v764_v40 }
 0x463   : > { %1470 = vmatpush3.bf16.xpose.msra.mxu0 %v887_v43  ;;  %1471 = vmatprep.mubr.msk.bf16.mxu0 %vm1591_vm0, %v1590_v18 }
 0x464   : > { %1481 = vmatprep.subr.bf16.mxu0 %v1590_v18 }
 0x46a   : > { %1472 = vmatmul.mubr.msk.bf16.vlgmr.msra.gmra.mrb[16].mxu0 %vm537_vm1, %v880_v45 }
 0x46b   : > { %1485 = vmatprep.mubr.msk.bf16.mxu0 %vm1591_vm0, %v1590_v18  ;;  %1482 = vmatpush3.bf16.msra.mxu0 %v1559_v2 }
 0x46c   : > { %1483 = vmatprep.subr.bf16.mxu0 %v1590_v18 }
 0x4c2   : > { %v873_v46 = vpop.f32.mrb[12].mxu1 }
 0x4c3   : > { %v1467_v47 = vpop.f32.mrb[13].mxu1 }
 0x4c4   : > { %v876_v48 = vpop.f32.mrb[14].mxu1  ;;  %v1367_v47 = vld [vmem:[%s1891_s4] ss:$0 sm:$0xff] }
 0x4c5   : > { %v1468_v49 = vpop.f32.mrb[15].mxu1 }
 0x535   : > { %v818_v50 = vpop.f32.mrb[12].mxu0 }
 0x536   : > { %v1827_v51 = vadd.f32 %v873_v46, %v818_v50  ;;  %v1459_v52 = vpop.f32.mrb[13].mxu0  ;;  %v1231_v50 = vunpack.c.l.bf16 %v1699_v17  ;;  %v1368_v17 = vld [vmem:[%s1892_s5] ss:$0 sm:$0xff] }
 0x537   : > { %v821_v53 = vpop.f32.mrb[14].mxu0 }
 0x538   : > { %v1460_v54 = vpop.f32.mrb[15].mxu0 }
 0x53d   : > { %v923_v55 = vpop.f32.mrb[16].mxu0 }
 0x53e   : > { %v929_v56 = vmul.f32 0.17677669, %v923_v55  ;;  %v1473_v57 = vpop.f32.mrb[17].mxu0 }
 0x53f   : > { %v926_v58 = vpop.f32.mrb[18].mxu0 }
 0x540   : > { %v1474_v59 = vpop.f32.mrb[19].mxu0  ;;  %v930_v60 = vsel %vm585_vm2, %v929_v56, -inf }
 0x541   : > { %931 = vmax.xlane.f32.xlu1 %v930_v60 }
 0x5ce   : > { %v932_v61 = vpop.xlane.xlu1 %931 }
 0x5cf   : > { %v933_v62 = vsub.f32 %v929_v56, %v932_v61 }
 0x5d1   : > { %v934_v63 = vmul.f32 1.442695, %v933_v62 }
 0x5d3   : > { %1571 = vpow2.f32 %v934_v63 }
 0x5dd   : > { %v1572_v0 = vpop.eup %1571 }
 0x5de   : > { %v936_v1 = vsel %vm585_vm2, %v1572_v0, 0.0 }
 0x5df   : > { %937 = vadd.xlane.f32.xlu0 %v936_v1 }
 0x5f5   : > { %1053 = vrot.lane.b32.xlu0 %v1719_v32, %s1594_s28 }
 0x5f9   : > { %1051 = vrot.lane.b32.xlu0 %v1725_v34, %s1594_s28  ;;  %v1560_v34 = vld [vmem:[%s1890_s3 + $0x28] sm:$0xff]  }
 0x5fa   : > { %1484 = vmatpush3.bf16.msra.mxu0 %v1560_v34 }
 0x5fb   : > { %1495 = vmatprep.subr.bf16.mxu0 %v1590_v18 }
 0x66c   : > { %v938_v3 = vpop.xlane.xlu0 %937 }
 0x66d   : > { %1573 = vrcp.f32 %v938_v3 }
 0x670   : > { %v1054_v7 = vpop.permute.xlu0 %1053 }
 0x671   : > { %v1059_v9 = vsel %vm537_vm1, %v1054_v7, 0 }
 0x674   : > { %v1052_v32 = vpop.permute.xlu0 %1051 }
 0x677   : > { %v1574_v4 = vpop.eup %1573 }
 0x678   : > { %v940_v5 = vmul.f32 %v1574_v4, %v1572_v0  ;;  %v1369_v0 = vld [vmem:[%s1893_s6] ss:$0 sm:$0xff] }
 0x67a   : > { %v941_v8 = vpack.c.bf16 %v940_v5, %v940_v5 }
 0x67c   : > { %1478 = vmatmul.mubr.msk.bf16.vlgmr.msra.gmra.mrb[16].mxu1 %vm585_vm2, %v941_v8 }
 0x67d   : > { %1490 = vmatpush3.bf16.xpose.msra.mxu1 %v1059_v9  ;;  %1491 = vmatprep.mubr.msk.bf16.mxu1 %vm1591_vm0, %v1590_v18 }
 0x67e   : > { %1501 = vmatprep.subr.bf16.mxu1 %v1590_v18 }
 0x684   : > { %1492 = vmatmul.mubr.msk.bf16.vlgmr.msra.gmra.mrb[20].mxu1 %vm537_vm1, %v1052_v32 }
 0x685   : > { %1505 = vmatprep.mubr.msk.bf16.mxu1 %vm1591_vm0, %v1590_v18  ;;  %1502 = vmatpush3.bf16.msra.mxu1 %v1561_v28 }
 0x686   : > { %1503 = vmatprep.subr.bf16.mxu1 %v1590_v18 }
 0x74f   : > { %v984_v10 = vpop.f32.mrb[16].mxu1 }
 0x750   : > { %v990_v11 = vpack.c.bf16 %v984_v10, %v984_v10  ;;  %v1479_v12 = vpop.f32.mrb[17].mxu1 }
 0x751   : > { %v987_v13 = vpop.f32.mrb[18].mxu1 }
 0x752   : > { %v1480_v14 = vpop.f32.mrb[19].mxu1  ;;  %1486 = vmatmul.mubr.msk.bf16.vlgmr.msra.gmra.mrb[20].mxu0 %vm537_vm1, %v990_v11 }
 0x753   : > { %1497 = vmatprep.mubr.msk.bf16.mxu0 %vm1591_vm0, %v1590_v18  ;;  %v1562_v18 = vld [vmem:[%s1890_s3 + $0x38] sm:$0xff]  }
 0x754   : > { %1504 = vmatpush3.bf16.msra.mxu1 %v1562_v18 }
 0x757   : > { %v1095_v15 = vpop.f32.mrb[20].mxu1 }
 0x758   : > { %v1101_v16 = vmul.f32 0.17677669, %v1095_v15  ;;  %v1493_v19 = vpop.f32.mrb[21].mxu1 }
 0x759   : > { %v1098_v20 = vpop.f32.mrb[22].mxu1 }
 0x75a   : > { %v1494_v21 = vpop.f32.mrb[23].mxu1  ;;  %v1102_v22 = vsel %vm585_vm2, %v1101_v16, -inf }
 0x75b   : > { %1103 = vmax.xlane.f32.xlu0 %v1102_v22 }
 0x7e8   : > { %v1104_v23 = vpop.xlane.xlu0 %1103 }
 0x7e9   : > { %v1105_v24 = vsub.f32 %v1101_v16, %v1104_v23 }
 0x7eb   : > { %v1106_v25 = vmul.f32 1.442695, %v1105_v24 }
 0x7ed   : > { %1575 = vpow2.f32 %v1106_v25 }
 0x7f7   : > { %v1576_v26 = vpop.eup %1575 }
 0x7f8   : > { %v1108_v27 = vsel %vm585_vm2, %v1576_v26, 0.0 }
 0x7f9   : > { %1109 = vadd.xlane.f32.xlu1 %v1108_v27 }
 0x80a   : > { %1114 = vrot.lane.b32.xlu1 %v1779_v6, %s1594_s28 }
 0x825   : > { %v1044_v29 = vpop.f32.mrb[20].mxu0 }
 0x826   : > { %v1050_v30 = vadd.f32 %v1044_v29, %v1827_v51  ;;  %v1487_v31 = vpop.f32.mrb[21].mxu0 }
 0x827   : > { %v1047_v33 = vpop.f32.mrb[22].mxu0 }
 0x828   : > { %v1488_v35 = vpop.f32.mrb[23].mxu0 }
 0x886   : > { %v1110_v36 = vpop.xlane.xlu1 %1109 }
 0x887   : > { %1577 = vrcp.f32 %v1110_v36 }
 0x88a   : > { %v1115_v37 = vpop.permute.xlu1 %1114 }
 0x88b   : > { %v1120_v38 = vsel %vm601_vm3, %v1115_v37, 0 }
 0x88c   : > { %1496 = vmatpush3.bf16.msra.mxu0 %v1120_v38 }
 0x891   : > { %v1578_v6 = vpop.eup %1577 }
 0x892   : > { %v1112_v39 = vmul.f32 %v1578_v6, %v1576_v26 }
 0x894   : > { %v1113_v40 = vpack.c.bf16 %v1112_v39, %v1112_v39 }
 0x896   : > { %1498 = vmatmul.mubr.msk.bf16.vlgmr.msra.gmra.mrb[24].mxu0 %vm585_vm2, %v1113_v40 }
 0x969   : > { %v1156_v41 = vpop.f32.mrb[24].mxu0 }
 0x96a   : > { %v1162_v42 = vpack.c.bf16 %v1156_v41, %v1156_v41  ;;  %v1499_v43 = vpop.f32.mrb[25].mxu0 }
 0x96b   : > { %v1159_v44 = vpop.f32.mrb[26].mxu0 }
 0x96c   : > { %v1500_v45 = vpop.f32.mrb[27].mxu0  ;;  %1506 = vmatmul.mubr.msk.bf16.vlgmr.msra.gmra.mrb[24].mxu1 %vm537_vm1, %v1162_v42 }
 0xa3f   : > { %v1216_v46 = vpop.f32.mrb[24].mxu1 }
 0xa40   : > { %v1222_v48 = vadd.f32 %v1216_v46, %v1050_v30  ;;  %v1507_v49 = vpop.f32.mrb[25].mxu1 }
 0xa41   : > { %v1219_v51 = vpop.f32.mrb[26].mxu1 }
 0xa42   : > { %v1230_v52 = vadd.f32 %v1367_v47, %v1222_v48  ;;  %v1508_v53 = vpop.f32.mrb[27].mxu1 }
 0xa44   : > { %v1232_v54 = vadd.f32 %v1231_v50, %v1230_v52 }
 0xa46   : > { %1233 = vadd.xlane.f32.xlu1 %v1232_v54 }
 0xad3   : > { %v1234_v55 = vpop.xlane.xlu1 %1233 }
 0xad4   : > { %v1236_v56 = vmul.f32 0.0078125, %v1234_v55 }
 0xad6   : > { %v1237_v57 = vsub.f32 %v1232_v54, %v1236_v56 }
 0xad8   : > { %v1238_v58 = vmul.f32 %v1237_v57, %v1237_v57 }
 0xada   : > { %1239 = vadd.xlane.f32.xlu0 %v1238_v58 }
 0xb67   : > { %v1240_v59 = vpop.xlane.xlu0 %1239 }
 0xb68   : > { %v1241_v60 = vmul.f32 0.0078125, %v1240_v59 }
 0xb6a   : > { %v1242_v61 = vadd.f32 1e-05, %v1241_v60 }
 0xb6c   : > { %1579 = vrsqrt.f32 %v1242_v61 }
 0xb76   : > { %v1580_v62 = vpop.eup %1579 }
 0xb77   : > { %v1244_v63 = vmul.f32 %v1580_v62, %v1237_v57 }
 0xb79   : > { %v1252_v1 = vmul.f32 %v1368_v17, %v1244_v63 }
 0xb7b   : > { %v1260_v2 = vadd.f32 %v1369_v0, %v1252_v1 }
 0xb7d   : > { %v1261_v3 = vpack.c.bf16 %v1260_v2, %v1260_v2 }
 0xb7f   : > { %1262 = vst [vmem:[%s273_s23] sm:$0xf] %v1261_v3 }
 0xb80 PF: > { %s17_s24 = sadd.s32 1, %s1587_s24  }
 0xb81   : > { %p14_p4 = scmp.ge.s32.totalorder %s17_s24, 4  }
 0xb83   :  { %16 = sbr.rel (!%p14_p4) target bundleno = 1 (0x1), region = 78 }

// kernel: forward.12
= control target key start
LH: loop header
LB: loop body
LE: loop exit
PB: predicated region body
PF: predicated region fallthrough
CT: control target
= control target key end

     0   :  { %v1615_v1 = vmov 0.0   ;;  %v1616_v2 = vmov 0   ;;  %vm1617_vm0 = vmmov 0   ;;  %v1618_v25 = vmov 0.0|0.0   ;;  %s2273_s1 = inlined_call_operand.vmem [shape: bf16[128,384], index: 1, kind: input, shape index: {}]   ;;  %s2274_s2 = inlined_call_operand.vmem [shape: f32[1,384], index: 2, kind: input, shape index: {}]   ;;  %s2275_s0 = inlined_call_operand.vmem [shape: bf16[8,8,384], index: 0, kind: input, shape index: {}]   ;;  %s2276_s3 = inlined_call_operand.vmem [shape: f32[8,8,128], index: 3, kind: output, shape index: {}]  }
   0x1   :  { %v1642_v0 = vld [vmem:[%s2273_s1 + $0x4] ss:$12 sps:$4 sm:$0xff]   ;;  %1317 = vmatprep.subr.bf16.mxu1 %v1615_v1  ;;  %232 = vmatprep.mubr.bf16.mxu0 %v1616_v2  ;;  %v1649_v3 = vld [vmem:[%s2273_s1] ss:$12 sps:$4 sm:$0xff]   ;;  %v1657_v4 = vld [vmem:[%s2273_s1 + $0x1c] ss:$12 sps:$4 sm:$0xff]   ;;  %v57_v27 = vlaneseq }
   0x2   :  { %1333 = vmatprep.mubr.msk.bf16.mxu1 %vm1617_vm0, %v1615_v1  ;;  %200 = vmatprep.subr.bf16.mxu0 %v1642_v0  ;;  %v1663_v5 = vld [vmem:[%s2273_s1 + $0x18] ss:$12 sps:$4 sm:$0xff]   ;;  %v1669_v6 = vld [vmem:[%s2273_s1 + $0x34] ss:$12 sps:$4 sm:$0xff]   ;;  %v1675_v7 = vld [vmem:[%s2273_s1 + $0x30] ss:$12 sps:$4 sm:$0xff]  }
   0x3   :  { %201 = vmatpush1.bf16.msra.mxu0 %v1649_v3  ;;  %v1681_v8 = vld [vmem:[%s2273_s1 + $0x4c] ss:$12 sps:$4 sm:$0xff]   ;;  %v1686_v9 = vld [vmem:[%s2273_s1 + $0x8] ss:$12 sps:$4 sm:$0xff]   ;;  %v1697_v11 = vld [vmem:[%s2273_s1 + $0x64] ss:$12 sps:$4 sm:$0xff]  }
   0x4   :  { %202 = vmatprep.subr.bf16.mxu0 %v1657_v4  ;;  %v1692_v10 = vld [vmem:[%s2273_s1 + $0x48] ss:$12 sps:$4 sm:$0xff]   ;;  %1318 = vmatpush3.bf16.msra.mxu1 %v1686_v9  ;;  %v1704_v12 = vld [vmem:[%s2273_s1 + $0x20] ss:$12 sps:$4 sm:$0xff]   ;;  %v1723_v15 = vld [vmem:[%s2273_s1 + $0x38] ss:$12 sps:$4 sm:$0xff]  }
   0x5   :  { %1319 = vmatprep.subr.bf16.mxu1 %v1615_v1  ;;  %v1710_v13 = vld [vmem:[%s2273_s1 + $0x60] ss:$12 sps:$4 sm:$0xff]   ;;  %v1716_v14 = vld [vmem:[%s2273_s1 + $0x7c] ss:$12 sps:$4 sm:$0xff]   ;;  %v1730_v16 = vld [vmem:[%s2273_s1 + $0x78] ss:$12 sps:$4 sm:$0xff]  }
   0x6   :  { %v1736_v17 = vld [vmem:[%s2273_s1 + $0x94] ss:$12 sps:$4 sm:$0xff]   ;;  %v1742_v18 = vld [vmem:[%s2273_s1 + $0x50] ss:$12 sps:$4 sm:$0xff]   ;;  %v1755_v20 = vld [vmem:[%s2273_s1 + $0xac] ss:$12 sps:$4 sm:$0xff]  }
   0x7   :  { %203 = vmatpush1.bf16.msra.mxu0 %v1663_v5  ;;  %v1749_v19 = vld [vmem:[%s2273_s1 + $0x90] ss:$12 sps:$4 sm:$0xff]   ;;  %v1761_v21 = vld [vmem:[%s2273_s1 + $0x68] ss:$12 sps:$4 sm:$0xff]   ;;  %v1775_v23 = vld [vmem:[%s2273_s1 + $0x80] ss:$12 sps:$4 sm:$0xff]  }
   0x8   :  { %204 = vmatprep.subr.bf16.mxu0 %v1669_v6  ;;  %1320 = vmatpush3.bf16.msra.mxu1 %v1704_v12  ;;  %v1768_v22 = vld [vmem:[%s2273_s1 + $0xa8] ss:$12 sps:$4 sm:$0xff]   ;;  %v1783_v24 = vld [vmem:[%s2273_s1 + $0x98] ss:$12 sps:$4 sm:$0xff]   ;;  %v1793_v26 = vld [vmem:[%s2273_s1 + $0xb0] ss:$12 sps:$4 sm:$0xff]  }
   0x9   :  { %1321 = vmatprep.subr.bf16.mxu1 %v1615_v1  ;;  %v58_v28 = vshrl.u32 %v57_v27, 7  ;;  %v53_v30 = vld [vmem:[%s2274_s2] sm:$0x7]  ;;  %v282_v56 = vld [vmem:[%s2275_s0 + $0x8] sm:$0xf]  ;;  %vm310_vm1 = vcmask 523264  }
   0xa   :  { %v281_v32 = vld [vmem:[%s2275_s0] sm:$0xff]  ;;  %v285_v59 = vunpack.c.l.bf16 %v282_v56  ;;  %vm315_vm2 = vcmask 1048064  }
   0xb   :  { %205 = vmatpush1.bf16.msra.mxu0 %v1675_v7  ;;  %v59_v29 = vsub.s32 0, %v58_v28  ;;  %v63_v31 = vsub.s32 1, %v58_v28  ;;  %v283_v35 = vunpack.c.l.bf16 %v281_v32  ;;  %v284_v40 = vunpack.c.h.bf16 %v281_v32  ;;  %v1204_v32 = vld [vmem:[%s2275_s0 + $0xc] sm:$0xff] }
   0xc   :  { %206 = vmatprep.subr.bf16.mxu0 %v1681_v8  ;;  %1322 = vmatpush3.bf16.msra.mxu1 %v1723_v15  ;;  %v67_v53 = vsub.s32 2, %v58_v28 }
   0xd   :  { %1323 = vmatprep.subr.bf16.mxu1 %v1615_v1  ;;  %v1837_v33 = vrot.slane %v53_v30, %v59_v29  ;;  %v1839_v34 = vrot.slane %v53_v30, %v63_v31 }
   0xe   :  { %v1843_v54 = vrot.slane %v53_v30, %v67_v53 }
   0xf   :  { %207 = vmatpush1.bf16.msra.mxu0 %v1692_v10 }
  0x10   :  { %208 = vmatprep.subr.bf16.mxu0 %v1697_v11  ;;  %1324 = vmatpush3.bf16.msra.mxu1 %v1742_v18 }
  0x11   :  { %1325 = vmatprep.subr.bf16.mxu1 %v1615_v1 }
  0x13   :  { %209 = vmatpush1.bf16.msra.mxu0 %v1710_v13 }
  0x14   :  { %210 = vmatprep.subr.bf16.mxu0 %v1716_v14  ;;  %1326 = vmatpush3.bf16.msra.mxu1 %v1761_v21 }
  0x15   :  { %1327 = vmatprep.subr.bf16.mxu1 %v1615_v1 }
  0x17   :  { %211 = vmatpush1.bf16.msra.mxu0 %v1730_v16 }
  0x18   :  { %212 = vmatprep.subr.bf16.mxu0 %v1736_v17  ;;  %1328 = vmatpush3.bf16.msra.mxu1 %v1775_v23 }
  0x19   :  { %1329 = vmatprep.subr.bf16.mxu1 %v1615_v1 }
  0x1b   :  { %213 = vmatpush1.bf16.msra.mxu0 %v1749_v19 }
  0x1c   :  { %214 = vmatprep.subr.bf16.mxu0 %v1755_v20  ;;  %1330 = vmatpush3.bf16.msra.mxu1 %v1783_v24 }
  0x1d   :  { %1331 = vmatprep.subr.bf16.mxu1 %v1615_v1 }
  0x1f   :  { %215 = vmatpush1.bf16.msra.mxu0 %v1768_v22 }
  0x20   :  { %320 = vmatprep.subr.bf16.mxu0 %v1642_v0  ;;  %1332 = vmatpush3.bf16.msra.mxu1 %v1793_v26 }
  0x21   :  { %1337 = vmatprep.subr.bf16.mxu1 %v1615_v1 }
  0x22   :  { %233 = vmatmul.mubr.bf16.vlgmr.msra.gmra.mrb[0].mxu0 %v1618_v25 }
  0x23   :  { %321 = vmatpush1.bf16.msra.mxu0 %v1649_v3  ;;  %352 = vmatprep.mubr.bf16.mxu0 %v1616_v2 }
  0x24   :  { %322 = vmatprep.subr.bf16.mxu0 %v1657_v4  ;;  %1334 = vmatmul.mubr.bf16.vlgmr.msra.gmra.mrb[0].mxu1 %v1618_v25 }
  0x25   :  { %1338 = vmatpush3.bf16.msra.mxu1 %v1686_v9  ;;  %1353 = vmatprep.mubr.msk.bf16.mxu1 %vm1617_vm0, %v1615_v1 }
  0x26   :  { %1339 = vmatprep.subr.bf16.mxu1 %v1615_v1 }
  0x27   :  { %323 = vmatpush1.bf16.msra.mxu0 %v1663_v5 }
  0x28   :  { %324 = vmatprep.subr.bf16.mxu0 %v1669_v6 }
  0x29   :  { %1340 = vmatpush3.bf16.msra.mxu1 %v1704_v12 }
  0x2a   :  { %1341 = vmatprep.subr.bf16.mxu1 %v1615_v1 }
  0x2b   :  { %325 = vmatpush1.bf16.msra.mxu0 %v1675_v7 }
  0x2c   :  { %326 = vmatprep.subr.bf16.mxu0 %v1681_v8 }
  0x2d   :  { %1342 = vmatpush3.bf16.msra.mxu1 %v1723_v15 }
  0x2e   :  { %1343 = vmatprep.subr.bf16.mxu1 %v1615_v1 }
  0x2f   :  { %327 = vmatpush1.bf16.msra.mxu0 %v1692_v10 }
  0x30   :  { %328 = vmatprep.subr.bf16.mxu0 %v1697_v11 }
  0x31   :  { %1344 = vmatpush3.bf16.msra.mxu1 %v1742_v18 }
  0x32   :  { %1345 = vmatprep.subr.bf16.mxu1 %v1615_v1 }
  0x33   :  { %329 = vmatpush1.bf16.msra.mxu0 %v1710_v13 }
  0x34   :  { %330 = vmatprep.subr.bf16.mxu0 %v1716_v14 }
  0x35   :  { %1346 = vmatpush3.bf16.msra.mxu1 %v1761_v21 }
  0x36   :  { %1347 = vmatprep.subr.bf16.mxu1 %v1615_v1 }
  0x37   :  { %331 = vmatpush1.bf16.msra.mxu0 %v1730_v16 }
  0x38   :  { %332 = vmatprep.subr.bf16.mxu0 %v1736_v17 }
  0x39   :  { %1348 = vmatpush3.bf16.msra.mxu1 %v1775_v23 }
  0x3a   :  { %1349 = vmatprep.subr.bf16.mxu1 %v1615_v1 }
  0x3b   :  { %333 = vmatpush1.bf16.msra.mxu0 %v1749_v19 }
  0x3c   :  { %334 = vmatprep.subr.bf16.mxu0 %v1755_v20 }
  0x3d   :  { %1350 = vmatpush3.bf16.msra.mxu1 %v1783_v24 }
  0x3e   :  { %1351 = vmatprep.subr.bf16.mxu1 %v1615_v1 }
  0x3f   :  { %335 = vmatpush1.bf16.msra.mxu0 %v1768_v22 }
  0x40   :  { %439 = vmatprep.subr.bf16.mxu0 %v1642_v0 }
  0x41   :  { %1352 = vmatpush3.bf16.msra.mxu1 %v1793_v26 }
  0x42   :  { %1357 = vmatprep.subr.bf16.mxu1 %v1615_v1 }
  0xf5   :  { %v234_v36 = vpop.f32.mrb[0].mxu0 }
  0xf6   :  { %v235_v37 = vadd.f32 %v234_v36, %v1837_v33  ;;  %v236_v38 = vpop.f32.mrb[1].mxu0 }
  0xf7   :  { %v237_v39 = vadd.f32 %v236_v38, %v1839_v34  ;;  %v238_v41 = vpop.f32.mrb[2].mxu0  ;;  %v275_v46 = vpop.f32.mrb[0].mxu1 }
  0xf8   :  { %v286_v42 = vadd.f32 %v283_v35, %v235_v37  ;;  %v239_v43 = vpop.f32.mrb[3].mxu0  ;;  %v1335_v48 = vpop.f32.mrb[1].mxu1  ;;  %v276_v58 = vadd.f32 %v275_v46, %v1843_v54  ;;  %v404_v35 = vunpack.c.l.bf16 %v1204_v32 }
  0xf9   :  { %v293_v45 = vadd.f32 %v284_v40, %v237_v39  ;;  %v278_v49 = vpop.f32.mrb[2].mxu1 }
  0xfa   :  { %v1201_v44 = vmul.f32 -1.442695, %v286_v42  ;;  %v1336_v50 = vpop.f32.mrb[3].mxu1  ;;  %v405_v42 = vunpack.c.h.bf16 %v1204_v32 }
  0xfb   :  { %v1202_v47 = vmul.f32 -1.442695, %v293_v45 }
  0xfc   :  { %1513 = vpow2.f32 %v1201_v44 }
  0xfd   :  { %1515 = vpow2.f32 %v1202_v47 }
 0x106   :  { %v1514_v51 = vpop.eup %1513 }
 0x107   :  { %v290_v52 = vadd.f32 1.0, %v1514_v51  ;;  %v1516_v55 = vpop.eup %1515 }
 0x108   :  { %v297_v57 = vadd.f32 1.0, %v1516_v55  ;;  %v1906_v55 = vld [vmem:[%s2275_s0 + $0x14] ss:$12 sps:$4 sm:$0xff]  }
 0x109   :  { %1517 = vrcp.f32 %v290_v52 }
 0x10a   :  { %1519 = vrcp.f32 %v297_v57 }
 0x113   :  { %v1518_v60 = vpop.eup %1517 }
 0x114   :  { %v300_v61 = vmul.f32 %v1518_v60, %v276_v58  ;;  %v1520_v63 = vpop.eup %1519  ;;  %v406_v58 = vunpack.c.l.bf16 %v1906_v55 }
 0x115   :  { %v303_v25 = vsub.f32 1.0, %v1520_v63  ;;  %v305_v29 = vmul.f32 0.0, %v1520_v63 }
 0x116   :  { %v301_v62 = vadd.f32 %v300_v61, %v285_v59 }
 0x118   :  { %1521 = vtanh.f32 %v301_v62 }
 0x122   :  { %v1522_v27 = vpop.eup %1521 }
 0x123   :  { %v304_v28 = vmul.f32 %v1522_v27, %v303_v25 }
 0x125   :  { %v1849_v30 = vadd.f32 %v305_v29, %v304_v28 }
 0x127   :  { %311 = vst.msk [vmem:[%s2276_s3] sm:$0xff] %vm310_vm1, %v1849_v30  ;;  %v319_v31 = vpack.c.bf16 %v1849_v30, %v1849_v30 }
 0x128   :  { %1203 = vst.msk [vmem:[%s2276_s3 + $0x38] sm:$0xff] %vm315_vm2, %v1849_v30 }
 0x129   :  { %353 = vmatmul.mubr.bf16.vlgmr.msra.gmra.mrb[4].mxu0 %v319_v31  ;;  %1354 = vmatmul.mubr.bf16.vlgmr.msra.gmra.mrb[4].mxu1 %v319_v31 }
 0x12a   :  { %440 = vmatpush1.bf16.msra.mxu0 %v1649_v3  ;;  %1358 = vmatpush3.bf16.msra.mxu1 %v1686_v9 }
 0x12b   :  { %441 = vmatprep.subr.bf16.mxu0 %v1657_v4  ;;  %1359 = vmatprep.subr.bf16.mxu1 %v1615_v1 }
 0x12c   :  { %471 = vmatprep.mubr.bf16.mxu0 %v1616_v2  ;;  %1373 = vmatprep.mubr.msk.bf16.mxu1 %vm1617_vm0, %v1615_v1 }
 0x12e   :  { %442 = vmatpush1.bf16.msra.mxu0 %v1663_v5  ;;  %1360 = vmatpush3.bf16.msra.mxu1 %v1704_v12 }
 0x12f   :  { %443 = vmatprep.subr.bf16.mxu0 %v1669_v6  ;;  %1361 = vmatprep.subr.bf16.mxu1 %v1615_v1 }
 0x132   :  { %444 = vmatpush1.bf16.msra.mxu0 %v1675_v7  ;;  %1362 = vmatpush3.bf16.msra.mxu1 %v1723_v15 }
 0x133   :  { %445 = vmatprep.subr.bf16.mxu0 %v1681_v8  ;;  %1363 = vmatprep.subr.bf16.mxu1 %v1615_v1 }
 0x136   :  { %446 = vmatpush1.bf16.msra.mxu0 %v1692_v10  ;;  %1364 = vmatpush3.bf16.msra.mxu1 %v1742_v18 }
 0x137   :  { %447 = vmatprep.subr.bf16.mxu0 %v1697_v11  ;;  %1365 = vmatprep.subr.bf16.mxu1 %v1615_v1 }
 0x13a   :  { %448 = vmatpush1.bf16.msra.mxu0 %v1710_v13  ;;  %1366 = vmatpush3.bf16.msra.mxu1 %v1761_v21 }
 0x13b   :  { %449 = vmatprep.subr.bf16.mxu0 %v1716_v14  ;;  %1367 = vmatprep.subr.bf16.mxu1 %v1615_v1 }
 0x13e   :  { %450 = vmatpush1.bf16.msra.mxu0 %v1730_v16  ;;  %1368 = vmatpush3.bf16.msra.mxu1 %v1775_v23 }
 0x13f   :  { %451 = vmatprep.subr.bf16.mxu0 %v1736_v17  ;;  %1369 = vmatprep.subr.bf16.mxu1 %v1615_v1 }
 0x142   :  { %452 = vmatpush1.bf16.msra.mxu0 %v1749_v19  ;;  %1370 = vmatpush3.bf16.msra.mxu1 %v1783_v24 }
 0x143   :  { %453 = vmatprep.subr.bf16.mxu0 %v1755_v20  ;;  %1371 = vmatprep.subr.bf16.mxu1 %v1615_v1 }
 0x146   :  { %454 = vmatpush1.bf16.msra.mxu0 %v1768_v22  ;;  %1372 = vmatpush3.bf16.msra.mxu1 %v1793_v26 }
 0x147   :  { %558 = vmatprep.subr.bf16.mxu0 %v1642_v0  ;;  %1377 = vmatprep.subr.bf16.mxu1 %v1615_v1 }
 0x1fc   :  { %v354_v36 = vpop.f32.mrb[4].mxu0  ;;  %v395_v37 = vpop.f32.mrb[4].mxu1 }
 0x1fd   :  { %v355_v38 = vadd.f32 %v354_v36, %v1837_v33  ;;  %v356_v39 = vpop.f32.mrb[5].mxu0  ;;  %v1355_v40 = vpop.f32.mrb[5].mxu1  ;;  %v396_v57 = vadd.f32 %v395_v37, %v1843_v54 }
 0x1fe   :  { %v357_v41 = vadd.f32 %v356_v39, %v1839_v34  ;;  %v358_v43 = vpop.f32.mrb[6].mxu0  ;;  %v398_v44 = vpop.f32.mrb[6].mxu1 }
 0x1ff   :  { %v407_v45 = vadd.f32 %v404_v35, %v355_v38  ;;  %v359_v46 = vpop.f32.mrb[7].mxu0  ;;  %v1356_v47 = vpop.f32.mrb[7].mxu1 }
 0x200   :  { %v414_v49 = vadd.f32 %v405_v42, %v357_v41 }
 0x201   :  { %v1206_v48 = vmul.f32 -1.442695, %v407_v45 }
 0x202   :  { %v1207_v50 = vmul.f32 -1.442695, %v414_v49 }
 0x203   :  { %1523 = vpow2.f32 %v1206_v48 }
 0x204   :  { %1525 = vpow2.f32 %v1207_v50 }
 0x20d   :  { %v1524_v51 = vpop.eup %1523 }
 0x20e   :  { %v411_v52 = vadd.f32 1.0, %v1524_v51  ;;  %v1526_v53 = vpop.eup %1525 }
 0x20f   :  { %v418_v56 = vadd.f32 1.0, %v1526_v53 }
 0x210   :  { %1527 = vrcp.f32 %v411_v52 }
 0x211   :  { %1529 = vrcp.f32 %v418_v56 }
 0x21a   :  { %v1528_v59 = vpop.eup %1527 }
 0x21b   :  { %v421_v60 = vmul.f32 %v1528_v59, %v396_v57  ;;  %v1530_v62 = vpop.eup %1529  ;;  %v525_v57 = vunpack.c.h.bf16 %v1906_v55 }
 0x21c   :  { %v424_v63 = vsub.f32 1.0, %v1530_v62  ;;  %v426_v28 = vmul.f32 %v1530_v62, %v1849_v30  ;;  %v1210_v30 = vld [vmem:[%s2275_s0 + $0x18] sm:$0xff] }
 0x21d   :  { %v422_v61 = vadd.f32 %v421_v60, %v406_v58  ;;  %v523_v32 = vunpack.c.l.bf16 %v1210_v30  ;;  %v524_v41 = vunpack.c.h.bf16 %v1210_v30 }
 0x21f   :  { %1531 = vtanh.f32 %v422_v61 }
 0x229   :  { %v1532_v25 = vpop.eup %1531 }
 0x22a   :  { %v425_v27 = vmul.f32 %v1532_v25, %v424_v63 }
 0x22c   :  { %v1911_v29 = vadd.f32 %v426_v28, %v425_v27 }
 0x22e   :  { %1208 = vst.msk [vmem:[%s2276_s3 + $0x8] sm:$0xff] %vm310_vm1, %v1911_v29  ;;  %v438_v31 = vpack.c.bf16 %v1911_v29, %v1911_v29 }
 0x22f   :  { %1209 = vst.msk [vmem:[%s2276_s3 + $0x30] sm:$0xff] %vm315_vm2, %v1911_v29 }
 0x230   :  { %472 = vmatmul.mubr.bf16.vlgmr.msra.gmra.mrb[8].mxu0 %v438_v31  ;;  %1374 = vmatmul.mubr.bf16.vlgmr.msra.gmra.mrb[8].mxu1 %v438_v31 }
 0x231   :  { %559 = vmatpush1.bf16.msra.mxu0 %v1649_v3  ;;  %1378 = vmatpush3.bf16.msra.mxu1 %v1686_v9 }
 0x232   :  { %560 = vmatprep.subr.bf16.mxu0 %v1657_v4  ;;  %1379 = vmatprep.subr.bf16.mxu1 %v1615_v1 }
 0x233   :  { %590 = vmatprep.mubr.bf16.mxu0 %v1616_v2  ;;  %1393 = vmatprep.mubr.msk.bf16.mxu1 %vm1617_vm0, %v1615_v1 }
 0x235   :  { %561 = vmatpush1.bf16.msra.mxu0 %v1663_v5  ;;  %1380 = vmatpush3.bf16.msra.mxu1 %v1704_v12 }
 0x236   :  { %562 = vmatprep.subr.bf16.mxu0 %v1669_v6  ;;  %1381 = vmatprep.subr.bf16.mxu1 %v1615_v1 }
 0x239   :  { %563 = vmatpush1.bf16.msra.mxu0 %v1675_v7  ;;  %1382 = vmatpush3.bf16.msra.mxu1 %v1723_v15 }
 0x23a   :  { %564 = vmatprep.subr.bf16.mxu0 %v1681_v8  ;;  %1383 = vmatprep.subr.bf16.mxu1 %v1615_v1 }
 0x23d   :  { %565 = vmatpush1.bf16.msra.mxu0 %v1692_v10  ;;  %1384 = vmatpush3.bf16.msra.mxu1 %v1742_v18 }
 0x23e   :  { %566 = vmatprep.subr.bf16.mxu0 %v1697_v11  ;;  %1385 = vmatprep.subr.bf16.mxu1 %v1615_v1 }
 0x241   :  { %567 = vmatpush1.bf16.msra.mxu0 %v1710_v13  ;;  %1386 = vmatpush3.bf16.msra.mxu1 %v1761_v21 }
 0x242   :  { %568 = vmatprep.subr.bf16.mxu0 %v1716_v14  ;;  %1387 = vmatprep.subr.bf16.mxu1 %v1615_v1 }
 0x245   :  { %569 = vmatpush1.bf16.msra.mxu0 %v1730_v16  ;;  %1388 = vmatpush3.bf16.msra.mxu1 %v1775_v23 }
 0x246   :  { %570 = vmatprep.subr.bf16.mxu0 %v1736_v17  ;;  %1389 = vmatprep.subr.bf16.mxu1 %v1615_v1 }
 0x249   :  { %571 = vmatpush1.bf16.msra.mxu0 %v1749_v19  ;;  %1390 = vmatpush3.bf16.msra.mxu1 %v1783_v24 }
 0x24a   :  { %572 = vmatprep.subr.bf16.mxu0 %v1755_v20  ;;  %1391 = vmatprep.subr.bf16.mxu1 %v1615_v1 }
 0x24d   :  { %573 = vmatpush1.bf16.msra.mxu0 %v1768_v22  ;;  %1392 = vmatpush3.bf16.msra.mxu1 %v1793_v26 }
 0x24e   :  { %677 = vmatprep.subr.bf16.mxu0 %v1642_v0  ;;  %1397 = vmatprep.subr.bf16.mxu1 %v1615_v1 }
 0x303   :  { %v473_v35 = vpop.f32.mrb[8].mxu0  ;;  %v514_v36 = vpop.f32.mrb[8].mxu1 }
 0x304   :  { %v474_v37 = vadd.f32 %v473_v35, %v1837_v33  ;;  %v475_v38 = vpop.f32.mrb[9].mxu0  ;;  %v1375_v39 = vpop.f32.mrb[9].mxu1  ;;  %v515_v56 = vadd.f32 %v514_v36, %v1843_v54 }
 0x305   :  { %v476_v40 = vadd.f32 %v475_v38, %v1839_v34  ;;  %v477_v42 = vpop.f32.mrb[10].mxu0  ;;  %v517_v43 = vpop.f32.mrb[10].mxu1 }
 0x306   :  { %v526_v44 = vadd.f32 %v523_v32, %v474_v37  ;;  %v478_v45 = vpop.f32.mrb[11].mxu0  ;;  %v1376_v46 = vpop.f32.mrb[11].mxu1 }
 0x307   :  { %v533_v48 = vadd.f32 %v524_v41, %v476_v40 }
 0x308   :  { %v1212_v47 = vmul.f32 -1.442695, %v526_v44 }
 0x309   :  { %v1213_v49 = vmul.f32 -1.442695, %v533_v48 }
 0x30a   :  { %1533 = vpow2.f32 %v1212_v47 }
 0x30b   :  { %1535 = vpow2.f32 %v1213_v49 }
 0x314   :  { %v1534_v50 = vpop.eup %1533 }
 0x315   :  { %v530_v51 = vadd.f32 1.0, %v1534_v50  ;;  %v1536_v52 = vpop.eup %1535 }
 0x316   :  { %v537_v53 = vadd.f32 1.0, %v1536_v52 }
 0x317   :  { %1537 = vrcp.f32 %v530_v51  ;;  %v2025_v51 = vld [vmem:[%s2275_s0 + $0x2c] ss:$12 sps:$4 sm:$0xff]  }
 0x318   :  { %1539 = vrcp.f32 %v537_v53 }
 0x321   :  { %v1538_v58 = vpop.eup %1537 }
 0x322   :  { %v540_v59 = vmul.f32 %v1538_v58, %v515_v56  ;;  %v1540_v61 = vpop.eup %1539  ;;  %v644_v56 = vunpack.c.l.bf16 %v2025_v51 }
 0x323   :  { %v543_v62 = vsub.f32 1.0, %v1540_v61  ;;  %v545_v27 = vmul.f32 %v1540_v61, %v1911_v29  ;;  %v1216_v29 = vld [vmem:[%s2275_s0 + $0x24] sm:$0xff] }
 0x324   :  { %v541_v60 = vadd.f32 %v540_v59, %v525_v57  ;;  %v642_v31 = vunpack.c.l.bf16 %v1216_v29  ;;  %v643_v39 = vunpack.c.h.bf16 %v1216_v29 }
 0x326   :  { %1541 = vtanh.f32 %v541_v60 }
 0x330   :  { %v1542_v63 = vpop.eup %1541 }
 0x331   :  { %v544_v25 = vmul.f32 %v1542_v63, %v543_v62 }
 0x333   :  { %v1968_v28 = vadd.f32 %v545_v27, %v544_v25 }
 0x335   :  { %1214 = vst.msk [vmem:[%s2276_s3 + $0x10] sm:$0xff] %vm310_vm1, %v1968_v28  ;;  %v557_v55 = vpack.c.bf16 %v1968_v28, %v1968_v28 }
 0x336   :  { %1215 = vst.msk [vmem:[%s2276_s3 + $0x28] sm:$0xff] %vm315_vm2, %v1968_v28 }
 0x337   :  { %591 = vmatmul.mubr.bf16.vlgmr.msra.gmra.mrb[12].mxu0 %v557_v55  ;;  %1394 = vmatmul.mubr.bf16.vlgmr.msra.gmra.mrb[12].mxu1 %v557_v55 }
 0x338   :  { %678 = vmatpush1.bf16.msra.mxu0 %v1649_v3  ;;  %1398 = vmatpush3.bf16.msra.mxu1 %v1686_v9 }
 0x339   :  { %679 = vmatprep.subr.bf16.mxu0 %v1657_v4  ;;  %1399 = vmatprep.subr.bf16.mxu1 %v1615_v1 }
 0x33a   :  { %709 = vmatprep.mubr.bf16.mxu0 %v1616_v2  ;;  %1413 = vmatprep.mubr.msk.bf16.mxu1 %vm1617_vm0, %v1615_v1 }
 0x33c   :  { %680 = vmatpush1.bf16.msra.mxu0 %v1663_v5  ;;  %1400 = vmatpush3.bf16.msra.mxu1 %v1704_v12 }
 0x33d   :  { %681 = vmatprep.subr.bf16.mxu0 %v1669_v6  ;;  %1401 = vmatprep.subr.bf16.mxu1 %v1615_v1 }
 0x340   :  { %682 = vmatpush1.bf16.msra.mxu0 %v1675_v7  ;;  %1402 = vmatpush3.bf16.msra.mxu1 %v1723_v15 }
 0x341   :  { %683 = vmatprep.subr.bf16.mxu0 %v1681_v8  ;;  %1403 = vmatprep.subr.bf16.mxu1 %v1615_v1 }
 0x344   :  { %684 = vmatpush1.bf16.msra.mxu0 %v1692_v10  ;;  %1404 = vmatpush3.bf16.msra.mxu1 %v1742_v18 }
 0x345   :  { %685 = vmatprep.subr.bf16.mxu0 %v1697_v11  ;;  %1405 = vmatprep.subr.bf16.mxu1 %v1615_v1 }
 0x348   :  { %686 = vmatpush1.bf16.msra.mxu0 %v1710_v13  ;;  %1406 = vmatpush3.bf16.msra.mxu1 %v1761_v21 }
 0x349   :  { %687 = vmatprep.subr.bf16.mxu0 %v1716_v14  ;;  %1407 = vmatprep.subr.bf16.mxu1 %v1615_v1 }
 0x34c   :  { %688 = vmatpush1.bf16.msra.mxu0 %v1730_v16  ;;  %1408 = vmatpush3.bf16.msra.mxu1 %v1775_v23 }
 0x34d   :  { %689 = vmatprep.subr.bf16.mxu0 %v1736_v17  ;;  %1409 = vmatprep.subr.bf16.mxu1 %v1615_v1 }
 0x350   :  { %690 = vmatpush1.bf16.msra.mxu0 %v1749_v19  ;;  %1410 = vmatpush3.bf16.msra.mxu1 %v1783_v24 }
 0x351   :  { %691 = vmatprep.subr.bf16.mxu0 %v1755_v20  ;;  %1411 = vmatprep.subr.bf16.mxu1 %v1615_v1 }
 0x354   :  { %692 = vmatpush1.bf16.msra.mxu0 %v1768_v22  ;;  %1412 = vmatpush3.bf16.msra.mxu1 %v1793_v26 }
 0x355   :  { %796 = vmatprep.subr.bf16.mxu0 %v1642_v0  ;;  %1417 = vmatprep.subr.bf16.mxu1 %v1615_v1 }
 0x40a   :  { %v592_v30 = vpop.f32.mrb[12].mxu0  ;;  %v633_v32 = vpop.f32.mrb[12].mxu1 }
 0x40b   :  { %v593_v35 = vadd.f32 %v592_v30, %v1837_v33  ;;  %v594_v36 = vpop.f32.mrb[13].mxu0  ;;  %v1395_v37 = vpop.f32.mrb[13].mxu1  ;;  %v634_v53 = vadd.f32 %v633_v32, %v1843_v54 }
 0x40c   :  { %v595_v38 = vadd.f32 %v594_v36, %v1839_v34  ;;  %v596_v40 = vpop.f32.mrb[14].mxu0  ;;  %v636_v41 = vpop.f32.mrb[14].mxu1 }
 0x40d   :  { %v645_v42 = vadd.f32 %v642_v31, %v593_v35  ;;  %v597_v43 = vpop.f32.mrb[15].mxu0  ;;  %v1396_v44 = vpop.f32.mrb[15].mxu1 }
 0x40e   :  { %v652_v46 = vadd.f32 %v643_v39, %v595_v38 }
 0x40f   :  { %v1218_v45 = vmul.f32 -1.442695, %v645_v42 }
 0x410   :  { %v1219_v47 = vmul.f32 -1.442695, %v652_v46 }
 0x411   :  { %1543 = vpow2.f32 %v1218_v45 }
 0x412   :  { %1545 = vpow2.f32 %v1219_v47 }
 0x41b   :  { %v1544_v48 = vpop.eup %1543 }
 0x41c   :  { %v649_v49 = vadd.f32 1.0, %v1544_v48  ;;  %v1546_v50 = vpop.eup %1545 }
 0x41d   :  { %v656_v52 = vadd.f32 1.0, %v1546_v50 }
 0x41e   :  { %1547 = vrcp.f32 %v649_v49 }
 0x41f   :  { %1549 = vrcp.f32 %v656_v52  ;;  %v763_v52 = vunpack.c.h.bf16 %v2025_v51 }
 0x428   :  { %v1548_v57 = vpop.eup %1547 }
 0x429   :  { %v659_v58 = vmul.f32 %v1548_v57, %v634_v53  ;;  %v1550_v60 = vpop.eup %1549 }
 0x42a   :  { %v662_v61 = vsub.f32 1.0, %v1550_v60  ;;  %v664_v25 = vmul.f32 %v1550_v60, %v1968_v28  ;;  %v1222_v28 = vld [vmem:[%s2275_s0 + $0x30] sm:$0xff] }
 0x42b   :  { %v660_v59 = vadd.f32 %v659_v58, %v644_v56  ;;  %v761_v29 = vunpack.c.l.bf16 %v1222_v28  ;;  %v762_v38 = vunpack.c.h.bf16 %v1222_v28 }
 0x42d   :  { %1551 = vtanh.f32 %v660_v59 }
 0x437   :  { %v1552_v62 = vpop.eup %1551 }
 0x438   :  { %v663_v63 = vmul.f32 %v1552_v62, %v662_v61 }
 0x43a   :  { %v2030_v27 = vadd.f32 %v664_v25, %v663_v63  ;;  %v2146_v25 = vld [vmem:[%s2275_s0 + $0x44] ss:$12 sps:$4 sm:$0xff]  }
 0x43b   :  { %v882_v28 = vunpack.c.l.bf16 %v2146_v25 }
 0x43c   :  { %1220 = vst.msk [vmem:[%s2276_s3 + $0x18] sm:$0xff] %vm310_vm1, %v2030_v27  ;;  %v676_v55 = vpack.c.bf16 %v2030_v27, %v2030_v27 }
 0x43d   :  { %1221 = vst.msk [vmem:[%s2276_s3 + $0x20] sm:$0xff] %vm315_vm2, %v2030_v27 }
 0x43e   :  { %710 = vmatmul.mubr.bf16.vlgmr.msra.gmra.mrb[16].mxu0 %v676_v55  ;;  %1414 = vmatmul.mubr.bf16.vlgmr.msra.gmra.mrb[16].mxu1 %v676_v55 }
 0x43f   :  { %797 = vmatpush1.bf16.msra.mxu0 %v1649_v3  ;;  %1418 = vmatpush3.bf16.msra.mxu1 %v1686_v9 }
 0x440   :  { %798 = vmatprep.subr.bf16.mxu0 %v1657_v4  ;;  %1419 = vmatprep.subr.bf16.mxu1 %v1615_v1 }
 0x441   :  { %828 = vmatprep.mubr.bf16.mxu0 %v1616_v2  ;;  %1433 = vmatprep.mubr.msk.bf16.mxu1 %vm1617_vm0, %v1615_v1 }
 0x443   :  { %799 = vmatpush1.bf16.msra.mxu0 %v1663_v5  ;;  %1420 = vmatpush3.bf16.msra.mxu1 %v1704_v12 }
 0x444   :  { %800 = vmatprep.subr.bf16.mxu0 %v1669_v6  ;;  %1421 = vmatprep.subr.bf16.mxu1 %v1615_v1 }
 0x447   :  { %801 = vmatpush1.bf16.msra.mxu0 %v1675_v7  ;;  %1422 = vmatpush3.bf16.msra.mxu1 %v1723_v15 }
 0x448   :  { %802 = vmatprep.subr.bf16.mxu0 %v1681_v8  ;;  %1423 = vmatprep.subr.bf16.mxu1 %v1615_v1 }
 0x44b   :  { %803 = vmatpush1.bf16.msra.mxu0 %v1692_v10  ;;  %1424 = vmatpush3.bf16.msra.mxu1 %v1742_v18 }
 0x44c   :  { %804 = vmatprep.subr.bf16.mxu0 %v1697_v11  ;;  %1425 = vmatprep.subr.bf16.mxu1 %v1615_v1 }
 0x44f   :  { %805 = vmatpush1.bf16.msra.mxu0 %v1710_v13  ;;  %1426 = vmatpush3.bf16.msra.mxu1 %v1761_v21 }
 0x450   :  { %806 = vmatprep.subr.bf16.mxu0 %v1716_v14  ;;  %1427 = vmatprep.subr.bf16.mxu1 %v1615_v1 }
 0x453   :  { %807 = vmatpush1.bf16.msra.mxu0 %v1730_v16  ;;  %1428 = vmatpush3.bf16.msra.mxu1 %v1775_v23 }
 0x454   :  { %808 = vmatprep.subr.bf16.mxu0 %v1736_v17  ;;  %1429 = vmatprep.subr.bf16.mxu1 %v1615_v1 }
 0x457   :  { %809 = vmatpush1.bf16.msra.mxu0 %v1749_v19  ;;  %1430 = vmatpush3.bf16.msra.mxu1 %v1783_v24 }
 0x458   :  { %810 = vmatprep.subr.bf16.mxu0 %v1755_v20  ;;  %1431 = vmatprep.subr.bf16.mxu1 %v1615_v1 }
 0x45b   :  { %811 = vmatpush1.bf16.msra.mxu0 %v1768_v22  ;;  %1432 = vmatpush3.bf16.msra.mxu1 %v1793_v26 }
 0x45c   :  { %915 = vmatprep.subr.bf16.mxu0 %v1642_v0  ;;  %1437 = vmatprep.subr.bf16.mxu1 %v1615_v1 }
 0x511   :  { %v711_v31 = vpop.f32.mrb[16].mxu0  ;;  %v752_v30 = vpop.f32.mrb[16].mxu1 }
 0x512   :  { %v712_v32 = vadd.f32 %v711_v31, %v1837_v33  ;;  %v713_v35 = vpop.f32.mrb[17].mxu0  ;;  %v1415_v36 = vpop.f32.mrb[17].mxu1  ;;  %v753_v50 = vadd.f32 %v752_v30, %v1843_v54 }
 0x513   :  { %v714_v37 = vadd.f32 %v713_v35, %v1839_v34  ;;  %v715_v39 = vpop.f32.mrb[18].mxu0  ;;  %v755_v40 = vpop.f32.mrb[18].mxu1 }
 0x514   :  { %v764_v41 = vadd.f32 %v761_v29, %v712_v32  ;;  %v716_v0 = vpop.f32.mrb[19].mxu0  ;;  %v1416_v42 = vpop.f32.mrb[19].mxu1 }
 0x515   :  { %v771_v44 = vadd.f32 %v762_v38, %v714_v37  ;;  %v1595_v0 = vld [vmem:[%s2273_s1 + $0x8] ss:$12 sps:$4 sm:$0xff]  }
 0x516   :  { %v1224_v43 = vmul.f32 -1.442695, %v764_v41  ;;  %v1594_v41 = vld [vmem:[%s2273_s1] ss:$12 sps:$4 sm:$0xff]   ;;  %v1596_v42 = vld [vmem:[%s2273_s1 + $0x1c] ss:$12 sps:$4 sm:$0xff]  }
 0x517   :  { %v1225_v45 = vmul.f32 -1.442695, %v771_v44  ;;  %v1598_v44 = vld [vmem:[%s2273_s1 + $0x20] ss:$12 sps:$4 sm:$0xff]  }
 0x518   :  { %1553 = vpow2.f32 %v1224_v43  ;;  %v1597_v43 = vld [vmem:[%s2273_s1 + $0x18] ss:$12 sps:$4 sm:$0xff]  }
 0x519   :  { %1555 = vpow2.f32 %v1225_v45  ;;  %v1599_v45 = vld [vmem:[%s2273_s1 + $0x34] ss:$12 sps:$4 sm:$0xff]  }
 0x522   :  { %v1554_v46 = vpop.eup %1553 }
 0x523   :  { %v768_v47 = vadd.f32 1.0, %v1554_v46  ;;  %v1556_v48 = vpop.eup %1555  ;;  %v1601_v46 = vld [vmem:[%s2273_s1 + $0x38] ss:$12 sps:$4 sm:$0xff]  }
 0x524   :  { %v775_v49 = vadd.f32 1.0, %v1556_v48  ;;  %v1603_v48 = vld [vmem:[%s2273_s1 + $0x48] ss:$12 sps:$4 sm:$0xff]  }
 0x525   :  { %1557 = vrcp.f32 %v768_v47  ;;  %v1602_v47 = vld [vmem:[%s2273_s1 + $0x4c] ss:$12 sps:$4 sm:$0xff]  }
 0x526   :  { %1559 = vrcp.f32 %v775_v49  ;;  %v1604_v49 = vld [vmem:[%s2273_s1 + $0x50] ss:$12 sps:$4 sm:$0xff]  }
 0x52f   :  { %v1558_v53 = vpop.eup %1557 }
 0x530   :  { %v778_v56 = vmul.f32 %v1558_v53, %v753_v50  ;;  %v1560_v58 = vpop.eup %1559  ;;  %v1605_v50 = vld [vmem:[%s2273_s1 + $0x64] ss:$12 sps:$4 sm:$0xff]   ;;  %v1607_v53 = vld [vmem:[%s2273_s1 + $0x68] ss:$12 sps:$4 sm:$0xff]  }
 0x531   :  { %v781_v59 = vsub.f32 1.0, %v1560_v58  ;;  %v783_v62 = vmul.f32 %v1560_v58, %v2030_v27  ;;  %v1610_v58 = vld [vmem:[%s2273_s1 + $0x80] ss:$12 sps:$4 sm:$0xff]  }
 0x532   :  { %v779_v57 = vadd.f32 %v778_v56, %v763_v52  ;;  %v1606_v52 = vld [vmem:[%s2273_s1 + $0x60] ss:$12 sps:$4 sm:$0xff]   ;;  %v1608_v56 = vld [vmem:[%s2273_s1 + $0x7c] ss:$12 sps:$4 sm:$0xff]  }
 0x534   :  { %1561 = vtanh.f32 %v779_v57  ;;  %v1609_v57 = vld [vmem:[%s2273_s1 + $0x78] ss:$12 sps:$4 sm:$0xff]  }
 0x53e   :  { %v1562_v60 = vpop.eup %1561 }
 0x53f   :  { %v782_v61 = vmul.f32 %v1562_v60, %v781_v59  ;;  %v1611_v59 = vld [vmem:[%s2273_s1 + $0x94] ss:$12 sps:$4 sm:$0xff]   ;;  %v1612_v60 = vld [vmem:[%s2273_s1 + $0x90] ss:$12 sps:$4 sm:$0xff]  }
 0x541   :  { %v2087_v63 = vadd.f32 %v783_v62, %v782_v61  ;;  %v1613_v61 = vld [vmem:[%s2273_s1 + $0xac] ss:$12 sps:$4 sm:$0xff]   ;;  %v1614_v62 = vld [vmem:[%s2273_s1 + $0xa8] ss:$12 sps:$4 sm:$0xff]  }
 0x543   :  { %1226 = vst.msk [vmem:[%s2276_s3 + $0x20] sm:$0xff] %vm310_vm1, %v2087_v63  ;;  %v795_v51 = vpack.c.bf16 %v2087_v63, %v2087_v63 }
 0x544   :  { %1227 = vst.msk [vmem:[%s2276_s3 + $0x18] sm:$0xff] %vm315_vm2, %v2087_v63 }
 0x545   :  { %829 = vmatmul.mubr.bf16.vlgmr.msra.gmra.mrb[20].mxu0 %v795_v51  ;;  %1434 = vmatmul.mubr.bf16.vlgmr.msra.gmra.mrb[20].mxu1 %v795_v51 }
 0x546   :  { %916 = vmatpush1.bf16.msra.mxu0 %v1649_v3  ;;  %1438 = vmatpush3.bf16.msra.mxu1 %v1686_v9  ;;  %v1593_v3 = vld [vmem:[%s2273_s1 + $0x4] ss:$12 sps:$4 sm:$0xff]  }
 0x547   :  { %917 = vmatprep.subr.bf16.mxu0 %v1657_v4  ;;  %1439 = vmatprep.subr.bf16.mxu1 %v1615_v1  ;;  %v1228_v4 = vld [vmem:[%s2275_s0 + $0x3c] sm:$0xff] }
 0x548   :  { %947 = vmatprep.mubr.bf16.mxu0 %v1616_v2  ;;  %1453 = vmatprep.mubr.msk.bf16.mxu1 %vm1617_vm0, %v1615_v1 }
 0x54a   :  { %918 = vmatpush1.bf16.msra.mxu0 %v1663_v5  ;;  %1440 = vmatpush3.bf16.msra.mxu1 %v1704_v12  ;;  %v880_v5 = vunpack.c.l.bf16 %v1228_v4  ;;  %v881_v12 = vunpack.c.h.bf16 %v1228_v4 }
 0x54b   :  { %919 = vmatprep.subr.bf16.mxu0 %v1669_v6  ;;  %1441 = vmatprep.subr.bf16.mxu1 %v1615_v1 }
 0x54e   :  { %920 = vmatpush1.bf16.msra.mxu0 %v1675_v7  ;;  %1442 = vmatpush3.bf16.msra.mxu1 %v1723_v15 }
 0x54f   :  { %921 = vmatprep.subr.bf16.mxu0 %v1681_v8  ;;  %1443 = vmatprep.subr.bf16.mxu1 %v1615_v1 }
 0x552   :  { %922 = vmatpush1.bf16.msra.mxu0 %v1692_v10  ;;  %1444 = vmatpush3.bf16.msra.mxu1 %v1742_v18 }
 0x553   :  { %923 = vmatprep.subr.bf16.mxu0 %v1697_v11  ;;  %1445 = vmatprep.subr.bf16.mxu1 %v1615_v1 }
 0x556   :  { %924 = vmatpush1.bf16.msra.mxu0 %v1710_v13  ;;  %1446 = vmatpush3.bf16.msra.mxu1 %v1761_v21 }
 0x557   :  { %925 = vmatprep.subr.bf16.mxu0 %v1716_v14  ;;  %1447 = vmatprep.subr.bf16.mxu1 %v1615_v1 }
 0x55a   :  { %926 = vmatpush1.bf16.msra.mxu0 %v1730_v16  ;;  %1448 = vmatpush3.bf16.msra.mxu1 %v1775_v23 }
 0x55b   :  { %927 = vmatprep.subr.bf16.mxu0 %v1736_v17  ;;  %1449 = vmatprep.subr.bf16.mxu1 %v1615_v1 }
 0x55e   :  { %928 = vmatpush1.bf16.msra.mxu0 %v1749_v19  ;;  %1450 = vmatpush3.bf16.msra.mxu1 %v1783_v24 }
 0x55f   :  { %929 = vmatprep.subr.bf16.mxu0 %v1755_v20  ;;  %1451 = vmatprep.subr.bf16.mxu1 %v1615_v1 }
 0x562   :  { %930 = vmatpush1.bf16.msra.mxu0 %v1768_v22  ;;  %1452 = vmatpush3.bf16.msra.mxu1 %v1793_v26 }
 0x563   :  { %1034 = vmatprep.subr.bf16.mxu0 %v1593_v3  ;;  %1457 = vmatprep.subr.bf16.mxu1 %v1615_v1 }
 0x618   :  { %v830_v6 = vpop.f32.mrb[20].mxu0  ;;  %v871_v7 = vpop.f32.mrb[20].mxu1 }
 0x619   :  { %v831_v8 = vadd.f32 %v830_v6, %v1837_v33  ;;  %v832_v9 = vpop.f32.mrb[21].mxu0  ;;  %v1435_v10 = vpop.f32.mrb[21].mxu1  ;;  %v872_v55 = vadd.f32 %v871_v7, %v1843_v54 }
 0x61a   :  { %v833_v11 = vadd.f32 %v832_v9, %v1839_v34  ;;  %v834_v13 = vpop.f32.mrb[22].mxu0  ;;  %v874_v14 = vpop.f32.mrb[22].mxu1 }
 0x61b   :  { %v883_v15 = vadd.f32 %v880_v5, %v831_v8  ;;  %v835_v16 = vpop.f32.mrb[23].mxu0  ;;  %v1436_v17 = vpop.f32.mrb[23].mxu1 }
 0x61c   :  { %v890_v19 = vadd.f32 %v881_v12, %v833_v11 }
 0x61d   :  { %v1230_v18 = vmul.f32 -1.442695, %v883_v15 }
 0x61e   :  { %v1231_v20 = vmul.f32 -1.442695, %v890_v19 }
 0x61f   :  { %1563 = vpow2.f32 %v1230_v18 }
 0x620   :  { %1565 = vpow2.f32 %v1231_v20  ;;  %v1001_v20 = vunpack.c.h.bf16 %v2146_v25 }
 0x629   :  { %v1564_v21 = vpop.eup %1563 }
 0x62a   :  { %v887_v22 = vadd.f32 1.0, %v1564_v21  ;;  %v1566_v23 = vpop.eup %1565 }
 0x62b   :  { %v894_v27 = vadd.f32 1.0, %v1566_v23 }
 0x62c   :  { %1567 = vrcp.f32 %v887_v22 }
 0x62d   :  { %1569 = vrcp.f32 %v894_v27 }
 0x636   :  { %v1568_v29 = vpop.eup %1567 }
 0x637   :  { %v897_v31 = vmul.f32 %v1568_v29, %v872_v55  ;;  %v1570_v32 = vpop.eup %1569 }
 0x638   :  { %v900_v35 = vsub.f32 1.0, %v1570_v32  ;;  %v902_v38 = vmul.f32 %v1570_v32, %v2087_v63  ;;  %v1234_v63 = vld [vmem:[%s2275_s0 + $0x48] sm:$0xff]  ;;  %v1240_v32 = vld [vmem:[%s2275_s0 + $0x54] sm:$0xff] }
 0x639   :  { %v898_v30 = vadd.f32 %v897_v31, %v882_v28  ;;  %v999_v51 = vunpack.c.l.bf16 %v1234_v63  ;;  %v1000_v7 = vunpack.c.h.bf16 %v1234_v63 }
 0x63b   :  { %1571 = vtanh.f32 %v898_v30 }
 0x645   :  { %v1572_v36 = vpop.eup %1571 }
 0x646   :  { %v901_v37 = vmul.f32 %v1572_v36, %v900_v35  ;;  %v1118_v35 = vunpack.c.l.bf16 %v1240_v32 }
 0x648   :  { %v2151_v39 = vadd.f32 %v902_v38, %v901_v37 }
 0x64a   :  { %1232 = vst.msk [vmem:[%s2276_s3 + $0x28] sm:$0xff] %vm310_vm1, %v2151_v39  ;;  %v914_v40 = vpack.c.bf16 %v2151_v39, %v2151_v39 }
 0x64b   :  { %1233 = vst.msk [vmem:[%s2276_s3 + $0x10] sm:$0xff] %vm315_vm2, %v2151_v39 }
 0x64c   :  { %948 = vmatmul.mubr.bf16.vlgmr.msra.gmra.mrb[24].mxu0 %v914_v40  ;;  %1454 = vmatmul.mubr.bf16.vlgmr.msra.gmra.mrb[24].mxu1 %v914_v40 }
 0x64d   :  { %1035 = vmatpush1.bf16.msra.mxu0 %v1594_v41  ;;  %1458 = vmatpush3.bf16.msra.mxu1 %v1595_v0  ;;  %v1119_v0 = vunpack.c.h.bf16 %v1240_v32 }
 0x64e   :  { %1036 = vmatprep.subr.bf16.mxu0 %v1596_v42  ;;  %1459 = vmatprep.subr.bf16.mxu1 %v1615_v1 }
 0x64f   :  { %1066 = vmatprep.mubr.bf16.mxu0 %v1616_v2  ;;  %1473 = vmatprep.mubr.msk.bf16.mxu1 %vm1617_vm0, %v1615_v1  ;;  %v1600_v2 = vld [vmem:[%s2273_s1 + $0x30] ss:$12 sps:$4 sm:$0xff]  }
 0x651   :  { %1037 = vmatpush1.bf16.msra.mxu0 %v1597_v43  ;;  %1460 = vmatpush3.bf16.msra.mxu1 %v1598_v44 }
 0x652   :  { %1038 = vmatprep.subr.bf16.mxu0 %v1599_v45  ;;  %1461 = vmatprep.subr.bf16.mxu1 %v1615_v1 }
 0x655   :  { %1039 = vmatpush1.bf16.msra.mxu0 %v1600_v2  ;;  %1462 = vmatpush3.bf16.msra.mxu1 %v1601_v46 }
 0x656   :  { %1040 = vmatprep.subr.bf16.mxu0 %v1602_v47  ;;  %1463 = vmatprep.subr.bf16.mxu1 %v1615_v1 }
 0x659   :  { %1041 = vmatpush1.bf16.msra.mxu0 %v1603_v48  ;;  %1464 = vmatpush3.bf16.msra.mxu1 %v1604_v49 }
 0x65a   :  { %1042 = vmatprep.subr.bf16.mxu0 %v1605_v50  ;;  %1465 = vmatprep.subr.bf16.mxu1 %v1615_v1 }
 0x65d   :  { %1043 = vmatpush1.bf16.msra.mxu0 %v1606_v52  ;;  %1466 = vmatpush3.bf16.msra.mxu1 %v1607_v53 }
 0x65e   :  { %1044 = vmatprep.subr.bf16.mxu0 %v1608_v56  ;;  %1467 = vmatprep.subr.bf16.mxu1 %v1615_v1 }
 0x661   :  { %1045 = vmatpush1.bf16.msra.mxu0 %v1609_v57  ;;  %1468 = vmatpush3.bf16.msra.mxu1 %v1610_v58 }
 0x662   :  { %1046 = vmatprep.subr.bf16.mxu0 %v1611_v59  ;;  %1469 = vmatprep.subr.bf16.mxu1 %v1615_v1 }
 0x665   :  { %1047 = vmatpush1.bf16.msra.mxu0 %v1612_v60  ;;  %1470 = vmatpush3.bf16.msra.mxu1 %v1783_v24 }
 0x666   :  { %1048 = vmatprep.subr.bf16.mxu0 %v1613_v61  ;;  %1471 = vmatprep.subr.bf16.mxu1 %v1615_v1 }
 0x669   :  { %1049 = vmatpush1.bf16.msra.mxu0 %v1614_v62  ;;  %1472 = vmatpush3.bf16.msra.mxu1 %v1793_v26 }
 0x71f   :  { %v949_v24 = vpop.f32.mrb[24].mxu0  ;;  %v990_v3 = vpop.f32.mrb[24].mxu1 }
 0x720   :  { %v950_v4 = vadd.f32 %v949_v24, %v1837_v33  ;;  %v951_v5 = vpop.f32.mrb[25].mxu0  ;;  %v1455_v6 = vpop.f32.mrb[25].mxu1  ;;  %v991_v19 = vadd.f32 %v990_v3, %v1843_v54 }
 0x721   :  { %v952_v1 = vadd.f32 %v951_v5, %v1839_v34  ;;  %v953_v8 = vpop.f32.mrb[26].mxu0  ;;  %v993_v9 = vpop.f32.mrb[26].mxu1 }
 0x722   :  { %v1002_v10 = vadd.f32 %v999_v51, %v950_v4  ;;  %v954_v11 = vpop.f32.mrb[27].mxu0  ;;  %v1456_v12 = vpop.f32.mrb[27].mxu1 }
 0x723   :  { %v1009_v13 = vadd.f32 %v1000_v7, %v952_v1 }
 0x724   :  { %v1236_v26 = vmul.f32 -1.442695, %v1002_v10 }
 0x725   :  { %v1237_v14 = vmul.f32 -1.442695, %v1009_v13 }
 0x726   :  { %1573 = vpow2.f32 %v1236_v26 }
 0x727   :  { %1575 = vpow2.f32 %v1237_v14 }
 0x730   :  { %v1574_v15 = vpop.eup %1573 }
 0x731   :  { %v1006_v16 = vadd.f32 1.0, %v1574_v15  ;;  %v1576_v17 = vpop.eup %1575 }
 0x732   :  { %v1013_v18 = vadd.f32 1.0, %v1576_v17 }
 0x733   :  { %1577 = vrcp.f32 %v1006_v16 }
 0x734   :  { %1579 = vrcp.f32 %v1013_v18 }
 0x73d   :  { %v1578_v21 = vpop.eup %1577 }
 0x73e   :  { %v1016_v22 = vmul.f32 %v1578_v21, %v991_v19  ;;  %v1580_v27 = vpop.eup %1579 }
 0x73f   :  { %v1019_v55 = vsub.f32 1.0, %v1580_v27  ;;  %v1021_v31 = vmul.f32 %v1580_v27, %v2151_v39 }
 0x740   :  { %v1017_v23 = vadd.f32 %v1016_v22, %v1001_v20 }
 0x742   :  { %1581 = vtanh.f32 %v1017_v23 }
 0x74c   :  { %v1582_v28 = vpop.eup %1581 }
 0x74d   :  { %v1020_v29 = vmul.f32 %v1582_v28, %v1019_v55 }
 0x74f   :  { %v1022_v30 = vadd.f32 %v1021_v31, %v1020_v29 }
 0x751   :  { %1238 = vst.msk [vmem:[%s2276_s3 + $0x30] sm:$0xff] %vm310_vm1, %v1022_v30  ;;  %v1033_v25 = vpack.c.bf16 %v1022_v30, %v1022_v30 }
 0x752   :  { %1239 = vst.msk [vmem:[%s2276_s3 + $0x8] sm:$0xff] %vm315_vm2, %v1022_v30 }
 0x753   :  { %1067 = vmatmul.mubr.bf16.vlgmr.msra.gmra.mrb[28].mxu0 %v1033_v25  ;;  %1474 = vmatmul.mubr.bf16.vlgmr.msra.gmra.mrb[28].mxu1 %v1033_v25 }
 0x826   :  { %v1068_v36 = vpop.f32.mrb[28].mxu0  ;;  %v1109_v37 = vpop.f32.mrb[28].mxu1 }
 0x827   :  { %v1069_v38 = vadd.f32 %v1068_v36, %v1837_v33  ;;  %v1070_v39 = vpop.f32.mrb[29].mxu0  ;;  %v1475_v40 = vpop.f32.mrb[29].mxu1  ;;  %v1241_v33 = vld [vmem:[%s2275_s0 + $0x5c] sm:$0xf]  ;;  %v1110_v53 = vadd.f32 %v1109_v37, %v1843_v54 }
 0x828   :  { %v1071_v41 = vadd.f32 %v1070_v39, %v1839_v34  ;;  %v1072_v42 = vpop.f32.mrb[30].mxu0  ;;  %v1112_v43 = vpop.f32.mrb[30].mxu1  ;;  %v1120_v56 = vunpack.c.l.bf16 %v1241_v33 }
 0x829   :  { %v1121_v44 = vadd.f32 %v1118_v35, %v1069_v38  ;;  %v1073_v45 = vpop.f32.mrb[31].mxu0  ;;  %v1476_v2 = vpop.f32.mrb[31].mxu1 }
 0x82a   :  { %v1128_v47 = vadd.f32 %v1119_v0, %v1071_v41 }
 0x82b   :  { %v1242_v46 = vmul.f32 -1.442695, %v1121_v44 }
 0x82c   :  { %v1243_v48 = vmul.f32 -1.442695, %v1128_v47 }
 0x82d   :  { %1583 = vpow2.f32 %v1242_v46 }
 0x82e   :  { %1585 = vpow2.f32 %v1243_v48 }
 0x837   :  { %v1584_v49 = vpop.eup %1583 }
 0x838   :  { %v1125_v50 = vadd.f32 1.0, %v1584_v49  ;;  %v1586_v52 = vpop.eup %1585 }
 0x839   :  { %v1132_v34 = vadd.f32 1.0, %v1586_v52 }
 0x83a   :  { %1587 = vrcp.f32 %v1125_v50 }
 0x83b   :  { %1589 = vrcp.f32 %v1132_v34 }
 0x844   :  { %v1588_v57 = vpop.eup %1587 }
 0x845   :  { %v1135_v58 = vmul.f32 %v1588_v57, %v1110_v53  ;;  %v1590_v60 = vpop.eup %1589 }
 0x846   :  { %v1138_v61 = vsub.f32 1.0, %v1590_v60  ;;  %v1140_v51 = vmul.f32 %v1590_v60, %v1022_v30 }
 0x847   :  { %v1136_v59 = vadd.f32 %v1135_v58, %v1120_v56 }
 0x849   :  { %1591 = vtanh.f32 %v1136_v59 }
 0x853   :  { %v1592_v62 = vpop.eup %1591 }
 0x854   :  { %v1139_v63 = vmul.f32 %v1592_v62, %v1138_v61 }
 0x856   :  { %v1141_v24 = vadd.f32 %v1140_v51, %v1139_v63 }
 0x858   :  { %1244 = vst.msk [vmem:[%s2276_s3 + $0x38] sm:$0xff] %vm310_vm1, %v1141_v24 }
 0x859   :  { %1149 = vst.msk [vmem:[%s2276_s3] sm:$0xff] %vm315_vm2, %v1141_v24 }

</bundles_post_ra>
